<compile_context>
chip_gen: v7x
topology: tpu7x:2x2x1
jax: 0.10.0
libtpu: 0.0.40
codegen_flags: <defaults>
</compile_context>

<pallas_src>
import jax
import jax.numpy as jnp
from jax.experimental import pallas as pl
from jax.experimental.pallas import tpu as pltpu

# ---------------- configuration (small, consistent with the module) ----------
SEQ_LEN = 8          # words per sentence
BATCH = 2            # number of sentences
WORDS_NUM = 100      # vocab size (mode == 'rand')
WORDS_DIM = 32       # embedding dim
WORD_NUM_HIDDEN = 32 # GRU hidden size per direction
H2 = 2 * WORD_NUM_HIDDEN


# ------------------------------ Pallas kernel --------------------------------
def word_attn_kernel(x_ref,        # (S, Bt, D)   f32 embedded words
                     wih_ref,      # (D, 6H)      bf16  [fwd r,z,n | bwd r,z,n]
                     bih_ref,      # (1, 6H)      f32
                     whh_f_ref,    # (H, 3H)      bf16
                     bhh_f_ref,    # (1, 3H)      f32
                     whh_b_ref,    # (H, 3H)      bf16
                     bhh_b_ref,    # (1, 3H)      f32
                     wlin_ref,     # (2H, 2H)     bf16
                     blin_ref,     # (1, 2H)      f32
                     ctx_ref,      # (2H, 128)    bf16  (context vector in column 0)
                     out_ref,      # (1, Bt, 2H)  f32
                     h_ref):       # scratch: (S, Bt, 2H) f32
    S, Bt, D = x_ref.shape
    H = whh_f_ref.shape[0]

    # ---- hoisted input projection: one MXU pass for all steps & both dirs ----
    x2 = x_ref[...].reshape(S * Bt, D).astype(jnp.bfloat16)
    gi = jnp.dot(x2, wih_ref[...], preferred_element_type=jnp.float32) + bih_ref[...]
    gi3 = gi.reshape(S, Bt, 6 * H)          # (S, Bt, 6H); off the serial chain

    def gru_gates(gi_t, gh_t, h_prev):
        # PyTorch GRU gate order: r, z, n ; b_hh enters gh before the r-multiply.
        r = jax.nn.sigmoid(gi_t[:, 0:H] + gh_t[:, 0:H])
        z = jax.nn.sigmoid(gi_t[:, H:2 * H] + gh_t[:, H:2 * H])
        n = jnp.tanh(gi_t[:, 2 * H:3 * H] + r * gh_t[:, 2 * H:3 * H])
        return (1.0 - z) * n + z * h_prev

    # ---- fused fwd/bwd recurrence, fully unrolled, register-resident carry ----
    h_f = jnp.zeros((Bt, H), jnp.float32)
    h_b = jnp.zeros((Bt, H), jnp.float32)
    for t in range(S):                       # static unroll (S is small & static)
        tb = S - 1 - t
        gh_f = jnp.dot(h_f.astype(jnp.bfloat16), whh_f_ref[...],
                       preferred_element_type=jnp.float32) + bhh_f_ref[...]
        gh_b = jnp.dot(h_b.astype(jnp.bfloat16), whh_b_ref[...],
                       preferred_element_type=jnp.float32) + bhh_b_ref[...]
        h_f = gru_gates(gi3[t, :, 0:3 * H], gh_f, h_f)
        h_b = gru_gates(gi3[tb, :, 3 * H:6 * H], gh_b, h_b)
        h_ref[t, :, 0:H] = h_f               # fwd half of h[t]
        h_ref[tb, :, H:2 * H] = h_b          # bwd half of h[S-1-t]

    # ---- attention: single (2H,2H) MXU dot + MXU scoring against ctx ----------
    h_all = h_ref[...]                       # (S, Bt, 2H) f32
    h2 = h_all.reshape(S * Bt, 2 * H)
    u = jnp.tanh(jnp.dot(h2.astype(jnp.bfloat16), wlin_ref[...],
                         preferred_element_type=jnp.float32) + blin_ref[...])
    # ctx is zero-padded to 128 output lanes -> lane-dense matmul; scores in col 0.
    scores = jnp.dot(u.astype(jnp.bfloat16), ctx_ref[...],
                     preferred_element_type=jnp.float32)[:, 0:1]   # (S*Bt, 1)

    # softmax over the sequence axis (a global max shift is a valid per-column shift)
    m = jnp.max(scores, axis=0, keepdims=True)
    e = jnp.exp(scores - m)                                        # (S*Bt, 1)
    num = jnp.sum((e * h2).reshape(S, Bt, 2 * H), axis=0)          # (Bt, 2H)
    den = jnp.sum((e * jnp.ones((1, 2 * H), jnp.float32)
                   ).reshape(S, Bt, 2 * H), axis=0)                # (Bt, 2H)
    out_ref[0] = (num / den).astype(out_ref.dtype)                 # one lane-dense store


# ------------------------------ wrapper ---------------------------------------
def word_level_rnn_forward(x_tokens, p, *, b_tile=None):
    """x_tokens: (seq_len, batch) int32 token ids. Returns (1, batch, 2H) f32."""
    S, B = x_tokens.shape
    H = WORD_NUM_HIDDEN
    D = WORDS_DIM
    bf16 = jnp.bfloat16

    emb = p["embed"][x_tokens]                        # (S, B, D) embedding gather: plain-JAX glue

    # Weight prep (bf16 for MXU operands, f32 biases). Gate column order: r, z, n.
    wih_cat = jnp.concatenate([p["wih_f"].T, p["wih_b"].T], axis=1).astype(bf16)   # (D, 6H)
    bih_cat = jnp.concatenate([p["bih_f"], p["bih_b"]])[None, :].astype(jnp.float32)
    whh_f = p["whh_f"].T.astype(bf16)                 # (H, 3H)
    whh_b = p["whh_b"].T.astype(bf16)
    bhh_f = p["bhh_f"][None, :].astype(jnp.float32)
    bhh_b = p["bhh_b"][None, :].astype(jnp.float32)
    w_lin = p["w_lin"].T.astype(bf16)                 # (2H, 2H)
    b_lin = p["b_lin"][None, :].astype(jnp.float32)
    ctx_pad = jnp.pad(p["ctx"], ((0, 0), (0, 127))).astype(bf16)   # (2H, 128), col 0 = ctx

    # Batch tiling: 128-wide tiles once the batch is large (fits comfortably in
    # v7x's 64 MiB VMEM); single block otherwise. Grid axis is "parallel" so it
    # shards across v7x's two TensorCores.
    if b_tile is None:
        b_tile = 128 if (B % 128 == 0) else B
    assert B % b_tile == 0
    grid = (B // b_tile,)

    def full(shape):  # whole-array block, same for every grid step
        return pl.BlockSpec(shape, lambda i, _n=len(shape): (0,) * _n)

    in_specs = [
        pl.BlockSpec((S, b_tile, D), lambda i: (0, i, 0)),   # x, tiled over batch
        full((D, 6 * H)), full((1, 6 * H)),
        full((H, 3 * H)), full((1, 3 * H)),
        full((H, 3 * H)), full((1, 3 * H)),
        full((2 * H, 2 * H)), full((1, 2 * H)),
        full((2 * H, 128)),
    ]
    out_specs = pl.BlockSpec((1, b_tile, 2 * H), lambda i: (0, i, 0))

    kernel_fn = pl.pallas_call(
        word_attn_kernel,
        out_shape=jax.ShapeDtypeStruct((1, B, 2 * H), jnp.float32),
        grid=grid,
        in_specs=in_specs,
        out_specs=out_specs,
        scratch_shapes=[pltpu.VMEM((S, b_tile, 2 * H), jnp.float32)],
        compiler_params=pltpu.CompilerParams(dimension_semantics=("parallel",)),
    )
    return kernel_fn(emb, wih_cat, bih_cat, whh_f, bhh_f, whh_b, bhh_b,
                     w_lin, b_lin, ctx_pad)


# --------------------------- pure-JAX reference --------------------------------
def reference_forward(x_tokens, p):
    H = WORD_NUM_HIDDEN
    emb = p["embed"][x_tokens]                   # (S, B, D)
    B = x_tokens.shape[1]
    h0 = jnp.zeros((B, H), jnp.float32)

    def make_step(wih, whh, bih, bhh):
        def step(h, x_t):
            gi = x_t @ wih.T + bih
            gh = h @ whh.T + bhh
            r = jax.nn.sigmoid(gi[:, :H] + gh[:, :H])
            z = jax.nn.sigmoid(gi[:, H:2 * H] + gh[:, H:2 * H])
            n = jnp.tanh(gi[:, 2 * H:] + r * gh[:, 2 * H:])
            h_new = (1.0 - z) * n + z * h
            return h_new, h_new
        return step

    _, hf = jax.lax.scan(make_step(p["wih_f"], p["whh_f"], p["bih_f"], p["bhh_f"]), h0, emb)
    _, hb_rev = jax.lax.scan(make_step(p["wih_b"], p["whh_b"], p["bih_b"], p["bhh_b"]),
                             h0, emb[::-1])
    hb = hb_rev[::-1]
    h = jnp.concatenate([hf, hb], axis=-1)       # (S, B, 2H)

    u = jnp.tanh(h @ p["w_lin"].T + p["b_lin"])
    scores = (u @ p["ctx"])[..., 0]              # (S, B)
    a = jax.nn.softmax(scores, axis=0)           # softmax over sequence
    out = jnp.sum(h * a[:, :, None], axis=0)     # (B, 2H)
    return out[None]                             # (1, B, 2H)


# ------------------------------ param init -------------------------------------
def init_params(key):
    H, D = WORD_NUM_HIDDEN, WORDS_DIM
    ks = jax.random.split(key, 16)
    s = 1.0 / jnp.sqrt(H)
    u = lambda k, shape, lo, hi: jax.random.uniform(k, shape, jnp.float32, lo, hi)
    return {
        "embed": u(ks[0], (WORDS_NUM, D), -0.25, 0.25),
        # GRU forward direction (PyTorch shapes)
        "wih_f": u(ks[1], (3 * H, D), -s, s),
        "whh_f": u(ks[2], (3 * H, H), -s, s),
        "bih_f": u(ks[3], (3 * H,), -s, s),
        "bhh_f": u(ks[4], (3 * H,), -s, s),
        # GRU backward direction
        "wih_b": u(ks[5], (3 * H, D), -s, s),
        "whh_b": u(ks[6], (3 * H, H), -s, s),
        "bih_b": u(ks[7], (3 * H,), -s, s),
        "bhh_b": u(ks[8], (3 * H,), -s, s),
        # Linear(2H -> 2H)
        "w_lin": u(ks[9], (2 * H, 2 * H), -1.0 / jnp.sqrt(2 * H), 1.0 / jnp.sqrt(2 * H)),
        "b_lin": u(ks[10], (2 * H,), -1.0 / jnp.sqrt(2 * H), 1.0 / jnp.sqrt(2 * H)),
        # word context weights (2H, 1), uniform(-0.25, 0.25)
        "ctx": u(ks[11], (2 * H, 1), -0.25, 0.25),
    }


if __name__ == "__main__":
    key = jax.random.PRNGKey(0)
    kp, kx = jax.random.split(key)
    params = init_params(kp)

    # token ids, (seq_len, batch) as the PyTorch GRU (batch_first=False) expects
    x_tokens = jax.random.randint(kx, (SEQ_LEN, BATCH), 0, WORDS_NUM, dtype=jnp.int32)

    out = jax.block_until_ready(word_level_rnn_forward(x_tokens, params))
    ref = reference_forward(x_tokens, params)

    assert out.shape == (1, BATCH, H2), out.shape
    # Tolerance accounts for bf16 MXU operands (f32 accumulation / gate math).
    err = float(jnp.max(jnp.abs(out - ref)))
    if not jnp.allclose(out, ref, rtol=2e-2, atol=2e-2):
        raise AssertionError(f"mismatch: max abs err = {err}")
    print("KERNEL_OK")
</pallas_src>

<mosaic_0001>
module attributes {stable_mosaic.version = 11 : i64} {
  func.func @word_attn_kernel(%arg0: i32, %arg1: memref<8x2x32xf32, #tpu.memory_space<vmem>>, %arg2: memref<32x192xbf16, #tpu.memory_space<vmem>>, %arg3: memref<1x192xf32, #tpu.memory_space<vmem>>, %arg4: memref<32x96xbf16, #tpu.memory_space<vmem>>, %arg5: memref<1x96xf32, #tpu.memory_space<vmem>>, %arg6: memref<32x96xbf16, #tpu.memory_space<vmem>>, %arg7: memref<1x96xf32, #tpu.memory_space<vmem>>, %arg8: memref<64x64xbf16, #tpu.memory_space<vmem>>, %arg9: memref<1x64xf32, #tpu.memory_space<vmem>>, %arg10: memref<64x128xbf16, #tpu.memory_space<vmem>>, %arg11: memref<1x2x64xf32, #tpu.memory_space<vmem>>, %arg12: memref<8x2x64xf32, #tpu.memory_space<vmem>>) attributes {dimension_semantics = [#tpu.dimension_semantics<parallel>], iteration_bounds = array<i64: 1>, scalar_prefetch = 0 : i64, scratch_operands = 1 : i64, tpu.core_type = #tpu.core_type<tc>, window_params = [{transform_indices = @transform_0, window_bounds = array<i64: 8, 2, 32>}, {pipeline_mode = #tpu.pipeline_mode<synchronous>, transform_indices = @transform_1, window_bounds = array<i64: 32, 192>}, {pipeline_mode = #tpu.pipeline_mode<synchronous>, transform_indices = @transform_2, window_bounds = array<i64: 1, 192>}, {pipeline_mode = #tpu.pipeline_mode<synchronous>, transform_indices = @transform_3, window_bounds = array<i64: 32, 96>}, {pipeline_mode = #tpu.pipeline_mode<synchronous>, transform_indices = @transform_4, window_bounds = array<i64: 1, 96>}, {pipeline_mode = #tpu.pipeline_mode<synchronous>, transform_indices = @transform_5, window_bounds = array<i64: 32, 96>}, {pipeline_mode = #tpu.pipeline_mode<synchronous>, transform_indices = @transform_6, window_bounds = array<i64: 1, 96>}, {pipeline_mode = #tpu.pipeline_mode<synchronous>, transform_indices = @transform_7, window_bounds = array<i64: 64, 64>}, {pipeline_mode = #tpu.pipeline_mode<synchronous>, transform_indices = @transform_8, window_bounds = array<i64: 1, 64>}, {pipeline_mode = #tpu.pipeline_mode<synchronous>, transform_indices = @transform_9, window_bounds = array<i64: 64, 128>}, {transform_indices = @transform_10, window_bounds = array<i64: 1, 2, 64>}]} {
    %c0 = arith.constant 0 : index
    %c0_0 = arith.constant 0 : index
    %c0_1 = arith.constant 0 : index
    %0 = vector.load %arg1[%c0, %c0_0, %c0_1] : memref<8x2x32xf32, #tpu.memory_space<vmem>>, vector<8x2x32xf32>
    %1 = vector.shape_cast %0 : vector<8x2x32xf32> to vector<16x32xf32>
    %2 = arith.truncf %1 : vector<16x32xf32> to vector<16x32xbf16>
    %c0_2 = arith.constant 0 : index
    %c0_3 = arith.constant 0 : index
    %3 = vector.load %arg2[%c0_2, %c0_3] : memref<32x192xbf16, #tpu.memory_space<vmem>>, vector<32x192xbf16>
    %cst = arith.constant dense<0.000000e+00> : vector<16x192xf32>
    %4 = tpu.matmul %2, %3, %cst {dimension_numbers = #tpu.dot_dimension_numbers<[1], [0], [0], [1], [0, 0, 1, 1], [], []>} : vector<16x32xbf16>, vector<32x192xbf16>, vector<16x192xf32> -> vector<16x192xf32>
    %c0_4 = arith.constant 0 : index
    %c0_5 = arith.constant 0 : index
    %5 = vector.load %arg3[%c0_4, %c0_5] : memref<1x192xf32, #tpu.memory_space<vmem>>, vector<1x192xf32>
    %6 = vector.broadcast %5 : vector<1x192xf32> to vector<16x192xf32>
    %7 = arith.addf %4, %6 : vector<16x192xf32>
    %8 = vector.shape_cast %7 : vector<16x192xf32> to vector<8x2x192xf32>
    %cst_6 = arith.constant 0.000000e+00 : f32
    %9 = vector.broadcast %cst_6 : f32 to vector<2x32xf32>
    %cst_7 = arith.constant 0.000000e+00 : f32
    %10 = vector.broadcast %cst_7 : f32 to vector<2x32xf32>
    %11 = arith.truncf %9 : vector<2x32xf32> to vector<2x32xbf16>
    %c0_8 = arith.constant 0 : index
    %c0_9 = arith.constant 0 : index
    %12 = vector.load %arg4[%c0_8, %c0_9] : memref<32x96xbf16, #tpu.memory_space<vmem>>, vector<32x96xbf16>
    %cst_10 = arith.constant dense<0.000000e+00> : vector<2x96xf32>
    %13 = tpu.matmul %11, %12, %cst_10 {dimension_numbers = #tpu.dot_dimension_numbers<[1], [0], [0], [1], [0, 0, 1, 1], [], []>} : vector<2x32xbf16>, vector<32x96xbf16>, vector<2x96xf32> -> vector<2x96xf32>
    %c0_11 = arith.constant 0 : index
    %c0_12 = arith.constant 0 : index
    %14 = vector.load %arg5[%c0_11, %c0_12] : memref<1x96xf32, #tpu.memory_space<vmem>>, vector<1x96xf32>
    %15 = vector.broadcast %14 : vector<1x96xf32> to vector<2x96xf32>
    %16 = arith.addf %13, %15 : vector<2x96xf32>
    %17 = arith.truncf %10 : vector<2x32xf32> to vector<2x32xbf16>
    %c0_13 = arith.constant 0 : index
    %c0_14 = arith.constant 0 : index
    %18 = vector.load %arg6[%c0_13, %c0_14] : memref<32x96xbf16, #tpu.memory_space<vmem>>, vector<32x96xbf16>
    %cst_15 = arith.constant dense<0.000000e+00> : vector<2x96xf32>
    %19 = tpu.matmul %17, %18, %cst_15 {dimension_numbers = #tpu.dot_dimension_numbers<[1], [0], [0], [1], [0, 0, 1, 1], [], []>} : vector<2x32xbf16>, vector<32x96xbf16>, vector<2x96xf32> -> vector<2x96xf32>
    %c0_16 = arith.constant 0 : index
    %c0_17 = arith.constant 0 : index
    %20 = vector.load %arg7[%c0_16, %c0_17] : memref<1x96xf32, #tpu.memory_space<vmem>>, vector<1x96xf32>
    %21 = vector.broadcast %20 : vector<1x96xf32> to vector<2x96xf32>
    %22 = arith.addf %19, %21 : vector<2x96xf32>
    %23 = vector.extract_strided_slice %8 {offsets = [0, 0, 0], sizes = [1, 2, 96], strides = [1, 1, 1]} : vector<8x2x192xf32> to vector<1x2x96xf32>
    %24 = vector.shape_cast %23 : vector<1x2x96xf32> to vector<2x96xf32>
    %25 = vector.extract_strided_slice %24 {offsets = [0, 0], sizes = [2, 32], strides = [1, 1]} : vector<2x96xf32> to vector<2x32xf32>
    %26 = vector.extract_strided_slice %16 {offsets = [0, 0], sizes = [2, 32], strides = [1, 1]} : vector<2x96xf32> to vector<2x32xf32>
    %27 = arith.addf %25, %26 : vector<2x32xf32>
    %28 = arith.negf %27 : vector<2x32xf32>
    %29 = math.exp %28 : vector<2x32xf32>
    %cst_18 = arith.constant 1.000000e+00 : f32
    %30 = vector.broadcast %cst_18 : f32 to vector<2x32xf32>
    %31 = arith.addf %30, %29 : vector<2x32xf32>
    %32 = arith.divf %30, %31 : vector<2x32xf32>
    %33 = vector.extract_strided_slice %24 {offsets = [0, 32], sizes = [2, 32], strides = [1, 1]} : vector<2x96xf32> to vector<2x32xf32>
    %34 = vector.extract_strided_slice %16 {offsets = [0, 32], sizes = [2, 32], strides = [1, 1]} : vector<2x96xf32> to vector<2x32xf32>
    %35 = arith.addf %33, %34 : vector<2x32xf32>
    %36 = arith.negf %35 : vector<2x32xf32>
    %37 = math.exp %36 : vector<2x32xf32>
    %cst_19 = arith.constant 1.000000e+00 : f32
    %38 = vector.broadcast %cst_19 : f32 to vector<2x32xf32>
    %39 = arith.addf %38, %37 : vector<2x32xf32>
    %40 = arith.divf %38, %39 : vector<2x32xf32>
    %41 = vector.extract_strided_slice %24 {offsets = [0, 64], sizes = [2, 32], strides = [1, 1]} : vector<2x96xf32> to vector<2x32xf32>
    %42 = vector.extract_strided_slice %16 {offsets = [0, 64], sizes = [2, 32], strides = [1, 1]} : vector<2x96xf32> to vector<2x32xf32>
    %43 = arith.mulf %32, %42 : vector<2x32xf32>
    %44 = arith.addf %41, %43 : vector<2x32xf32>
    %45 = math.tanh %44 : vector<2x32xf32>
    %cst_20 = arith.constant 1.000000e+00 : f32
    %46 = vector.broadcast %cst_20 : f32 to vector<2x32xf32>
    %47 = arith.subf %46, %40 : vector<2x32xf32>
    %48 = arith.mulf %47, %45 : vector<2x32xf32>
    %49 = arith.mulf %40, %9 : vector<2x32xf32>
    %50 = arith.addf %48, %49 : vector<2x32xf32>
    %51 = vector.extract_strided_slice %8 {offsets = [7, 0, 96], sizes = [1, 2, 96], strides = [1, 1, 1]} : vector<8x2x192xf32> to vector<1x2x96xf32>
    %52 = vector.shape_cast %51 : vector<1x2x96xf32> to vector<2x96xf32>
    %53 = vector.extract_strided_slice %52 {offsets = [0, 0], sizes = [2, 32], strides = [1, 1]} : vector<2x96xf32> to vector<2x32xf32>
    %54 = vector.extract_strided_slice %22 {offsets = [0, 0], sizes = [2, 32], strides = [1, 1]} : vector<2x96xf32> to vector<2x32xf32>
    %55 = arith.addf %53, %54 : vector<2x32xf32>
    %56 = arith.negf %55 : vector<2x32xf32>
    %57 = math.exp %56 : vector<2x32xf32>
    %cst_21 = arith.constant 1.000000e+00 : f32
    %58 = vector.broadcast %cst_21 : f32 to vector<2x32xf32>
    %59 = arith.addf %58, %57 : vector<2x32xf32>
    %60 = arith.divf %58, %59 : vector<2x32xf32>
    %61 = vector.extract_strided_slice %52 {offsets = [0, 32], sizes = [2, 32], strides = [1, 1]} : vector<2x96xf32> to vector<2x32xf32>
    %62 = vector.extract_strided_slice %22 {offsets = [0, 32], sizes = [2, 32], strides = [1, 1]} : vector<2x96xf32> to vector<2x32xf32>
    %63 = arith.addf %61, %62 : vector<2x32xf32>
    %64 = arith.negf %63 : vector<2x32xf32>
    %65 = math.exp %64 : vector<2x32xf32>
    %cst_22 = arith.constant 1.000000e+00 : f32
    %66 = vector.broadcast %cst_22 : f32 to vector<2x32xf32>
    %67 = arith.addf %66, %65 : vector<2x32xf32>
    %68 = arith.divf %66, %67 : vector<2x32xf32>
    %69 = vector.extract_strided_slice %52 {offsets = [0, 64], sizes = [2, 32], strides = [1, 1]} : vector<2x96xf32> to vector<2x32xf32>
    %70 = vector.extract_strided_slice %22 {offsets = [0, 64], sizes = [2, 32], strides = [1, 1]} : vector<2x96xf32> to vector<2x32xf32>
    %71 = arith.mulf %60, %70 : vector<2x32xf32>
    %72 = arith.addf %69, %71 : vector<2x32xf32>
    %73 = math.tanh %72 : vector<2x32xf32>
    %cst_23 = arith.constant 1.000000e+00 : f32
    %74 = vector.broadcast %cst_23 : f32 to vector<2x32xf32>
    %75 = arith.subf %74, %68 : vector<2x32xf32>
    %76 = arith.mulf %75, %73 : vector<2x32xf32>
    %77 = arith.mulf %68, %10 : vector<2x32xf32>
    %78 = arith.addf %76, %77 : vector<2x32xf32>
    %c0_24 = arith.constant 0 : index
    %c0_25 = arith.constant 0 : index
    %c0_26 = arith.constant 0 : index
    %79 = vector.load %arg12[%c0_24, %c0_25, %c0_26] : memref<8x2x64xf32, #tpu.memory_space<vmem>>, vector<1x2x32xf32>
    %80 = vector.shape_cast %79 : vector<1x2x32xf32> to vector<2x32xf32>
    %81 = vector.shape_cast %50 : vector<2x32xf32> to vector<1x2x32xf32>
    tpu.vector_store %arg12[%c0_24, %c0_25, %c0_26], %81 {strides = array<i32>} : memref<8x2x64xf32, #tpu.memory_space<vmem>>, vector<1x2x32xf32>,
    %c7 = arith.constant 7 : index
    %c0_27 = arith.constant 0 : index
    %c32 = arith.constant 32 : index
    %82 = vector.load %arg12[%c7, %c0_27, %c32] : memref<8x2x64xf32, #tpu.memory_space<vmem>>, vector<1x2x32xf32>
    %83 = vector.shape_cast %82 : vector<1x2x32xf32> to vector<2x32xf32>
    %84 = vector.shape_cast %78 : vector<2x32xf32> to vector<1x2x32xf32>
    tpu.vector_store %arg12[%c7, %c0_27, %c32], %84 {strides = array<i32>} : memref<8x2x64xf32, #tpu.memory_space<vmem>>, vector<1x2x32xf32>,
    %85 = arith.truncf %50 : vector<2x32xf32> to vector<2x32xbf16>
    %c0_28 = arith.constant 0 : index
    %c0_29 = arith.constant 0 : index
    %86 = vector.load %arg4[%c0_28, %c0_29] : memref<32x96xbf16, #tpu.memory_space<vmem>>, vector<32x96xbf16>
    %cst_30 = arith.constant dense<0.000000e+00> : vector<2x96xf32>
    %87 = tpu.matmul %85, %86, %cst_30 {dimension_numbers = #tpu.dot_dimension_numbers<[1], [0], [0], [1], [0, 0, 1, 1], [], []>} : vector<2x32xbf16>, vector<32x96xbf16>, vector<2x96xf32> -> vector<2x96xf32>
    %c0_31 = arith.constant 0 : index
    %c0_32 = arith.constant 0 : index
    %88 = vector.load %arg5[%c0_31, %c0_32] : memref<1x96xf32, #tpu.memory_space<vmem>>, vector<1x96xf32>
    %89 = vector.broadcast %88 : vector<1x96xf32> to vector<2x96xf32>
    %90 = arith.addf %87, %89 : vector<2x96xf32>
    %91 = arith.truncf %78 : vector<2x32xf32> to vector<2x32xbf16>
    %c0_33 = arith.constant 0 : index
    %c0_34 = arith.constant 0 : index
    %92 = vector.load %arg6[%c0_33, %c0_34] : memref<32x96xbf16, #tpu.memory_space<vmem>>, vector<32x96xbf16>
    %cst_35 = arith.constant dense<0.000000e+00> : vector<2x96xf32>
    %93 = tpu.matmul %91, %92, %cst_35 {dimension_numbers = #tpu.dot_dimension_numbers<[1], [0], [0], [1], [0, 0, 1, 1], [], []>} : vector<2x32xbf16>, vector<32x96xbf16>, vector<2x96xf32> -> vector<2x96xf32>
    %c0_36 = arith.constant 0 : index
    %c0_37 = arith.constant 0 : index
    %94 = vector.load %arg7[%c0_36, %c0_37] : memref<1x96xf32, #tpu.memory_space<vmem>>, vector<1x96xf32>
    %95 = vector.broadcast %94 : vector<1x96xf32> to vector<2x96xf32>
    %96 = arith.addf %93, %95 : vector<2x96xf32>
    %97 = vector.extract_strided_slice %8 {offsets = [1, 0, 0], sizes = [1, 2, 96], strides = [1, 1, 1]} : vector<8x2x192xf32> to vector<1x2x96xf32>
    %98 = vector.shape_cast %97 : vector<1x2x96xf32> to vector<2x96xf32>
    %99 = vector.extract_strided_slice %98 {offsets = [0, 0], sizes = [2, 32], strides = [1, 1]} : vector<2x96xf32> to vector<2x32xf32>
    %100 = vector.extract_strided_slice %90 {offsets = [0, 0], sizes = [2, 32], strides = [1, 1]} : vector<2x96xf32> to vector<2x32xf32>
    %101 = arith.addf %99, %100 : vector<2x32xf32>
    %102 = arith.negf %101 : vector<2x32xf32>
    %103 = math.exp %102 : vector<2x32xf32>
    %cst_38 = arith.constant 1.000000e+00 : f32
    %104 = vector.broadcast %cst_38 : f32 to vector<2x32xf32>
    %105 = arith.addf %104, %103 : vector<2x32xf32>
    %106 = arith.divf %104, %105 : vector<2x32xf32>
    %107 = vector.extract_strided_slice %98 {offsets = [0, 32], sizes = [2, 32], strides = [1, 1]} : vector<2x96xf32> to vector<2x32xf32>
    %108 = vector.extract_strided_slice %90 {offsets = [0, 32], sizes = [2, 32], strides = [1, 1]} : vector<2x96xf32> to vector<2x32xf32>
    %109 = arith.addf %107, %108 : vector<2x32xf32>
    %110 = arith.negf %109 : vector<2x32xf32>
    %111 = math.exp %110 : vector<2x32xf32>
    %cst_39 = arith.constant 1.000000e+00 : f32
    %112 = vector.broadcast %cst_39 : f32 to vector<2x32xf32>
    %113 = arith.addf %112, %111 : vector<2x32xf32>
    %114 = arith.divf %112, %113 : vector<2x32xf32>
    %115 = vector.extract_strided_slice %98 {offsets = [0, 64], sizes = [2, 32], strides = [1, 1]} : vector<2x96xf32> to vector<2x32xf32>
    %116 = vector.extract_strided_slice %90 {offsets = [0, 64], sizes = [2, 32], strides = [1, 1]} : vector<2x96xf32> to vector<2x32xf32>
    %117 = arith.mulf %106, %116 : vector<2x32xf32>
    %118 = arith.addf %115, %117 : vector<2x32xf32>
    %119 = math.tanh %118 : vector<2x32xf32>
    %cst_40 = arith.constant 1.000000e+00 : f32
    %120 = vector.broadcast %cst_40 : f32 to vector<2x32xf32>
    %121 = arith.subf %120, %114 : vector<2x32xf32>
    %122 = arith.mulf %121, %119 : vector<2x32xf32>
    %123 = arith.mulf %114, %50 : vector<2x32xf32>
    %124 = arith.addf %122, %123 : vector<2x32xf32>
    %125 = vector.extract_strided_slice %8 {offsets = [6, 0, 96], sizes = [1, 2, 96], strides = [1, 1, 1]} : vector<8x2x192xf32> to vector<1x2x96xf32>
    %126 = vector.shape_cast %125 : vector<1x2x96xf32> to vector<2x96xf32>
    %127 = vector.extract_strided_slice %126 {offsets = [0, 0], sizes = [2, 32], strides = [1, 1]} : vector<2x96xf32> to vector<2x32xf32>
    %128 = vector.extract_strided_slice %96 {offsets = [0, 0], sizes = [2, 32], strides = [1, 1]} : vector<2x96xf32> to vector<2x32xf32>
    %129 = arith.addf %127, %128 : vector<2x32xf32>
    %130 = arith.negf %129 : vector<2x32xf32>
    %131 = math.exp %130 : vector<2x32xf32>
    %cst_41 = arith.constant 1.000000e+00 : f32
    %132 = vector.broadcast %cst_41 : f32 to vector<2x32xf32>
    %133 = arith.addf %132, %131 : vector<2x32xf32>
    %134 = arith.divf %132, %133 : vector<2x32xf32>
    %135 = vector.extract_strided_slice %126 {offsets = [0, 32], sizes = [2, 32], strides = [1, 1]} : vector<2x96xf32> to vector<2x32xf32>
    %136 = vector.extract_strided_slice %96 {offsets = [0, 32], sizes = [2, 32], strides = [1, 1]} : vector<2x96xf32> to vector<2x32xf32>
    %137 = arith.addf %135, %136 : vector<2x32xf32>
    %138 = arith.negf %137 : vector<2x32xf32>
    %139 = math.exp %138 : vector<2x32xf32>
    %cst_42 = arith.constant 1.000000e+00 : f32
    %140 = vector.broadcast %cst_42 : f32 to vector<2x32xf32>
    %141 = arith.addf %140, %139 : vector<2x32xf32>
    %142 = arith.divf %140, %141 : vector<2x32xf32>
    %143 = vector.extract_strided_slice %126 {offsets = [0, 64], sizes = [2, 32], strides = [1, 1]} : vector<2x96xf32> to vector<2x32xf32>
    %144 = vector.extract_strided_slice %96 {offsets = [0, 64], sizes = [2, 32], strides = [1, 1]} : vector<2x96xf32> to vector<2x32xf32>
    %145 = arith.mulf %134, %144 : vector<2x32xf32>
    %146 = arith.addf %143, %145 : vector<2x32xf32>
    %147 = math.tanh %146 : vector<2x32xf32>
    %cst_43 = arith.constant 1.000000e+00 : f32
    %148 = vector.broadcast %cst_43 : f32 to vector<2x32xf32>
    %149 = arith.subf %148, %142 : vector<2x32xf32>
    %150 = arith.mulf %149, %147 : vector<2x32xf32>
    %151 = arith.mulf %142, %78 : vector<2x32xf32>
    %152 = arith.addf %150, %151 : vector<2x32xf32>
    %c1 = arith.constant 1 : index
    %c0_44 = arith.constant 0 : index
    %c0_45 = arith.constant 0 : index
    %153 = vector.load %arg12[%c1, %c0_44, %c0_45] : memref<8x2x64xf32, #tpu.memory_space<vmem>>, vector<1x2x32xf32>
    %154 = vector.shape_cast %153 : vector<1x2x32xf32> to vector<2x32xf32>
    %155 = vector.shape_cast %124 : vector<2x32xf32> to vector<1x2x32xf32>
    tpu.vector_store %arg12[%c1, %c0_44, %c0_45], %155 {strides = array<i32>} : memref<8x2x64xf32, #tpu.memory_space<vmem>>, vector<1x2x32xf32>,
    %c6 = arith.constant 6 : index
    %c0_46 = arith.constant 0 : index
    %c32_47 = arith.constant 32 : index
    %156 = vector.load %arg12[%c6, %c0_46, %c32_47] : memref<8x2x64xf32, #tpu.memory_space<vmem>>, vector<1x2x32xf32>
    %157 = vector.shape_cast %156 : vector<1x2x32xf32> to vector<2x32xf32>
    %158 = vector.shape_cast %152 : vector<2x32xf32> to vector<1x2x32xf32>
    tpu.vector_store %arg12[%c6, %c0_46, %c32_47], %158 {strides = array<i32>} : memref<8x2x64xf32, #tpu.memory_space<vmem>>, vector<1x2x32xf32>,
    %159 = arith.truncf %124 : vector<2x32xf32> to vector<2x32xbf16>
    %c0_48 = arith.constant 0 : index
    %c0_49 = arith.constant 0 : index
    %160 = vector.load %arg4[%c0_48, %c0_49] : memref<32x96xbf16, #tpu.memory_space<vmem>>, vector<32x96xbf16>
    %cst_50 = arith.constant dense<0.000000e+00> : vector<2x96xf32>
    %161 = tpu.matmul %159, %160, %cst_50 {dimension_numbers = #tpu.dot_dimension_numbers<[1], [0], [0], [1], [0, 0, 1, 1], [], []>} : vector<2x32xbf16>, vector<32x96xbf16>, vector<2x96xf32> -> vector<2x96xf32>
    %c0_51 = arith.constant 0 : index
    %c0_52 = arith.constant 0 : index
    %162 = vector.load %arg5[%c0_51, %c0_52] : memref<1x96xf32, #tpu.memory_space<vmem>>, vector<1x96xf32>
    %163 = vector.broadcast %162 : vector<1x96xf32> to vector<2x96xf32>
    %164 = arith.addf %161, %163 : vector<2x96xf32>
    %165 = arith.truncf %152 : vector<2x32xf32> to vector<2x32xbf16>
    %c0_53 = arith.constant 0 : index
    %c0_54 = arith.constant 0 : index
    %166 = vector.load %arg6[%c0_53, %c0_54] : memref<32x96xbf16, #tpu.memory_space<vmem>>, vector<32x96xbf16>
    %cst_55 = arith.constant dense<0.000000e+00> : vector<2x96xf32>
    %167 = tpu.matmul %165, %166, %cst_55 {dimension_numbers = #tpu.dot_dimension_numbers<[1], [0], [0], [1], [0, 0, 1, 1], [], []>} : vector<2x32xbf16>, vector<32x96xbf16>, vector<2x96xf32> -> vector<2x96xf32>
    %c0_56 = arith.constant 0 : index
    %c0_57 = arith.constant 0 : index
    %168 = vector.load %arg7[%c0_56, %c0_57] : memref<1x96xf32, #tpu.memory_space<vmem>>, vector<1x96xf32>
    %169 = vector.broadcast %168 : vector<1x96xf32> to vector<2x96xf32>
    %170 = arith.addf %167, %169 : vector<2x96xf32>
    %171 = vector.extract_strided_slice %8 {offsets = [2, 0, 0], sizes = [1, 2, 96], strides = [1, 1, 1]} : vector<8x2x192xf32> to vector<1x2x96xf32>
    %172 = vector.shape_cast %171 : vector<1x2x96xf32> to vector<2x96xf32>
    %173 = vector.extract_strided_slice %172 {offsets = [0, 0], sizes = [2, 32], strides = [1, 1]} : vector<2x96xf32> to vector<2x32xf32>
    %174 = vector.extract_strided_slice %164 {offsets = [0, 0], sizes = [2, 32], strides = [1, 1]} : vector<2x96xf32> to vector<2x32xf32>
    %175 = arith.addf %173, %174 : vector<2x32xf32>
    %176 = arith.negf %175 : vector<2x32xf32>
    %177 = math.exp %176 : vector<2x32xf32>
    %cst_58 = arith.constant 1.000000e+00 : f32
    %178 = vector.broadcast %cst_58 : f32 to vector<2x32xf32>
    %179 = arith.addf %178, %177 : vector<2x32xf32>
    %180 = arith.divf %178, %179 : vector<2x32xf32>
    %181 = vector.extract_strided_slice %172 {offsets = [0, 32], sizes = [2, 32], strides = [1, 1]} : vector<2x96xf32> to vector<2x32xf32>
    %182 = vector.extract_strided_slice %164 {offsets = [0, 32], sizes = [2, 32], strides = [1, 1]} : vector<2x96xf32> to vector<2x32xf32>
    %183 = arith.addf %181, %182 : vector<2x32xf32>
    %184 = arith.negf %183 : vector<2x32xf32>
    %185 = math.exp %184 : vector<2x32xf32>
    %cst_59 = arith.constant 1.000000e+00 : f32
    %186 = vector.broadcast %cst_59 : f32 to vector<2x32xf32>
    %187 = arith.addf %186, %185 : vector<2x32xf32>
    %188 = arith.divf %186, %187 : vector<2x32xf32>
    %189 = vector.extract_strided_slice %172 {offsets = [0, 64], sizes = [2, 32], strides = [1, 1]} : vector<2x96xf32> to vector<2x32xf32>
    %190 = vector.extract_strided_slice %164 {offsets = [0, 64], sizes = [2, 32], strides = [1, 1]} : vector<2x96xf32> to vector<2x32xf32>
    %191 = arith.mulf %180, %190 : vector<2x32xf32>
    %192 = arith.addf %189, %191 : vector<2x32xf32>
    %193 = math.tanh %192 : vector<2x32xf32>
    %cst_60 = arith.constant 1.000000e+00 : f32
    %194 = vector.broadcast %cst_60 : f32 to vector<2x32xf32>
    %195 = arith.subf %194, %188 : vector<2x32xf32>
    %196 = arith.mulf %195, %193 : vector<2x32xf32>
    %197 = arith.mulf %188, %124 : vector<2x32xf32>
    %198 = arith.addf %196, %197 : vector<2x32xf32>
    %199 = vector.extract_strided_slice %8 {offsets = [5, 0, 96], sizes = [1, 2, 96], strides = [1, 1, 1]} : vector<8x2x192xf32> to vector<1x2x96xf32>
    %200 = vector.shape_cast %199 : vector<1x2x96xf32> to vector<2x96xf32>
    %201 = vector.extract_strided_slice %200 {offsets = [0, 0], sizes = [2, 32], strides = [1, 1]} : vector<2x96xf32> to vector<2x32xf32>
    %202 = vector.extract_strided_slice %170 {offsets = [0, 0], sizes = [2, 32], strides = [1, 1]} : vector<2x96xf32> to vector<2x32xf32>
    %203 = arith.addf %201, %202 : vector<2x32xf32>
    %204 = arith.negf %203 : vector<2x32xf32>
    %205 = math.exp %204 : vector<2x32xf32>
    %cst_61 = arith.constant 1.000000e+00 : f32
    %206 = vector.broadcast %cst_61 : f32 to vector<2x32xf32>
    %207 = arith.addf %206, %205 : vector<2x32xf32>
    %208 = arith.divf %206, %207 : vector<2x32xf32>
    %209 = vector.extract_strided_slice %200 {offsets = [0, 32], sizes = [2, 32], strides = [1, 1]} : vector<2x96xf32> to vector<2x32xf32>
    %210 = vector.extract_strided_slice %170 {offsets = [0, 32], sizes = [2, 32], strides = [1, 1]} : vector<2x96xf32> to vector<2x32xf32>
    %211 = arith.addf %209, %210 : vector<2x32xf32>
    %212 = arith.negf %211 : vector<2x32xf32>
    %213 = math.exp %212 : vector<2x32xf32>
    %cst_62 = arith.constant 1.000000e+00 : f32
    %214 = vector.broadcast %cst_62 : f32 to vector<2x32xf32>
    %215 = arith.addf %214, %213 : vector<2x32xf32>
    %216 = arith.divf %214, %215 : vector<2x32xf32>
    %217 = vector.extract_strided_slice %200 {offsets = [0, 64], sizes = [2, 32], strides = [1, 1]} : vector<2x96xf32> to vector<2x32xf32>
    %218 = vector.extract_strided_slice %170 {offsets = [0, 64], sizes = [2, 32], strides = [1, 1]} : vector<2x96xf32> to vector<2x32xf32>
    %219 = arith.mulf %208, %218 : vector<2x32xf32>
    %220 = arith.addf %217, %219 : vector<2x32xf32>
    %221 = math.tanh %220 : vector<2x32xf32>
    %cst_63 = arith.constant 1.000000e+00 : f32
    %222 = vector.broadcast %cst_63 : f32 to vector<2x32xf32>
    %223 = arith.subf %222, %216 : vector<2x32xf32>
    %224 = arith.mulf %223, %221 : vector<2x32xf32>
    %225 = arith.mulf %216, %152 : vector<2x32xf32>
    %226 = arith.addf %224, %225 : vector<2x32xf32>
    %c2 = arith.constant 2 : index
    %c0_64 = arith.constant 0 : index
    %c0_65 = arith.constant 0 : index
    %227 = vector.load %arg12[%c2, %c0_64, %c0_65] : memref<8x2x64xf32, #tpu.memory_space<vmem>>, vector<1x2x32xf32>
    %228 = vector.shape_cast %227 : vector<1x2x32xf32> to vector<2x32xf32>
    %229 = vector.shape_cast %198 : vector<2x32xf32> to vector<1x2x32xf32>
    tpu.vector_store %arg12[%c2, %c0_64, %c0_65], %229 {strides = array<i32>} : memref<8x2x64xf32, #tpu.memory_space<vmem>>, vector<1x2x32xf32>,
    %c5 = arith.constant 5 : index
    %c0_66 = arith.constant 0 : index
    %c32_67 = arith.constant 32 : index
    %230 = vector.load %arg12[%c5, %c0_66, %c32_67] : memref<8x2x64xf32, #tpu.memory_space<vmem>>, vector<1x2x32xf32>
    %231 = vector.shape_cast %230 : vector<1x2x32xf32> to vector<2x32xf32>
    %232 = vector.shape_cast %226 : vector<2x32xf32> to vector<1x2x32xf32>
    tpu.vector_store %arg12[%c5, %c0_66, %c32_67], %232 {strides = array<i32>} : memref<8x2x64xf32, #tpu.memory_space<vmem>>, vector<1x2x32xf32>,
    %233 = arith.truncf %198 : vector<2x32xf32> to vector<2x32xbf16>
    %c0_68 = arith.constant 0 : index
    %c0_69 = arith.constant 0 : index
    %234 = vector.load %arg4[%c0_68, %c0_69] : memref<32x96xbf16, #tpu.memory_space<vmem>>, vector<32x96xbf16>
    %cst_70 = arith.constant dense<0.000000e+00> : vector<2x96xf32>
    %235 = tpu.matmul %233, %234, %cst_70 {dimension_numbers = #tpu.dot_dimension_numbers<[1], [0], [0], [1], [0, 0, 1, 1], [], []>} : vector<2x32xbf16>, vector<32x96xbf16>, vector<2x96xf32> -> vector<2x96xf32>
    %c0_71 = arith.constant 0 : index
    %c0_72 = arith.constant 0 : index
    %236 = vector.load %arg5[%c0_71, %c0_72] : memref<1x96xf32, #tpu.memory_space<vmem>>, vector<1x96xf32>
    %237 = vector.broadcast %236 : vector<1x96xf32> to vector<2x96xf32>
    %238 = arith.addf %235, %237 : vector<2x96xf32>
    %239 = arith.truncf %226 : vector<2x32xf32> to vector<2x32xbf16>
    %c0_73 = arith.constant 0 : index
    %c0_74 = arith.constant 0 : index
    %240 = vector.load %arg6[%c0_73, %c0_74] : memref<32x96xbf16, #tpu.memory_space<vmem>>, vector<32x96xbf16>
    %cst_75 = arith.constant dense<0.000000e+00> : vector<2x96xf32>
    %241 = tpu.matmul %239, %240, %cst_75 {dimension_numbers = #tpu.dot_dimension_numbers<[1], [0], [0], [1], [0, 0, 1, 1], [], []>} : vector<2x32xbf16>, vector<32x96xbf16>, vector<2x96xf32> -> vector<2x96xf32>
    %c0_76 = arith.constant 0 : index
    %c0_77 = arith.constant 0 : index
    %242 = vector.load %arg7[%c0_76, %c0_77] : memref<1x96xf32, #tpu.memory_space<vmem>>, vector<1x96xf32>
    %243 = vector.broadcast %242 : vector<1x96xf32> to vector<2x96xf32>
    %244 = arith.addf %241, %243 : vector<2x96xf32>
    %245 = vector.extract_strided_slice %8 {offsets = [3, 0, 0], sizes = [1, 2, 96], strides = [1, 1, 1]} : vector<8x2x192xf32> to vector<1x2x96xf32>
    %246 = vector.shape_cast %245 : vector<1x2x96xf32> to vector<2x96xf32>
    %247 = vector.extract_strided_slice %246 {offsets = [0, 0], sizes = [2, 32], strides = [1, 1]} : vector<2x96xf32> to vector<2x32xf32>
    %248 = vector.extract_strided_slice %238 {offsets = [0, 0], sizes = [2, 32], strides = [1, 1]} : vector<2x96xf32> to vector<2x32xf32>
    %249 = arith.addf %247, %248 : vector<2x32xf32>
    %250 = arith.negf %249 : vector<2x32xf32>
    %251 = math.exp %250 : vector<2x32xf32>
    %cst_78 = arith.constant 1.000000e+00 : f32
    %252 = vector.broadcast %cst_78 : f32 to vector<2x32xf32>
    %253 = arith.addf %252, %251 : vector<2x32xf32>
    %254 = arith.divf %252, %253 : vector<2x32xf32>
    %255 = vector.extract_strided_slice %246 {offsets = [0, 32], sizes = [2, 32], strides = [1, 1]} : vector<2x96xf32> to vector<2x32xf32>
    %256 = vector.extract_strided_slice %238 {offsets = [0, 32], sizes = [2, 32], strides = [1, 1]} : vector<2x96xf32> to vector<2x32xf32>
    %257 = arith.addf %255, %256 : vector<2x32xf32>
    %258 = arith.negf %257 : vector<2x32xf32>
    %259 = math.exp %258 : vector<2x32xf32>
    %cst_79 = arith.constant 1.000000e+00 : f32
    %260 = vector.broadcast %cst_79 : f32 to vector<2x32xf32>
    %261 = arith.addf %260, %259 : vector<2x32xf32>
    %262 = arith.divf %260, %261 : vector<2x32xf32>
    %263 = vector.extract_strided_slice %246 {offsets = [0, 64], sizes = [2, 32], strides = [1, 1]} : vector<2x96xf32> to vector<2x32xf32>
    %264 = vector.extract_strided_slice %238 {offsets = [0, 64], sizes = [2, 32], strides = [1, 1]} : vector<2x96xf32> to vector<2x32xf32>
    %265 = arith.mulf %254, %264 : vector<2x32xf32>
    %266 = arith.addf %263, %265 : vector<2x32xf32>
    %267 = math.tanh %266 : vector<2x32xf32>
    %cst_80 = arith.constant 1.000000e+00 : f32
    %268 = vector.broadcast %cst_80 : f32 to vector<2x32xf32>
    %269 = arith.subf %268, %262 : vector<2x32xf32>
    %270 = arith.mulf %269, %267 : vector<2x32xf32>
    %271 = arith.mulf %262, %198 : vector<2x32xf32>
    %272 = arith.addf %270, %271 : vector<2x32xf32>
    %273 = vector.extract_strided_slice %8 {offsets = [4, 0, 96], sizes = [1, 2, 96], strides = [1, 1, 1]} : vector<8x2x192xf32> to vector<1x2x96xf32>
    %274 = vector.shape_cast %273 : vector<1x2x96xf32> to vector<2x96xf32>
    %275 = vector.extract_strided_slice %274 {offsets = [0, 0], sizes = [2, 32], strides = [1, 1]} : vector<2x96xf32> to vector<2x32xf32>
    %276 = vector.extract_strided_slice %244 {offsets = [0, 0], sizes = [2, 32], strides = [1, 1]} : vector<2x96xf32> to vector<2x32xf32>
    %277 = arith.addf %275, %276 : vector<2x32xf32>
    %278 = arith.negf %277 : vector<2x32xf32>
    %279 = math.exp %278 : vector<2x32xf32>
    %cst_81 = arith.constant 1.000000e+00 : f32
    %280 = vector.broadcast %cst_81 : f32 to vector<2x32xf32>
    %281 = arith.addf %280, %279 : vector<2x32xf32>
    %282 = arith.divf %280, %281 : vector<2x32xf32>
    %283 = vector.extract_strided_slice %274 {offsets = [0, 32], sizes = [2, 32], strides = [1, 1]} : vector<2x96xf32> to vector<2x32xf32>
    %284 = vector.extract_strided_slice %244 {offsets = [0, 32], sizes = [2, 32], strides = [1, 1]} : vector<2x96xf32> to vector<2x32xf32>
    %285 = arith.addf %283, %284 : vector<2x32xf32>
    %286 = arith.negf %285 : vector<2x32xf32>
    %287 = math.exp %286 : vector<2x32xf32>
    %cst_82 = arith.constant 1.000000e+00 : f32
    %288 = vector.broadcast %cst_82 : f32 to vector<2x32xf32>
    %289 = arith.addf %288, %287 : vector<2x32xf32>
    %290 = arith.divf %288, %289 : vector<2x32xf32>
    %291 = vector.extract_strided_slice %274 {offsets = [0, 64], sizes = [2, 32], strides = [1, 1]} : vector<2x96xf32> to vector<2x32xf32>
    %292 = vector.extract_strided_slice %244 {offsets = [0, 64], sizes = [2, 32], strides = [1, 1]} : vector<2x96xf32> to vector<2x32xf32>
    %293 = arith.mulf %282, %292 : vector<2x32xf32>
    %294 = arith.addf %291, %293 : vector<2x32xf32>
    %295 = math.tanh %294 : vector<2x32xf32>
    %cst_83 = arith.constant 1.000000e+00 : f32
    %296 = vector.broadcast %cst_83 : f32 to vector<2x32xf32>
    %297 = arith.subf %296, %290 : vector<2x32xf32>
    %298 = arith.mulf %297, %295 : vector<2x32xf32>
    %299 = arith.mulf %290, %226 : vector<2x32xf32>
    %300 = arith.addf %298, %299 : vector<2x32xf32>
    %c3 = arith.constant 3 : index
    %c0_84 = arith.constant 0 : index
    %c0_85 = arith.constant 0 : index
    %301 = vector.load %arg12[%c3, %c0_84, %c0_85] : memref<8x2x64xf32, #tpu.memory_space<vmem>>, vector<1x2x32xf32>
    %302 = vector.shape_cast %301 : vector<1x2x32xf32> to vector<2x32xf32>
    %303 = vector.shape_cast %272 : vector<2x32xf32> to vector<1x2x32xf32>
    tpu.vector_store %arg12[%c3, %c0_84, %c0_85], %303 {strides = array<i32>} : memref<8x2x64xf32, #tpu.memory_space<vmem>>, vector<1x2x32xf32>,
    %c4 = arith.constant 4 : index
    %c0_86 = arith.constant 0 : index
    %c32_87 = arith.constant 32 : index
    %304 = vector.load %arg12[%c4, %c0_86, %c32_87] : memref<8x2x64xf32, #tpu.memory_space<vmem>>, vector<1x2x32xf32>
    %305 = vector.shape_cast %304 : vector<1x2x32xf32> to vector<2x32xf32>
    %306 = vector.shape_cast %300 : vector<2x32xf32> to vector<1x2x32xf32>
    tpu.vector_store %arg12[%c4, %c0_86, %c32_87], %306 {strides = array<i32>} : memref<8x2x64xf32, #tpu.memory_space<vmem>>, vector<1x2x32xf32>,
    %307 = arith.truncf %272 : vector<2x32xf32> to vector<2x32xbf16>
    %c0_88 = arith.constant 0 : index
    %c0_89 = arith.constant 0 : index
    %308 = vector.load %arg4[%c0_88, %c0_89] : memref<32x96xbf16, #tpu.memory_space<vmem>>, vector<32x96xbf16>
    %cst_90 = arith.constant dense<0.000000e+00> : vector<2x96xf32>
    %309 = tpu.matmul %307, %308, %cst_90 {dimension_numbers = #tpu.dot_dimension_numbers<[1], [0], [0], [1], [0, 0, 1, 1], [], []>} : vector<2x32xbf16>, vector<32x96xbf16>, vector<2x96xf32> -> vector<2x96xf32>
    %c0_91 = arith.constant 0 : index
    %c0_92 = arith.constant 0 : index
    %310 = vector.load %arg5[%c0_91, %c0_92] : memref<1x96xf32, #tpu.memory_space<vmem>>, vector<1x96xf32>
    %311 = vector.broadcast %310 : vector<1x96xf32> to vector<2x96xf32>
    %312 = arith.addf %309, %311 : vector<2x96xf32>
    %313 = arith.truncf %300 : vector<2x32xf32> to vector<2x32xbf16>
    %c0_93 = arith.constant 0 : index
    %c0_94 = arith.constant 0 : index
    %314 = vector.load %arg6[%c0_93, %c0_94] : memref<32x96xbf16, #tpu.memory_space<vmem>>, vector<32x96xbf16>
    %cst_95 = arith.constant dense<0.000000e+00> : vector<2x96xf32>
    %315 = tpu.matmul %313, %314, %cst_95 {dimension_numbers = #tpu.dot_dimension_numbers<[1], [0], [0], [1], [0, 0, 1, 1], [], []>} : vector<2x32xbf16>, vector<32x96xbf16>, vector<2x96xf32> -> vector<2x96xf32>
    %c0_96 = arith.constant 0 : index
    %c0_97 = arith.constant 0 : index
    %316 = vector.load %arg7[%c0_96, %c0_97] : memref<1x96xf32, #tpu.memory_space<vmem>>, vector<1x96xf32>
    %317 = vector.broadcast %316 : vector<1x96xf32> to vector<2x96xf32>
    %318 = arith.addf %315, %317 : vector<2x96xf32>
    %319 = vector.extract_strided_slice %8 {offsets = [4, 0, 0], sizes = [1, 2, 96], strides = [1, 1, 1]} : vector<8x2x192xf32> to vector<1x2x96xf32>
    %320 = vector.shape_cast %319 : vector<1x2x96xf32> to vector<2x96xf32>
    %321 = vector.extract_strided_slice %320 {offsets = [0, 0], sizes = [2, 32], strides = [1, 1]} : vector<2x96xf32> to vector<2x32xf32>
    %322 = vector.extract_strided_slice %312 {offsets = [0, 0], sizes = [2, 32], strides = [1, 1]} : vector<2x96xf32> to vector<2x32xf32>
    %323 = arith.addf %321, %322 : vector<2x32xf32>
    %324 = arith.negf %323 : vector<2x32xf32>
    %325 = math.exp %324 : vector<2x32xf32>
    %cst_98 = arith.constant 1.000000e+00 : f32
    %326 = vector.broadcast %cst_98 : f32 to vector<2x32xf32>
    %327 = arith.addf %326, %325 : vector<2x32xf32>
    %328 = arith.divf %326, %327 : vector<2x32xf32>
    %329 = vector.extract_strided_slice %320 {offsets = [0, 32], sizes = [2, 32], strides = [1, 1]} : vector<2x96xf32> to vector<2x32xf32>
    %330 = vector.extract_strided_slice %312 {offsets = [0, 32], sizes = [2, 32], strides = [1, 1]} : vector<2x96xf32> to vector<2x32xf32>
    %331 = arith.addf %329, %330 : vector<2x32xf32>
    %332 = arith.negf %331 : vector<2x32xf32>
    %333 = math.exp %332 : vector<2x32xf32>
    %cst_99 = arith.constant 1.000000e+00 : f32
    %334 = vector.broadcast %cst_99 : f32 to vector<2x32xf32>
    %335 = arith.addf %334, %333 : vector<2x32xf32>
    %336 = arith.divf %334, %335 : vector<2x32xf32>
    %337 = vector.extract_strided_slice %320 {offsets = [0, 64], sizes = [2, 32], strides = [1, 1]} : vector<2x96xf32> to vector<2x32xf32>
    %338 = vector.extract_strided_slice %312 {offsets = [0, 64], sizes = [2, 32], strides = [1, 1]} : vector<2x96xf32> to vector<2x32xf32>
    %339 = arith.mulf %328, %338 : vector<2x32xf32>
    %340 = arith.addf %337, %339 : vector<2x32xf32>
    %341 = math.tanh %340 : vector<2x32xf32>
    %cst_100 = arith.constant 1.000000e+00 : f32
    %342 = vector.broadcast %cst_100 : f32 to vector<2x32xf32>
    %343 = arith.subf %342, %336 : vector<2x32xf32>
    %344 = arith.mulf %343, %341 : vector<2x32xf32>
    %345 = arith.mulf %336, %272 : vector<2x32xf32>
    %346 = arith.addf %344, %345 : vector<2x32xf32>
    %347 = vector.extract_strided_slice %8 {offsets = [3, 0, 96], sizes = [1, 2, 96], strides = [1, 1, 1]} : vector<8x2x192xf32> to vector<1x2x96xf32>
    %348 = vector.shape_cast %347 : vector<1x2x96xf32> to vector<2x96xf32>
    %349 = vector.extract_strided_slice %348 {offsets = [0, 0], sizes = [2, 32], strides = [1, 1]} : vector<2x96xf32> to vector<2x32xf32>
    %350 = vector.extract_strided_slice %318 {offsets = [0, 0], sizes = [2, 32], strides = [1, 1]} : vector<2x96xf32> to vector<2x32xf32>
    %351 = arith.addf %349, %350 : vector<2x32xf32>
    %352 = arith.negf %351 : vector<2x32xf32>
    %353 = math.exp %352 : vector<2x32xf32>
    %cst_101 = arith.constant 1.000000e+00 : f32
    %354 = vector.broadcast %cst_101 : f32 to vector<2x32xf32>
    %355 = arith.addf %354, %353 : vector<2x32xf32>
    %356 = arith.divf %354, %355 : vector<2x32xf32>
    %357 = vector.extract_strided_slice %348 {offsets = [0, 32], sizes = [2, 32], strides = [1, 1]} : vector<2x96xf32> to vector<2x32xf32>
    %358 = vector.extract_strided_slice %318 {offsets = [0, 32], sizes = [2, 32], strides = [1, 1]} : vector<2x96xf32> to vector<2x32xf32>
    %359 = arith.addf %357, %358 : vector<2x32xf32>
    %360 = arith.negf %359 : vector<2x32xf32>
    %361 = math.exp %360 : vector<2x32xf32>
    %cst_102 = arith.constant 1.000000e+00 : f32
    %362 = vector.broadcast %cst_102 : f32 to vector<2x32xf32>
    %363 = arith.addf %362, %361 : vector<2x32xf32>
    %364 = arith.divf %362, %363 : vector<2x32xf32>
    %365 = vector.extract_strided_slice %348 {offsets = [0, 64], sizes = [2, 32], strides = [1, 1]} : vector<2x96xf32> to vector<2x32xf32>
    %366 = vector.extract_strided_slice %318 {offsets = [0, 64], sizes = [2, 32], strides = [1, 1]} : vector<2x96xf32> to vector<2x32xf32>
    %367 = arith.mulf %356, %366 : vector<2x32xf32>
    %368 = arith.addf %365, %367 : vector<2x32xf32>
    %369 = math.tanh %368 : vector<2x32xf32>
    %cst_103 = arith.constant 1.000000e+00 : f32
    %370 = vector.broadcast %cst_103 : f32 to vector<2x32xf32>
    %371 = arith.subf %370, %364 : vector<2x32xf32>
    %372 = arith.mulf %371, %369 : vector<2x32xf32>
    %373 = arith.mulf %364, %300 : vector<2x32xf32>
    %374 = arith.addf %372, %373 : vector<2x32xf32>
    %c4_104 = arith.constant 4 : index
    %c0_105 = arith.constant 0 : index
    %c0_106 = arith.constant 0 : index
    %375 = vector.load %arg12[%c4_104, %c0_105, %c0_106] : memref<8x2x64xf32, #tpu.memory_space<vmem>>, vector<1x2x32xf32>
    %376 = vector.shape_cast %375 : vector<1x2x32xf32> to vector<2x32xf32>
    %377 = vector.shape_cast %346 : vector<2x32xf32> to vector<1x2x32xf32>
    tpu.vector_store %arg12[%c4_104, %c0_105, %c0_106], %377 {strides = array<i32>} : memref<8x2x64xf32, #tpu.memory_space<vmem>>, vector<1x2x32xf32>,
    %c3_107 = arith.constant 3 : index
    %c0_108 = arith.constant 0 : index
    %c32_109 = arith.constant 32 : index
    %378 = vector.load %arg12[%c3_107, %c0_108, %c32_109] : memref<8x2x64xf32, #tpu.memory_space<vmem>>, vector<1x2x32xf32>
    %379 = vector.shape_cast %378 : vector<1x2x32xf32> to vector<2x32xf32>
    %380 = vector.shape_cast %374 : vector<2x32xf32> to vector<1x2x32xf32>
    tpu.vector_store %arg12[%c3_107, %c0_108, %c32_109], %380 {strides = array<i32>} : memref<8x2x64xf32, #tpu.memory_space<vmem>>, vector<1x2x32xf32>,
    %381 = arith.truncf %346 : vector<2x32xf32> to vector<2x32xbf16>
    %c0_110 = arith.constant 0 : index
    %c0_111 = arith.constant 0 : index
    %382 = vector.load %arg4[%c0_110, %c0_111] : memref<32x96xbf16, #tpu.memory_space<vmem>>, vector<32x96xbf16>
    %cst_112 = arith.constant dense<0.000000e+00> : vector<2x96xf32>
    %383 = tpu.matmul %381, %382, %cst_112 {dimension_numbers = #tpu.dot_dimension_numbers<[1], [0], [0], [1], [0, 0, 1, 1], [], []>} : vector<2x32xbf16>, vector<32x96xbf16>, vector<2x96xf32> -> vector<2x96xf32>
    %c0_113 = arith.constant 0 : index
    %c0_114 = arith.constant 0 : index
    %384 = vector.load %arg5[%c0_113, %c0_114] : memref<1x96xf32, #tpu.memory_space<vmem>>, vector<1x96xf32>
    %385 = vector.broadcast %384 : vector<1x96xf32> to vector<2x96xf32>
    %386 = arith.addf %383, %385 : vector<2x96xf32>
    %387 = arith.truncf %374 : vector<2x32xf32> to vector<2x32xbf16>
    %c0_115 = arith.constant 0 : index
    %c0_116 = arith.constant 0 : index
    %388 = vector.load %arg6[%c0_115, %c0_116] : memref<32x96xbf16, #tpu.memory_space<vmem>>, vector<32x96xbf16>
    %cst_117 = arith.constant dense<0.000000e+00> : vector<2x96xf32>
    %389 = tpu.matmul %387, %388, %cst_117 {dimension_numbers = #tpu.dot_dimension_numbers<[1], [0], [0], [1], [0, 0, 1, 1], [], []>} : vector<2x32xbf16>, vector<32x96xbf16>, vector<2x96xf32> -> vector<2x96xf32>
    %c0_118 = arith.constant 0 : index
    %c0_119 = arith.constant 0 : index
    %390 = vector.load %arg7[%c0_118, %c0_119] : memref<1x96xf32, #tpu.memory_space<vmem>>, vector<1x96xf32>
    %391 = vector.broadcast %390 : vector<1x96xf32> to vector<2x96xf32>
    %392 = arith.addf %389, %391 : vector<2x96xf32>
    %393 = vector.extract_strided_slice %8 {offsets = [5, 0, 0], sizes = [1, 2, 96], strides = [1, 1, 1]} : vector<8x2x192xf32> to vector<1x2x96xf32>
    %394 = vector.shape_cast %393 : vector<1x2x96xf32> to vector<2x96xf32>
    %395 = vector.extract_strided_slice %394 {offsets = [0, 0], sizes = [2, 32], strides = [1, 1]} : vector<2x96xf32> to vector<2x32xf32>
    %396 = vector.extract_strided_slice %386 {offsets = [0, 0], sizes = [2, 32], strides = [1, 1]} : vector<2x96xf32> to vector<2x32xf32>
    %397 = arith.addf %395, %396 : vector<2x32xf32>
    %398 = arith.negf %397 : vector<2x32xf32>
    %399 = math.exp %398 : vector<2x32xf32>
    %cst_120 = arith.constant 1.000000e+00 : f32
    %400 = vector.broadcast %cst_120 : f32 to vector<2x32xf32>
    %401 = arith.addf %400, %399 : vector<2x32xf32>
    %402 = arith.divf %400, %401 : vector<2x32xf32>
    %403 = vector.extract_strided_slice %394 {offsets = [0, 32], sizes = [2, 32], strides = [1, 1]} : vector<2x96xf32> to vector<2x32xf32>
    %404 = vector.extract_strided_slice %386 {offsets = [0, 32], sizes = [2, 32], strides = [1, 1]} : vector<2x96xf32> to vector<2x32xf32>
    %405 = arith.addf %403, %404 : vector<2x32xf32>
    %406 = arith.negf %405 : vector<2x32xf32>
    %407 = math.exp %406 : vector<2x32xf32>
    %cst_121 = arith.constant 1.000000e+00 : f32
    %408 = vector.broadcast %cst_121 : f32 to vector<2x32xf32>
    %409 = arith.addf %408, %407 : vector<2x32xf32>
    %410 = arith.divf %408, %409 : vector<2x32xf32>
    %411 = vector.extract_strided_slice %394 {offsets = [0, 64], sizes = [2, 32], strides = [1, 1]} : vector<2x96xf32> to vector<2x32xf32>
    %412 = vector.extract_strided_slice %386 {offsets = [0, 64], sizes = [2, 32], strides = [1, 1]} : vector<2x96xf32> to vector<2x32xf32>
    %413 = arith.mulf %402, %412 : vector<2x32xf32>
    %414 = arith.addf %411, %413 : vector<2x32xf32>
    %415 = math.tanh %414 : vector<2x32xf32>
    %cst_122 = arith.constant 1.000000e+00 : f32
    %416 = vector.broadcast %cst_122 : f32 to vector<2x32xf32>
    %417 = arith.subf %416, %410 : vector<2x32xf32>
    %418 = arith.mulf %417, %415 : vector<2x32xf32>
    %419 = arith.mulf %410, %346 : vector<2x32xf32>
    %420 = arith.addf %418, %419 : vector<2x32xf32>
    %421 = vector.extract_strided_slice %8 {offsets = [2, 0, 96], sizes = [1, 2, 96], strides = [1, 1, 1]} : vector<8x2x192xf32> to vector<1x2x96xf32>
    %422 = vector.shape_cast %421 : vector<1x2x96xf32> to vector<2x96xf32>
    %423 = vector.extract_strided_slice %422 {offsets = [0, 0], sizes = [2, 32], strides = [1, 1]} : vector<2x96xf32> to vector<2x32xf32>
    %424 = vector.extract_strided_slice %392 {offsets = [0, 0], sizes = [2, 32], strides = [1, 1]} : vector<2x96xf32> to vector<2x32xf32>
    %425 = arith.addf %423, %424 : vector<2x32xf32>
    %426 = arith.negf %425 : vector<2x32xf32>
    %427 = math.exp %426 : vector<2x32xf32>
    %cst_123 = arith.constant 1.000000e+00 : f32
    %428 = vector.broadcast %cst_123 : f32 to vector<2x32xf32>
    %429 = arith.addf %428, %427 : vector<2x32xf32>
    %430 = arith.divf %428, %429 : vector<2x32xf32>
    %431 = vector.extract_strided_slice %422 {offsets = [0, 32], sizes = [2, 32], strides = [1, 1]} : vector<2x96xf32> to vector<2x32xf32>
    %432 = vector.extract_strided_slice %392 {offsets = [0, 32], sizes = [2, 32], strides = [1, 1]} : vector<2x96xf32> to vector<2x32xf32>
    %433 = arith.addf %431, %432 : vector<2x32xf32>
    %434 = arith.negf %433 : vector<2x32xf32>
    %435 = math.exp %434 : vector<2x32xf32>
    %cst_124 = arith.constant 1.000000e+00 : f32
    %436 = vector.broadcast %cst_124 : f32 to vector<2x32xf32>
    %437 = arith.addf %436, %435 : vector<2x32xf32>
    %438 = arith.divf %436, %437 : vector<2x32xf32>
    %439 = vector.extract_strided_slice %422 {offsets = [0, 64], sizes = [2, 32], strides = [1, 1]} : vector<2x96xf32> to vector<2x32xf32>
    %440 = vector.extract_strided_slice %392 {offsets = [0, 64], sizes = [2, 32], strides = [1, 1]} : vector<2x96xf32> to vector<2x32xf32>
    %441 = arith.mulf %430, %440 : vector<2x32xf32>
    %442 = arith.addf %439, %441 : vector<2x32xf32>
    %443 = math.tanh %442 : vector<2x32xf32>
    %cst_125 = arith.constant 1.000000e+00 : f32
    %444 = vector.broadcast %cst_125 : f32 to vector<2x32xf32>
    %445 = arith.subf %444, %438 : vector<2x32xf32>
    %446 = arith.mulf %445, %443 : vector<2x32xf32>
    %447 = arith.mulf %438, %374 : vector<2x32xf32>
    %448 = arith.addf %446, %447 : vector<2x32xf32>
    %c5_126 = arith.constant 5 : index
    %c0_127 = arith.constant 0 : index
    %c0_128 = arith.constant 0 : index
    %449 = vector.load %arg12[%c5_126, %c0_127, %c0_128] : memref<8x2x64xf32, #tpu.memory_space<vmem>>, vector<1x2x32xf32>
    %450 = vector.shape_cast %449 : vector<1x2x32xf32> to vector<2x32xf32>
    %451 = vector.shape_cast %420 : vector<2x32xf32> to vector<1x2x32xf32>
    tpu.vector_store %arg12[%c5_126, %c0_127, %c0_128], %451 {strides = array<i32>} : memref<8x2x64xf32, #tpu.memory_space<vmem>>, vector<1x2x32xf32>,
    %c2_129 = arith.constant 2 : index
    %c0_130 = arith.constant 0 : index
    %c32_131 = arith.constant 32 : index
    %452 = vector.load %arg12[%c2_129, %c0_130, %c32_131] : memref<8x2x64xf32, #tpu.memory_space<vmem>>, vector<1x2x32xf32>
    %453 = vector.shape_cast %452 : vector<1x2x32xf32> to vector<2x32xf32>
    %454 = vector.shape_cast %448 : vector<2x32xf32> to vector<1x2x32xf32>
    tpu.vector_store %arg12[%c2_129, %c0_130, %c32_131], %454 {strides = array<i32>} : memref<8x2x64xf32, #tpu.memory_space<vmem>>, vector<1x2x32xf32>,
    %455 = arith.truncf %420 : vector<2x32xf32> to vector<2x32xbf16>
    %c0_132 = arith.constant 0 : index
    %c0_133 = arith.constant 0 : index
    %456 = vector.load %arg4[%c0_132, %c0_133] : memref<32x96xbf16, #tpu.memory_space<vmem>>, vector<32x96xbf16>
    %cst_134 = arith.constant dense<0.000000e+00> : vector<2x96xf32>
    %457 = tpu.matmul %455, %456, %cst_134 {dimension_numbers = #tpu.dot_dimension_numbers<[1], [0], [0], [1], [0, 0, 1, 1], [], []>} : vector<2x32xbf16>, vector<32x96xbf16>, vector<2x96xf32> -> vector<2x96xf32>
    %c0_135 = arith.constant 0 : index
    %c0_136 = arith.constant 0 : index
    %458 = vector.load %arg5[%c0_135, %c0_136] : memref<1x96xf32, #tpu.memory_space<vmem>>, vector<1x96xf32>
    %459 = vector.broadcast %458 : vector<1x96xf32> to vector<2x96xf32>
    %460 = arith.addf %457, %459 : vector<2x96xf32>
    %461 = arith.truncf %448 : vector<2x32xf32> to vector<2x32xbf16>
    %c0_137 = arith.constant 0 : index
    %c0_138 = arith.constant 0 : index
    %462 = vector.load %arg6[%c0_137, %c0_138] : memref<32x96xbf16, #tpu.memory_space<vmem>>, vector<32x96xbf16>
    %cst_139 = arith.constant dense<0.000000e+00> : vector<2x96xf32>
    %463 = tpu.matmul %461, %462, %cst_139 {dimension_numbers = #tpu.dot_dimension_numbers<[1], [0], [0], [1], [0, 0, 1, 1], [], []>} : vector<2x32xbf16>, vector<32x96xbf16>, vector<2x96xf32> -> vector<2x96xf32>
    %c0_140 = arith.constant 0 : index
    %c0_141 = arith.constant 0 : index
    %464 = vector.load %arg7[%c0_140, %c0_141] : memref<1x96xf32, #tpu.memory_space<vmem>>, vector<1x96xf32>
    %465 = vector.broadcast %464 : vector<1x96xf32> to vector<2x96xf32>
    %466 = arith.addf %463, %465 : vector<2x96xf32>
    %467 = vector.extract_strided_slice %8 {offsets = [6, 0, 0], sizes = [1, 2, 96], strides = [1, 1, 1]} : vector<8x2x192xf32> to vector<1x2x96xf32>
    %468 = vector.shape_cast %467 : vector<1x2x96xf32> to vector<2x96xf32>
    %469 = vector.extract_strided_slice %468 {offsets = [0, 0], sizes = [2, 32], strides = [1, 1]} : vector<2x96xf32> to vector<2x32xf32>
    %470 = vector.extract_strided_slice %460 {offsets = [0, 0], sizes = [2, 32], strides = [1, 1]} : vector<2x96xf32> to vector<2x32xf32>
    %471 = arith.addf %469, %470 : vector<2x32xf32>
    %472 = arith.negf %471 : vector<2x32xf32>
    %473 = math.exp %472 : vector<2x32xf32>
    %cst_142 = arith.constant 1.000000e+00 : f32
    %474 = vector.broadcast %cst_142 : f32 to vector<2x32xf32>
    %475 = arith.addf %474, %473 : vector<2x32xf32>
    %476 = arith.divf %474, %475 : vector<2x32xf32>
    %477 = vector.extract_strided_slice %468 {offsets = [0, 32], sizes = [2, 32], strides = [1, 1]} : vector<2x96xf32> to vector<2x32xf32>
    %478 = vector.extract_strided_slice %460 {offsets = [0, 32], sizes = [2, 32], strides = [1, 1]} : vector<2x96xf32> to vector<2x32xf32>
    %479 = arith.addf %477, %478 : vector<2x32xf32>
    %480 = arith.negf %479 : vector<2x32xf32>
    %481 = math.exp %480 : vector<2x32xf32>
    %cst_143 = arith.constant 1.000000e+00 : f32
    %482 = vector.broadcast %cst_143 : f32 to vector<2x32xf32>
    %483 = arith.addf %482, %481 : vector<2x32xf32>
    %484 = arith.divf %482, %483 : vector<2x32xf32>
    %485 = vector.extract_strided_slice %468 {offsets = [0, 64], sizes = [2, 32], strides = [1, 1]} : vector<2x96xf32> to vector<2x32xf32>
    %486 = vector.extract_strided_slice %460 {offsets = [0, 64], sizes = [2, 32], strides = [1, 1]} : vector<2x96xf32> to vector<2x32xf32>
    %487 = arith.mulf %476, %486 : vector<2x32xf32>
    %488 = arith.addf %485, %487 : vector<2x32xf32>
    %489 = math.tanh %488 : vector<2x32xf32>
    %cst_144 = arith.constant 1.000000e+00 : f32
    %490 = vector.broadcast %cst_144 : f32 to vector<2x32xf32>
    %491 = arith.subf %490, %484 : vector<2x32xf32>
    %492 = arith.mulf %491, %489 : vector<2x32xf32>
    %493 = arith.mulf %484, %420 : vector<2x32xf32>
    %494 = arith.addf %492, %493 : vector<2x32xf32>
    %495 = vector.extract_strided_slice %8 {offsets = [1, 0, 96], sizes = [1, 2, 96], strides = [1, 1, 1]} : vector<8x2x192xf32> to vector<1x2x96xf32>
    %496 = vector.shape_cast %495 : vector<1x2x96xf32> to vector<2x96xf32>
    %497 = vector.extract_strided_slice %496 {offsets = [0, 0], sizes = [2, 32], strides = [1, 1]} : vector<2x96xf32> to vector<2x32xf32>
    %498 = vector.extract_strided_slice %466 {offsets = [0, 0], sizes = [2, 32], strides = [1, 1]} : vector<2x96xf32> to vector<2x32xf32>
    %499 = arith.addf %497, %498 : vector<2x32xf32>
    %500 = arith.negf %499 : vector<2x32xf32>
    %501 = math.exp %500 : vector<2x32xf32>
    %cst_145 = arith.constant 1.000000e+00 : f32
    %502 = vector.broadcast %cst_145 : f32 to vector<2x32xf32>
    %503 = arith.addf %502, %501 : vector<2x32xf32>
    %504 = arith.divf %502, %503 : vector<2x32xf32>
    %505 = vector.extract_strided_slice %496 {offsets = [0, 32], sizes = [2, 32], strides = [1, 1]} : vector<2x96xf32> to vector<2x32xf32>
    %506 = vector.extract_strided_slice %466 {offsets = [0, 32], sizes = [2, 32], strides = [1, 1]} : vector<2x96xf32> to vector<2x32xf32>
    %507 = arith.addf %505, %506 : vector<2x32xf32>
    %508 = arith.negf %507 : vector<2x32xf32>
    %509 = math.exp %508 : vector<2x32xf32>
    %cst_146 = arith.constant 1.000000e+00 : f32
    %510 = vector.broadcast %cst_146 : f32 to vector<2x32xf32>
    %511 = arith.addf %510, %509 : vector<2x32xf32>
    %512 = arith.divf %510, %511 : vector<2x32xf32>
    %513 = vector.extract_strided_slice %496 {offsets = [0, 64], sizes = [2, 32], strides = [1, 1]} : vector<2x96xf32> to vector<2x32xf32>
    %514 = vector.extract_strided_slice %466 {offsets = [0, 64], sizes = [2, 32], strides = [1, 1]} : vector<2x96xf32> to vector<2x32xf32>
    %515 = arith.mulf %504, %514 : vector<2x32xf32>
    %516 = arith.addf %513, %515 : vector<2x32xf32>
    %517 = math.tanh %516 : vector<2x32xf32>
    %cst_147 = arith.constant 1.000000e+00 : f32
    %518 = vector.broadcast %cst_147 : f32 to vector<2x32xf32>
    %519 = arith.subf %518, %512 : vector<2x32xf32>
    %520 = arith.mulf %519, %517 : vector<2x32xf32>
    %521 = arith.mulf %512, %448 : vector<2x32xf32>
    %522 = arith.addf %520, %521 : vector<2x32xf32>
    %c6_148 = arith.constant 6 : index
    %c0_149 = arith.constant 0 : index
    %c0_150 = arith.constant 0 : index
    %523 = vector.load %arg12[%c6_148, %c0_149, %c0_150] : memref<8x2x64xf32, #tpu.memory_space<vmem>>, vector<1x2x32xf32>
    %524 = vector.shape_cast %523 : vector<1x2x32xf32> to vector<2x32xf32>
    %525 = vector.shape_cast %494 : vector<2x32xf32> to vector<1x2x32xf32>
    tpu.vector_store %arg12[%c6_148, %c0_149, %c0_150], %525 {strides = array<i32>} : memref<8x2x64xf32, #tpu.memory_space<vmem>>, vector<1x2x32xf32>,
    %c1_151 = arith.constant 1 : index
    %c0_152 = arith.constant 0 : index
    %c32_153 = arith.constant 32 : index
    %526 = vector.load %arg12[%c1_151, %c0_152, %c32_153] : memref<8x2x64xf32, #tpu.memory_space<vmem>>, vector<1x2x32xf32>
    %527 = vector.shape_cast %526 : vector<1x2x32xf32> to vector<2x32xf32>
    %528 = vector.shape_cast %522 : vector<2x32xf32> to vector<1x2x32xf32>
    tpu.vector_store %arg12[%c1_151, %c0_152, %c32_153], %528 {strides = array<i32>} : memref<8x2x64xf32, #tpu.memory_space<vmem>>, vector<1x2x32xf32>,
    %529 = arith.truncf %494 : vector<2x32xf32> to vector<2x32xbf16>
    %c0_154 = arith.constant 0 : index
    %c0_155 = arith.constant 0 : index
    %530 = vector.load %arg4[%c0_154, %c0_155] : memref<32x96xbf16, #tpu.memory_space<vmem>>, vector<32x96xbf16>
    %cst_156 = arith.constant dense<0.000000e+00> : vector<2x96xf32>
    %531 = tpu.matmul %529, %530, %cst_156 {dimension_numbers = #tpu.dot_dimension_numbers<[1], [0], [0], [1], [0, 0, 1, 1], [], []>} : vector<2x32xbf16>, vector<32x96xbf16>, vector<2x96xf32> -> vector<2x96xf32>
    %c0_157 = arith.constant 0 : index
    %c0_158 = arith.constant 0 : index
    %532 = vector.load %arg5[%c0_157, %c0_158] : memref<1x96xf32, #tpu.memory_space<vmem>>, vector<1x96xf32>
    %533 = vector.broadcast %532 : vector<1x96xf32> to vector<2x96xf32>
    %534 = arith.addf %531, %533 : vector<2x96xf32>
    %535 = arith.truncf %522 : vector<2x32xf32> to vector<2x32xbf16>
    %c0_159 = arith.constant 0 : index
    %c0_160 = arith.constant 0 : index
    %536 = vector.load %arg6[%c0_159, %c0_160] : memref<32x96xbf16, #tpu.memory_space<vmem>>, vector<32x96xbf16>
    %cst_161 = arith.constant dense<0.000000e+00> : vector<2x96xf32>
    %537 = tpu.matmul %535, %536, %cst_161 {dimension_numbers = #tpu.dot_dimension_numbers<[1], [0], [0], [1], [0, 0, 1, 1], [], []>} : vector<2x32xbf16>, vector<32x96xbf16>, vector<2x96xf32> -> vector<2x96xf32>
    %c0_162 = arith.constant 0 : index
    %c0_163 = arith.constant 0 : index
    %538 = vector.load %arg7[%c0_162, %c0_163] : memref<1x96xf32, #tpu.memory_space<vmem>>, vector<1x96xf32>
    %539 = vector.broadcast %538 : vector<1x96xf32> to vector<2x96xf32>
    %540 = arith.addf %537, %539 : vector<2x96xf32>
    %541 = vector.extract_strided_slice %8 {offsets = [7, 0, 0], sizes = [1, 2, 96], strides = [1, 1, 1]} : vector<8x2x192xf32> to vector<1x2x96xf32>
    %542 = vector.shape_cast %541 : vector<1x2x96xf32> to vector<2x96xf32>
    %543 = vector.extract_strided_slice %542 {offsets = [0, 0], sizes = [2, 32], strides = [1, 1]} : vector<2x96xf32> to vector<2x32xf32>
    %544 = vector.extract_strided_slice %534 {offsets = [0, 0], sizes = [2, 32], strides = [1, 1]} : vector<2x96xf32> to vector<2x32xf32>
    %545 = arith.addf %543, %544 : vector<2x32xf32>
    %546 = arith.negf %545 : vector<2x32xf32>
    %547 = math.exp %546 : vector<2x32xf32>
    %cst_164 = arith.constant 1.000000e+00 : f32
    %548 = vector.broadcast %cst_164 : f32 to vector<2x32xf32>
    %549 = arith.addf %548, %547 : vector<2x32xf32>
    %550 = arith.divf %548, %549 : vector<2x32xf32>
    %551 = vector.extract_strided_slice %542 {offsets = [0, 32], sizes = [2, 32], strides = [1, 1]} : vector<2x96xf32> to vector<2x32xf32>
    %552 = vector.extract_strided_slice %534 {offsets = [0, 32], sizes = [2, 32], strides = [1, 1]} : vector<2x96xf32> to vector<2x32xf32>
    %553 = arith.addf %551, %552 : vector<2x32xf32>
    %554 = arith.negf %553 : vector<2x32xf32>
    %555 = math.exp %554 : vector<2x32xf32>
    %cst_165 = arith.constant 1.000000e+00 : f32
    %556 = vector.broadcast %cst_165 : f32 to vector<2x32xf32>
    %557 = arith.addf %556, %555 : vector<2x32xf32>
    %558 = arith.divf %556, %557 : vector<2x32xf32>
    %559 = vector.extract_strided_slice %542 {offsets = [0, 64], sizes = [2, 32], strides = [1, 1]} : vector<2x96xf32> to vector<2x32xf32>
    %560 = vector.extract_strided_slice %534 {offsets = [0, 64], sizes = [2, 32], strides = [1, 1]} : vector<2x96xf32> to vector<2x32xf32>
    %561 = arith.mulf %550, %560 : vector<2x32xf32>
    %562 = arith.addf %559, %561 : vector<2x32xf32>
    %563 = math.tanh %562 : vector<2x32xf32>
    %cst_166 = arith.constant 1.000000e+00 : f32
    %564 = vector.broadcast %cst_166 : f32 to vector<2x32xf32>
    %565 = arith.subf %564, %558 : vector<2x32xf32>
    %566 = arith.mulf %565, %563 : vector<2x32xf32>
    %567 = arith.mulf %558, %494 : vector<2x32xf32>
    %568 = arith.addf %566, %567 : vector<2x32xf32>
    %569 = vector.extract_strided_slice %8 {offsets = [0, 0, 96], sizes = [1, 2, 96], strides = [1, 1, 1]} : vector<8x2x192xf32> to vector<1x2x96xf32>
    %570 = vector.shape_cast %569 : vector<1x2x96xf32> to vector<2x96xf32>
    %571 = vector.extract_strided_slice %570 {offsets = [0, 0], sizes = [2, 32], strides = [1, 1]} : vector<2x96xf32> to vector<2x32xf32>
    %572 = vector.extract_strided_slice %540 {offsets = [0, 0], sizes = [2, 32], strides = [1, 1]} : vector<2x96xf32> to vector<2x32xf32>
    %573 = arith.addf %571, %572 : vector<2x32xf32>
    %574 = arith.negf %573 : vector<2x32xf32>
    %575 = math.exp %574 : vector<2x32xf32>
    %cst_167 = arith.constant 1.000000e+00 : f32
    %576 = vector.broadcast %cst_167 : f32 to vector<2x32xf32>
    %577 = arith.addf %576, %575 : vector<2x32xf32>
    %578 = arith.divf %576, %577 : vector<2x32xf32>
    %579 = vector.extract_strided_slice %570 {offsets = [0, 32], sizes = [2, 32], strides = [1, 1]} : vector<2x96xf32> to vector<2x32xf32>
    %580 = vector.extract_strided_slice %540 {offsets = [0, 32], sizes = [2, 32], strides = [1, 1]} : vector<2x96xf32> to vector<2x32xf32>
    %581 = arith.addf %579, %580 : vector<2x32xf32>
    %582 = arith.negf %581 : vector<2x32xf32>
    %583 = math.exp %582 : vector<2x32xf32>
    %cst_168 = arith.constant 1.000000e+00 : f32
    %584 = vector.broadcast %cst_168 : f32 to vector<2x32xf32>
    %585 = arith.addf %584, %583 : vector<2x32xf32>
    %586 = arith.divf %584, %585 : vector<2x32xf32>
    %587 = vector.extract_strided_slice %570 {offsets = [0, 64], sizes = [2, 32], strides = [1, 1]} : vector<2x96xf32> to vector<2x32xf32>
    %588 = vector.extract_strided_slice %540 {offsets = [0, 64], sizes = [2, 32], strides = [1, 1]} : vector<2x96xf32> to vector<2x32xf32>
    %589 = arith.mulf %578, %588 : vector<2x32xf32>
    %590 = arith.addf %587, %589 : vector<2x32xf32>
    %591 = math.tanh %590 : vector<2x32xf32>
    %cst_169 = arith.constant 1.000000e+00 : f32
    %592 = vector.broadcast %cst_169 : f32 to vector<2x32xf32>
    %593 = arith.subf %592, %586 : vector<2x32xf32>
    %594 = arith.mulf %593, %591 : vector<2x32xf32>
    %595 = arith.mulf %586, %522 : vector<2x32xf32>
    %596 = arith.addf %594, %595 : vector<2x32xf32>
    %c7_170 = arith.constant 7 : index
    %c0_171 = arith.constant 0 : index
    %c0_172 = arith.constant 0 : index
    %597 = vector.load %arg12[%c7_170, %c0_171, %c0_172] : memref<8x2x64xf32, #tpu.memory_space<vmem>>, vector<1x2x32xf32>
    %598 = vector.shape_cast %597 : vector<1x2x32xf32> to vector<2x32xf32>
    %599 = vector.shape_cast %568 : vector<2x32xf32> to vector<1x2x32xf32>
    tpu.vector_store %arg12[%c7_170, %c0_171, %c0_172], %599 {strides = array<i32>} : memref<8x2x64xf32, #tpu.memory_space<vmem>>, vector<1x2x32xf32>,
    %c0_173 = arith.constant 0 : index
    %c0_174 = arith.constant 0 : index
    %c32_175 = arith.constant 32 : index
    %600 = vector.load %arg12[%c0_173, %c0_174, %c32_175] : memref<8x2x64xf32, #tpu.memory_space<vmem>>, vector<1x2x32xf32>
    %601 = vector.shape_cast %600 : vector<1x2x32xf32> to vector<2x32xf32>
    %602 = vector.shape_cast %596 : vector<2x32xf32> to vector<1x2x32xf32>
    tpu.vector_store %arg12[%c0_173, %c0_174, %c32_175], %602 {strides = array<i32>} : memref<8x2x64xf32, #tpu.memory_space<vmem>>, vector<1x2x32xf32>,
    %c0_176 = arith.constant 0 : index
    %c0_177 = arith.constant 0 : index
    %c0_178 = arith.constant 0 : index
    %603 = vector.load %arg12[%c0_176, %c0_177, %c0_178] : memref<8x2x64xf32, #tpu.memory_space<vmem>>, vector<8x2x64xf32>
    %604 = vector.shape_cast %603 : vector<8x2x64xf32> to vector<16x64xf32>
    %605 = arith.truncf %604 : vector<16x64xf32> to vector<16x64xbf16>
    %c0_179 = arith.constant 0 : index
    %c0_180 = arith.constant 0 : index
    %606 = vector.load %arg8[%c0_179, %c0_180] : memref<64x64xbf16, #tpu.memory_space<vmem>>, vector<64x64xbf16>
    %cst_181 = arith.constant dense<0.000000e+00> : vector<16x64xf32>
    %607 = tpu.matmul %605, %606, %cst_181 {dimension_numbers = #tpu.dot_dimension_numbers<[1], [0], [0], [1], [0, 0, 1, 1], [], []>} : vector<16x64xbf16>, vector<64x64xbf16>, vector<16x64xf32> -> vector<16x64xf32>
    %c0_182 = arith.constant 0 : index
    %c0_183 = arith.constant 0 : index
    %608 = vector.load %arg9[%c0_182, %c0_183] : memref<1x64xf32, #tpu.memory_space<vmem>>, vector<1x64xf32>
    %609 = vector.broadcast %608 : vector<1x64xf32> to vector<16x64xf32>
    %610 = arith.addf %607, %609 : vector<16x64xf32>
    %611 = math.tanh %610 : vector<16x64xf32>
    %612 = arith.truncf %611 : vector<16x64xf32> to vector<16x64xbf16>
    %c0_184 = arith.constant 0 : index
    %c0_185 = arith.constant 0 : index
    %613 = vector.load %arg10[%c0_184, %c0_185] : memref<64x128xbf16, #tpu.memory_space<vmem>>, vector<64x128xbf16>
    %cst_186 = arith.constant dense<0.000000e+00> : vector<16x128xf32>
    %614 = tpu.matmul %612, %613, %cst_186 {dimension_numbers = #tpu.dot_dimension_numbers<[1], [0], [0], [1], [0, 0, 1, 1], [], []>} : vector<16x64xbf16>, vector<64x128xbf16>, vector<16x128xf32> -> vector<16x128xf32>
    %615 = vector.extract_strided_slice %614 {offsets = [0, 0], sizes = [16, 1], strides = [1, 1]} : vector<16x128xf32> to vector<16x1xf32>
    %cst_187 = arith.constant dense<0xFF800000> : vector<1xf32>
    %616 = vector.multi_reduction <maximumf>, %615, %cst_187 [0] : vector<16x1xf32> to vector<1xf32>
    %617 = vector.shape_cast %616 : vector<1xf32> to vector<1x1xf32>
    %618 = vector.broadcast %617 : vector<1x1xf32> to vector<16x1xf32>
    %619 = arith.subf %615, %618 : vector<16x1xf32>
    %620 = math.exp %619 : vector<16x1xf32>
    %621 = vector.broadcast %620 : vector<16x1xf32> to vector<16x64xf32>
    %622 = arith.mulf %621, %604 : vector<16x64xf32>
    %623 = vector.shape_cast %622 : vector<16x64xf32> to vector<8x2x64xf32>
    %cst_188 = arith.constant dense<0.000000e+00> : vector<2x64xf32>
    %624 = vector.multi_reduction <add>, %623, %cst_188 [0] : vector<8x2x64xf32> to vector<2x64xf32>
    %cst_189 = arith.constant 1.000000e+00 : f32
    %625 = vector.broadcast %cst_189 : f32 to vector<1x64xf32>
    %626 = vector.broadcast %620 : vector<16x1xf32> to vector<16x64xf32>
    %627 = vector.broadcast %625 : vector<1x64xf32> to vector<16x64xf32>
    %628 = arith.mulf %626, %627 : vector<16x64xf32>
    %629 = vector.shape_cast %628 : vector<16x64xf32> to vector<8x2x64xf32>
    %cst_190 = arith.constant dense<0.000000e+00> : vector<2x64xf32>
    %630 = vector.multi_reduction <add>, %629, %cst_190 [0] : vector<8x2x64xf32> to vector<2x64xf32>
    %631 = arith.divf %624, %630 : vector<2x64xf32>
    %c0_191 = arith.constant 0 : index
    %c0_192 = arith.constant 0 : index
    %c0_193 = arith.constant 0 : index
    %632 = vector.load %arg11[%c0_191, %c0_192, %c0_193] : memref<1x2x64xf32, #tpu.memory_space<vmem>>, vector<1x2x64xf32>
    %633 = vector.shape_cast %632 : vector<1x2x64xf32> to vector<2x64xf32>
    %634 = vector.shape_cast %631 : vector<2x64xf32> to vector<1x2x64xf32>
    tpu.vector_store %arg11[%c0_191, %c0_192, %c0_193], %634 {strides = array<i32>} : memref<1x2x64xf32, #tpu.memory_space<vmem>>, vector<1x2x64xf32>,
    return
  }
  func.func @transform_0(%arg0: i32) -> (i32, i32, i32) {
    %c0_i32 = arith.constant 0 : i32
    %c0_i32_0 = arith.constant 0 : i32
    %c0_i32_1 = arith.constant 0 : i32
    return %c0_i32, %arg0, %c0_i32_0 : i32, i32, i32
  }
  func.func @transform_1(%arg0: i32) -> (i32, i32) {
    %c0_i32 = arith.constant 0 : i32
    %c0_i32_0 = arith.constant 0 : i32
    %c0_i32_1 = arith.constant 0 : i32
    return %c0_i32, %c0_i32_0 : i32, i32
  }
  func.func @transform_2(%arg0: i32) -> (i32, i32) {
    %c0_i32 = arith.constant 0 : i32
    %c0_i32_0 = arith.constant 0 : i32
    %c0_i32_1 = arith.constant 0 : i32
    return %c0_i32, %c0_i32_0 : i32, i32
  }
  func.func @transform_3(%arg0: i32) -> (i32, i32) {
    %c0_i32 = arith.constant 0 : i32
    %c0_i32_0 = arith.constant 0 : i32
    %c0_i32_1 = arith.constant 0 : i32
    return %c0_i32, %c0_i32_0 : i32, i32
  }
  func.func @transform_4(%arg0: i32) -> (i32, i32) {
    %c0_i32 = arith.constant 0 : i32
    %c0_i32_0 = arith.constant 0 : i32
    %c0_i32_1 = arith.constant 0 : i32
    return %c0_i32, %c0_i32_0 : i32, i32
  }
  func.func @transform_5(%arg0: i32) -> (i32, i32) {
    %c0_i32 = arith.constant 0 : i32
    %c0_i32_0 = arith.constant 0 : i32
    %c0_i32_1 = arith.constant 0 : i32
    return %c0_i32, %c0_i32_0 : i32, i32
  }
  func.func @transform_6(%arg0: i32) -> (i32, i32) {
    %c0_i32 = arith.constant 0 : i32
    %c0_i32_0 = arith.constant 0 : i32
    %c0_i32_1 = arith.constant 0 : i32
    return %c0_i32, %c0_i32_0 : i32, i32
  }
  func.func @transform_7(%arg0: i32) -> (i32, i32) {
    %c0_i32 = arith.constant 0 : i32
    %c0_i32_0 = arith.constant 0 : i32
    %c0_i32_1 = arith.constant 0 : i32
    return %c0_i32, %c0_i32_0 : i32, i32
  }
  func.func @transform_8(%arg0: i32) -> (i32, i32) {
    %c0_i32 = arith.constant 0 : i32
    %c0_i32_0 = arith.constant 0 : i32
    %c0_i32_1 = arith.constant 0 : i32
    return %c0_i32, %c0_i32_0 : i32, i32
  }
  func.func @transform_9(%arg0: i32) -> (i32, i32) {
    %c0_i32 = arith.constant 0 : i32
    %c0_i32_0 = arith.constant 0 : i32
    %c0_i32_1 = arith.constant 0 : i32
    return %c0_i32, %c0_i32_0 : i32, i32
  }
  func.func @transform_10(%arg0: i32) -> (i32, i32, i32) {
    %c0_i32 = arith.constant 0 : i32
    %c0_i32_0 = arith.constant 0 : i32
    %c0_i32_1 = arith.constant 0 : i32
    return %c0_i32, %arg0, %c0_i32_0 : i32, i32, i32
  }
}

</mosaic_0001>

<bundles_post_ra>
// kernel: tpu_custom_call.1
= control target key start
LH: loop header
LB: loop body
LE: loop exit
PB: predicated region body
PF: predicated region fallthrough
CT: control target
= control target key end

     0   :  { %15 = vsyncpa [#allocation4], 0  ;;  %s4064_s0 = inlined_call_operand.hbm [shape: f32[8,2,32], index: 0, kind: input, shape index: {}]   ;;  %s4065_s1 = inlined_call_operand.hbm [shape: bf16[32,192], index: 1, kind: input, shape index: {}]   ;;  %s4066_s2 = inlined_call_operand.vmem [shape: f32[1,192], index: 2, kind: input, shape index: {}]   ;;  %s4067_s3 = inlined_call_operand.hbm [shape: bf16[32,96], index: 3, kind: input, shape index: {}]   ;;  %s4068_s4 = inlined_call_operand.hbm [shape: f32[1,96], index: 4, kind: input, shape index: {}]   ;;  %s4069_s5 = inlined_call_operand.hbm [shape: bf16[32,96], index: 5, kind: input, shape index: {}]   ;;  %s4070_s6 = inlined_call_operand.hbm [shape: f32[1,96], index: 6, kind: input, shape index: {}]   ;;  %s4071_s7 = inlined_call_operand.hbm [shape: bf16[64,64], index: 7, kind: input, shape index: {}]   ;;  %s4072_s8 = inlined_call_operand.hbm [shape: f32[1,64], index: 8, kind: input, shape index: {}]   ;;  %s4073_s9 = inlined_call_operand.vmem [shape: bf16[64,128], index: 9, kind: input, shape index: {}]   ;;  %s4074_s10 = inlined_call_operand.hbm [shape: f32[1,2,64], index: 10, kind: output, shape index: {}]  }
   0x1   :  { %16 = vsyncpa [#allocation7], 0 }
   0x2   :  { %17 = vsyncpa [#allocation10], 0 }
   0x3   :  { %18 = vsyncpa [#allocation13], 0 }
   0x4   :  { %19 = vsyncpa [#allocation16], 0 }
   0x5   :  { %20 = vsyncpa [#allocation5], 0  ;;  %s3375_s13 = smov [#allocation6]   ;;  %s3165_s17 = scalar_lea.hbm %s4065_s1, 512 }
   0x6   :  { %s38_s14 = sshll.u32 %s3375_s13, 4  ;;  %p3166_p0 = scmp.ne.s32.totalorder %s4065_s1, %s3165_s17  ;;  %s39_s14 = int_to_ptr.vmem [resolvable:$true] %s38_s14 }
   0x7   :  { %p3169_p1 = scmp.lt.u32.totalorder %s3165_s17, %s4065_s1 }
   0x9   :  { %p3171_p2 = pnand %p3169_p1, %p3166_p0 }
   0xb   :  { %3174 = shalt.err (!%p3171_p2)
}
   0xc   :  { %s3175_s22 = scalar_lea.vmem %s39_s14, 512  ;;  %p3180_p4 = scmp.lt.s32.totalorder %s39_s14, %s39_s14 }
   0xd   :  { %p3176_p3 = scmp.ne.s32.totalorder %s39_s14, %s3175_s22  ;;  %p3181_p5 = scmp.lt.s32.totalorder %s3175_s22, %s3175_s22 }
   0xf   :  { %p3182_p6 = por %p3181_p5, %p3180_p4 }
  0x11   :  { %p3183_p7 = pnand %p3182_p6, %p3176_p3 }
  0x13   :  { %3186 = shalt.err (!%p3183_p7)
}
  0x14   :  { %s3376_s23 = smov 128   ;;  %s3377_s24 = smov 8  }
  0x15   :  { %44 = dma.hbm_to_vmem [thread:$0]  %s4065_s1, 512, %s39_s14, [#allocation7], %s3376_s23, %s3376_s23, %s3377_s24  }
  0x16   :  { %s3378_s27 = smov [#allocation9]   ;;  %s3379_s29 = smov [#allocation12]  }
  0x17   :  { %s65_s28 = sshll.u32 %s3378_s27, 4  ;;  %s87_s30 = sshll.u32 %s3379_s29, 4  ;;  %s66_s28 = int_to_ptr.vmem [resolvable:$true] %s65_s28  ;;  %s88_s30 = int_to_ptr.vmem [resolvable:$true] %s87_s30 }
  0x18   :  { %s3187_s13 = scalar_lea.hbm %s4068_s4, 16 }
  0x19   :  { %p3188_p8 = scmp.ne.s32.totalorder %s4068_s4, %s3187_s13  ;;  %p3191_p9 = scmp.lt.u32.totalorder %s3187_s13, %s4068_s4 }
  0x1b   :  { %p3193_p10 = pnand %p3191_p9, %p3188_p8 }
  0x1d   :  { %3196 = shalt.err (!%p3193_p10)
}
  0x1e   :  { %s3197_s1 = scalar_lea.vmem %s66_s28, 16  ;;  %s3201_s14 = scalar_lea.vmem %s66_s28, 32 }
  0x1f   :  { %p3198_p11 = scmp.ne.s32.totalorder %s66_s28, %s3197_s1  ;;  %p3202_p12 = scmp.lt.s32.totalorder %s66_s28, %s66_s28 }
  0x20   :  { %p3203_p13 = scmp.lt.s32.totalorder %s3201_s14, %s3197_s1 }
  0x22   :  { %p3204_p0 = por %p3203_p13, %p3202_p12 }
  0x24   :  { %p3205_p1 = pnand %p3204_p0, %p3198_p11 }
  0x26   :  { %3208 = shalt.err (!%p3205_p1)
}
  0x27   :  { %68 = dma.hbm_to_vmem [thread:$0]  %s4068_s4, 16, %s66_s28, [#allocation10]  }
  0x28   :  { %s3209_s23 = scalar_lea.hbm %s4070_s6, 16 }
  0x29   :  { %p3210_p2 = scmp.ne.s32.totalorder %s4070_s6, %s3209_s23  ;;  %p3213_p3 = scmp.lt.u32.totalorder %s3209_s23, %s4070_s6 }
  0x2b   :  { %p3215_p4 = pnand %p3213_p3, %p3210_p2 }
  0x2d   :  { %3218 = shalt.err (!%p3215_p4)
}
  0x2e   :  { %s3219_s29 = scalar_lea.vmem %s88_s30, 16  ;;  %s3223_s11 = scalar_lea.vmem %s88_s30, 32 }
  0x2f   :  { %p3220_p5 = scmp.ne.s32.totalorder %s88_s30, %s3219_s29  ;;  %p3224_p6 = scmp.lt.s32.totalorder %s88_s30, %s88_s30 }
  0x30   :  { %p3225_p7 = scmp.lt.s32.totalorder %s3223_s11, %s3219_s29 }
  0x32   :  { %p3226_p8 = por %p3225_p7, %p3224_p6 }
  0x34   :  { %p3227_p9 = pnand %p3226_p8, %p3220_p5 }
  0x36   :  { %3230 = shalt.err (!%p3227_p9)
}
  0x37   :  { %90 = dma.hbm_to_vmem [thread:$0]  %s4070_s6, 16, %s88_s30, [#allocation13]  }
  0x38   :  { %s3380_s12 = smov [#allocation3]   ;;  %s3231_s17 = scalar_lea.hbm %s4064_s0, 256 }
  0x39   :  { %s26_s13 = sshll.u32 %s3380_s12, 4  ;;  %p3232_p10 = scmp.ne.s32.totalorder %s4064_s0, %s3231_s17  ;;  %s27_s13 = int_to_ptr.vmem [resolvable:$true] %s26_s13 }
  0x3a   :  { %p3235_p11 = scmp.lt.u32.totalorder %s3231_s17, %s4064_s0 }
  0x3c   :  { %p3237_p12 = pnand %p3235_p11, %p3232_p10 }
  0x3e   :  { %3240 = shalt.err (!%p3237_p12)
}
  0x3f   :  { %s3241_s20 = scalar_lea.vmem %s27_s13, 256  ;;  %p3246_p0 = scmp.lt.s32.totalorder %s27_s13, %s27_s13 }
  0x40   :  { %p3242_p13 = scmp.ne.s32.totalorder %s27_s13, %s3241_s20  ;;  %p3247_p1 = scmp.lt.s32.totalorder %s3241_s20, %s3241_s20 }
  0x42   :  { %p3248_p2 = por %p3247_p1, %p3246_p0 }
  0x44   :  { %p3249_p3 = pnand %p3248_p2, %p3242_p13 }
  0x46   :  { %3252 = shalt.err (!%p3249_p3)
}
  0x47   :  { %s3381_s6 = smov 32   ;;  %s3382_s30 = smov 2  }
  0x48   :  { %32 = dma.hbm_to_vmem [thread:$0]  %s4064_s0, 256, %s27_s13, [#allocation4], %s3381_s6, %s3381_s6, %s3382_s30  }
  0x49   :  { %s3383_s23 = smov [#allocation8]   ;;  %s3253_s27 = scalar_lea.hbm %s4067_s3, 256 }
  0x4a   :  { %s52_s24 = sshll.u32 %s3383_s23, 4  ;;  %p3254_p4 = scmp.ne.s32.totalorder %s4067_s3, %s3253_s27  ;;  %s53_s24 = int_to_ptr.vmem [resolvable:$true] %s52_s24 }
  0x4b   :  { %p3257_p5 = scmp.lt.u32.totalorder %s3253_s27, %s4067_s3 }
  0x4d   :  { %p3259_p6 = pnand %p3257_p5, %p3254_p4 }
  0x4f   :  { %3262 = shalt.err (!%p3259_p6)
}
  0x50   :  { %s3263_s12 = scalar_lea.vmem %s53_s24, 256  ;;  %p3268_p8 = scmp.lt.s32.totalorder %s53_s24, %s53_s24 }
  0x51   :  { %p3264_p7 = scmp.ne.s32.totalorder %s53_s24, %s3263_s12  ;;  %p3269_p9 = scmp.lt.s32.totalorder %s3263_s12, %s3263_s12 }
  0x53   :  { %p3270_p10 = por %p3269_p9, %p3268_p8 }
  0x55   :  { %p3271_p11 = pnand %p3270_p10, %p3264_p7 }
  0x57   :  { %3274 = shalt.err (!%p3271_p11)
}
  0x58   :  { %s3384_s0 = smov 64   ;;  %s3385_s13 = smov 4  }
  0x59   :  { %58 = dma.hbm_to_vmem [thread:$0]  %s4067_s3, 256, %s53_s24, [#allocation7], %s3384_s0, %s3384_s0, %s3385_s13  }
  0x5a   :  { %s3386_s17 = smov [#allocation11]   ;;  %s3387_s1 = smov [#allocation14]  }
  0x5b   :  { %s74_s18 = sshll.u32 %s3386_s17, 4  ;;  %s96_s14 = sshll.u32 %s3387_s1, 4  ;;  %s75_s18 = int_to_ptr.vmem [resolvable:$true] %s74_s18  ;;  %s97_s14 = int_to_ptr.vmem [resolvable:$true] %s96_s14 }
  0x5c   :  { %s3275_s30 = scalar_lea.hbm %s4069_s5, 256 }
  0x5d   :  { %p3276_p12 = scmp.ne.s32.totalorder %s4069_s5, %s3275_s30  ;;  %p3279_p13 = scmp.lt.u32.totalorder %s3275_s30, %s4069_s5 }
  0x5f   :  { %p3281_p0 = pnand %p3279_p13, %p3276_p12 }
  0x61   :  { %3284 = shalt.err (!%p3281_p0)
}
  0x62   :  { %s3285_s3 = scalar_lea.vmem %s75_s18, 256  ;;  %p3290_p2 = scmp.lt.s32.totalorder %s75_s18, %s75_s18 }
  0x63   :  { %p3286_p1 = scmp.ne.s32.totalorder %s75_s18, %s3285_s3  ;;  %p3291_p3 = scmp.lt.s32.totalorder %s3285_s3, %s3285_s3 }
  0x65   :  { %p3292_p4 = por %p3291_p3, %p3290_p2 }
  0x67   :  { %p3293_p5 = pnand %p3292_p4, %p3286_p1 }
  0x69   :  { %3296 = shalt.err (!%p3293_p5)
}
  0x6a   :  { %80 = dma.hbm_to_vmem [thread:$0]  %s4069_s5, 256, %s75_s18, [#allocation10], %s3384_s0, %s3384_s0, %s3385_s13  }
  0x6b   :  { %s3297_s11 = scalar_lea.hbm %s4071_s7, 512 }
  0x6c   :  { %p3298_p6 = scmp.ne.s32.totalorder %s4071_s7, %s3297_s11  ;;  %p3301_p7 = scmp.lt.u32.totalorder %s3297_s11, %s4071_s7 }
  0x6e   :  { %p3303_p8 = pnand %p3301_p7, %p3298_p6 }
  0x70   :  { %3306 = shalt.err (!%p3303_p8)
}
  0x71   :  { %s3307_s16 = scalar_lea.vmem %s97_s14, 512  ;;  %p3312_p10 = scmp.lt.s32.totalorder %s97_s14, %s97_s14 }
  0x72   :  { %p3308_p9 = scmp.ne.s32.totalorder %s97_s14, %s3307_s16  ;;  %p3313_p11 = scmp.lt.s32.totalorder %s3307_s16, %s3307_s16 }
  0x74   :  { %p3314_p12 = por %p3313_p11, %p3312_p10 }
  0x76   :  { %p3315_p13 = pnand %p3314_p12, %p3308_p9 }
  0x78   :  { %3318 = shalt.err (!%p3315_p13)
}
  0x79   :  { %102 = dma.hbm_to_vmem [thread:$0]  %s4071_s7, 512, %s97_s14, [#allocation13], %s3384_s0, %s3384_s0, %s3385_s13  }
  0x7a   :  { %s3388_s18 = smov [#allocation15]   ;;  %s3319_s30 = scalar_lea.hbm %s4072_s8, 16 }
  0x7b   :  { %s109_s1 = sshll.u32 %s3388_s18, 4  ;;  %p3320_p0 = scmp.ne.s32.totalorder %s4072_s8, %s3319_s30  ;;  %s110_s1 = int_to_ptr.vmem [resolvable:$true] %s109_s1 }
  0x7c   :  { %p3323_p1 = scmp.lt.u32.totalorder %s3319_s30, %s4072_s8 }
  0x7e   :  { %p3325_p2 = pnand %p3323_p1, %p3320_p0 }
  0x80   :  { %3328 = shalt.err (!%p3325_p2)
}
  0x81   :  { %s3329_s3 = scalar_lea.vmem %s110_s1, 16  ;;  %s3333_s7 = scalar_lea.vmem %s110_s1, 32 }
  0x82   :  { %p3330_p3 = scmp.ne.s32.totalorder %s110_s1, %s3329_s3  ;;  %p3334_p4 = scmp.lt.s32.totalorder %s110_s1, %s110_s1 }
  0x83   :  { %p3335_p5 = scmp.lt.s32.totalorder %s3333_s7, %s3329_s3 }
  0x85   :  { %p3336_p6 = por %p3335_p5, %p3334_p4 }
  0x87   :  { %p3337_p7 = pnand %p3336_p6, %p3330_p3 }
  0x89   :  { %3340 = shalt.err (!%p3337_p7)
}
  0x8a   :  { %112 = dma.hbm_to_vmem [thread:$0]  %s4072_s8, 16, %s110_s1, [#allocation16]  }
  0x8b   :  { %3363 = dma.done.wait [#allocation4], 256  }
  0x8c   :  { %3364 = vsyncadd [#allocation4], 4294967040 }
  0x8d   :  { %3365 = dma.done.wait [#allocation7], 768  }
  0x8e   :  { %3366 = vsyncadd [#allocation7], 4294966528 }
  0x8f   :  { %3367 = dma.done.wait [#allocation10], 272  }
  0x90   :  { %3368 = vsyncadd [#allocation10], 4294967024 }
  0x91   :  { %3369 = dma.done.wait [#allocation13], 528  }
  0x92   :  { %3370 = vsyncadd [#allocation13], 4294966768 }
  0x93   :  { %3371 = dma.done.wait [#allocation16], 16  }
  0x94   :  { %3372 = vsyncadd [#allocation16], 4294967280  ;;  %v3389_v0 = vmov 0.0   ;;  %vm3390_vm0 = vmmov 0   ;;  %v3391_v1 = vmov 0   ;;  %v161_v4 = vlaneseq  ;;  %v2983_v8 = vld [vmem:[#allocation8] sm:$0xff]  }
  0x95   :  { %2803 = vmatprep.subr.bf16.mxu1 %v3389_v0  ;;  %2807 = vmatprep.mubr.msk.bf16.mxu1 %vm3390_vm0, %v3389_v0  ;;  %v3392_v2 = vmov 1983009808   ;;  %v2981_v5 = vld [vmem:[#allocation6 + $0x4] ss:$8 sps:$4 sm:$0xff]   ;;  %v2984_v9 = vld [vmem:[#allocation6] ss:$8 sps:$4 sm:$0xff]  }
  0x96   :  { %265 = vmatprep.mubr.bf16.mxu0 %v3391_v1  ;;  %2980 = vset.pattern.permute.xlu0 %v3391_v1  ;;  %v159_v3 = vunpack.c.l.s4 %v3392_v2  ;;  %v3567_v7 = vshrl.u32 %v161_v4, 7  ;;  %v2985_v10 = vld [vmem:[#allocation6 + $0x14] ss:$8 sps:$4 sm:$0xff]   ;;  %v2987_v11 = vld [vmem:[#allocation8 + $0x8] sm:$0xff]   ;;  %v2988_v12 = vld [vmem:[#allocation6 + $0x10] ss:$8 sps:$4 sm:$0xff]  }
  0x97   :  { %2979 = vset.pattern.permute.xlu1 %v3391_v1  ;;  %233 = vmatprep.subr.bf16.mxu0 %v2981_v5  ;;  %v140_v13 = vld [vmem:[#allocation3] sm:$0x3]  ;;  %v141_v15 = vld [vmem:[#allocation3 + $0x2] sm:$0x3]  ;;  %v142_v16 = vld [vmem:[#allocation3 + $0x4] sm:$0x3] }
  0x98   :  { %v160_v6 = vunpack.c.0.s8 %v159_v3  ;;  %2804 = vmatpush3.bf16.msra.mxu1 %v2983_v8  ;;  %234 = vmatpush1.bf16.msra.mxu0 %v2984_v9  ;;  %v143_v17 = vld [vmem:[#allocation3 + $0x6] sm:$0x3]  ;;  %v144_v18 = vld [vmem:[#allocation3 + $0x8] sm:$0x3]  ;;  %v145_v19 = vld [vmem:[#allocation3 + $0xa] sm:$0x3]  ;;  %v156_v21 = vcombine.low %v140_v13, %v141_v15 }
  0x99   :  { %2805 = vmatprep.subr.bf16.mxu1 %v3389_v0  ;;  %235 = vmatprep.subr.bf16.mxu0 %v2985_v10  ;;  %v146_v20 = vld [vmem:[#allocation3 + $0xc] sm:$0x3]  ;;  %v157_v22 = vcombine.low %v142_v16, %v143_v17  ;;  %v147_v23 = vld [vmem:[#allocation3 + $0xe] sm:$0x3]  ;;  %v173_v24 = vcombine.low %v144_v18, %v145_v19  ;;  %vm229_vm1 = vcmask 261120   ;;  %v201_v34 = vsub.s32 0, %v3567_v7 }
  0x9a   :  { %v3571_v14 = vsub.s32 %v160_v6, %v3567_v7  ;;  %v174_v27 = vcombine.low %v146_v20, %v147_v23  ;;  %v3585_v33 = vld [vmem:[#allocation9] ss:$0 sm:$0xff]  ;;  %v197_v36 = vld [vmem:[%s4066_s2] sm:$0x3]  ;;  %v205_v37 = vsub.s32 1, %v3567_v7  ;;  %v2990_v6 = vld [vmem:[#allocation8 + $0x8] sm:$0xff]  }
  0x9b   :  { %v202_v41 = vrot.slane %v197_v36, %v201_v34  ;;  %v2989_v5 = vld [vmem:[#allocation8] sm:$0xff]   ;;  %s3393_s2 = smov 96   ;;  %v2991_v9 = vld [vmem:[#allocation11] sm:$0xff]   ;;  %vm542_vm2 = vcmask 254976   ;;  %vm556_vm3 = vcmask 517376   ;;  %vm2329_vm4 = vcmask 523264  }
  0x9c   :  { %2806 = vmatpush3.bf16.msra.mxu1 %v2987_v11  ;;  %236 = vmatpush1.bf16.msra.mxu0 %v2988_v12  ;;  %v164_v25 = vrot.slane %v156_v21, %v3571_v14  ;;  %v171_v26 = vrot.slane %v157_v22, %v3571_v14  ;;  %v181_v28 = vrot.slane %v173_v24, %v3571_v14  ;;  %v2992_v10 = vld [vmem:[#allocation11 + $0x8] sm:$0xff]   ;;  %v3641_v34 = vld [vmem:[#allocation12] ss:$0 sm:$0xff]  ;;  %vm2453_vm5 = vcmask 7168  }
  0x9d   :  { %2819 = vmatprep.subr.bf16.mxu1 %v3389_v0  ;;  %2811 = vmatprep.subr.bf16.mxu0 %v3389_v0  ;;  %v188_v30 = vrot.slane %v174_v27, %v3571_v14  ;;  %v206_v44 = vrot.slane %v197_v36, %v205_v37  ;;  %vm2525_vm6 = vcmask 517120   ;;  %vm2605_vm7 = vcmask 1041408  }
  0x9e   :  { %v172_v29 = vcombine.low %v164_v25, %v171_v26 }
  0x9f   :  { %2808 = vmatmul.mubr.bf16.vlgmr.msra.gmra.mrb[0].mxu1 %v3391_v1  ;;  %v189_v31 = vcombine.low %v181_v28, %v188_v30 }
  0xa0   :  { %2823 = vmatprep.mubr.msk.bf16.mxu1 %vm3390_vm0, %v3389_v0  ;;  %2820 = vmatpush3.bf16.msra.mxu1 %v2989_v5 }
  0xa1   :  { %v192_v32 = vpack.c.bf16 %v189_v31, %v172_v29  ;;  %2821 = vmatprep.subr.bf16.mxu1 %v3389_v0 }
  0xa3   :  { %2647 = vmatmul.mubr.msk.bf16.vlgmr.msra.gmra.mrb[0].mxu0 %vm229_vm1, %v192_v32 }
  0xa4   :  { %2815 = vmatprep.mubr.msk.bf16.mxu0 %vm3390_vm0, %v3389_v0  ;;  %2822 = vmatpush3.bf16.msra.mxu1 %v2990_v6  ;;  %v2995_v6 = vld [vmem:[#allocation11] sm:$0xff]  }
  0xa5   :  { %2835 = vmatprep.subr.bf16.mxu1 %v3389_v0  ;;  %2812 = vmatpush3.bf16.msra.mxu0 %v2991_v9 }
  0xa6   :  { %2813 = vmatprep.subr.bf16.mxu0 %v3389_v0 }
  0xa9   :  { %2814 = vmatpush3.bf16.msra.mxu0 %v2992_v10 }
  0xaa   :  { %2827 = vmatprep.subr.bf16.mxu0 %v3389_v0 }
  0xac   :  { %2816 = vmatmul.mubr.bf16.vlgmr.msra.gmra.mrb[4].mxu0 %v3391_v1 }
  0xad   :  { %2831 = vmatprep.mubr.msk.bf16.mxu0 %vm3390_vm0, %v3389_v0  ;;  %2828 = vmatpush3.bf16.msra.mxu0 %v2995_v6  ;;  %v2997_v6 = vld [vmem:[#allocation11] sm:$0xff]  }
  0xae   :  { %2829 = vmatprep.subr.bf16.mxu0 %v3389_v0 }
 0x172   :  { %v384_v35 = vpop.f32.mrb[0].mxu1 }
 0x173   :  { %v385_v38 = vadd.f32 %v3585_v33, %v384_v35  ;;  %v2809_v39 = vpop.f32.mrb[1].mxu1 }
 0x174   :  { %v387_v40 = vpop.f32.mrb[2].mxu1 }
 0x175   :  { %v2810_v42 = vpop.f32.mrb[3].mxu1  ;;  %v467_v43 = vrot.slane %v385_v38, %v3571_v14 }
 0x176   :  { %v267_v45 = vpop.f32.mrb[0].mxu0 }
 0x177   :  { %468 = vrot.lane.b32.xlu0 %v467_v43, %s3384_s0  ;;  %v3595_v46 = vadd.f32 %v267_v45, %v202_v41  ;;  %v269_v47 = vpop.f32.mrb[1].mxu0 }
 0x178   :  { %v3597_v48 = vadd.f32 %v269_v47, %v206_v44  ;;  %v271_v49 = vpop.f32.mrb[2].mxu0 }
 0x179   :  { %v3599_v50 = vadd.f32 %v271_v49, %v202_v41  ;;  %v273_v51 = vpop.f32.mrb[3].mxu0 }
 0x17a   :  { %v280_v52 = vcombine.low %v3595_v46, %v3597_v48  ;;  %v281_v53 = vcombine.high %v3595_v46, %v3597_v48  ;;  %v3605_v54 = vadd.f32 %v273_v51, %v206_v44 }
 0x17c   :  { %v298_v55 = vcombine.low %v3599_v50, %v3605_v54  ;;  %v299_v56 = vcombine.high %v3599_v50, %v3605_v54  ;;  %v3612_v57 = vrot.slane %v280_v52, %v3571_v14 }
 0x17e   :  { %v453_v58 = vadd.f32 %v385_v38, %v3612_v57  ;;  %v3638_v28 = vcombine.high %v3612_v57, %v3612_v57  ;;  %v3652_v40 = vrot.slane %v299_v56, %v3571_v14  ;;  %v2993_v56 = vld [vmem:[#allocation8] sm:$0xff]  }
 0x17f   :  { %v447_v19 = vpop.f32.mrb[4].mxu0 }
 0x180   :  { %v2654_v59 = vmul.f32 -1.442695, %v453_v58  ;;  %v2817_v20 = vpop.f32.mrb[5].mxu0  ;;  %v448_v35 = vadd.f32 %v3641_v34, %v447_v19  ;;  %v3657_v43 = vcombine.high %v3652_v40, %v3652_v40  ;;  %v2994_v58 = vld [vmem:[#allocation8 + $0x8] sm:$0xff]  }
 0x181   :  { %v450_v21 = vpop.f32.mrb[6].mxu0 }
 0x182   :  { %3027 = vpow2.f32 %v2654_v59  ;;  %v2818_v22 = vpop.f32.mrb[7].mxu0  ;;  %v493_v39 = vrot.slane %v448_v35, %v3571_v14  ;;  %v504_v9 = vrot.slane %v3657_v43, 2 }
 0x18c   :  { %v3028_v60 = vpop.eup %3027 }
 0x18d   :  { %v457_v61 = vadd.f32 1.0, %v3028_v60 }
 0x18f   :  { %3029 = vrcp.f32 %v457_v61 }
 0x199   :  { %v3030_v62 = vpop.eup %3029 }
 0x19a   :  { %v478_v11 = vsub.f32 1.0, %v3030_v62  ;;  %v484_v13 = vmul.f32 0.0, %v3030_v62 }
 0x1e9   :  { %v469_v63 = vpop.permute.xlu0 %468 }
 0x1ea   :  { %v471_v2 = vmul.f32 %v3030_v62, %v469_v63 }
 0x1ec   :  { %473 = vrot.lane.b32.xlu0 %v471_v2, %s3384_s0 }
 0x25e   :  { %v474_v3 = vpop.permute.xlu0 %473 }
 0x25f   :  { %v476_v4 = vadd.f32 %v474_v3, %v3612_v57 }
 0x261   :  { %3031 = vtanh.f32 %v476_v4 }
 0x26b   :  { %v3032_v8 = vpop.eup %3031 }
 0x26c   :  { %480 = vrot.lane.b32.xlu1 %v3032_v8, %s3393_s2  ;;  %v2996_v8 = vld [vmem:[#allocation11 + $0x8] sm:$0xff]  }
 0x26d   :  { %2830 = vmatpush3.bf16.msra.mxu0 %v2996_v8  ;;  %v2998_v8 = vld [vmem:[#allocation11 + $0x8] sm:$0xff]  }
 0x26e   :  { %2843 = vmatprep.subr.bf16.mxu0 %v3389_v0 }
 0x2de   :  { %v481_v12 = vpop.permute.xlu1 %480 }
 0x2df   :  { %v483_v15 = vmul.f32 %v481_v12, %v478_v11 }
 0x2e1   :  { %v3622_v16 = vadd.f32 %v484_v13, %v483_v15 }
 0x2e3   :  { %v558_v17 = vpack.c.bf16 %v3622_v16, %v3622_v16 }
 0x2e5   :  { %571 = vrot.lane.b32.xlu1 %v558_v17, %s3393_s2 }
 0x357   :  { %v572_v18 = vpop.permute.xlu1 %571 }
 0x358   :  { %2824 = vmatmul.mubr.msk.bf16.vlgmr.msra.gmra.mrb[4].mxu1 %vm229_vm1, %v572_v18 }
 0x359   :  { %2839 = vmatprep.mubr.msk.bf16.mxu1 %vm3390_vm0, %v3389_v0  ;;  %2836 = vmatpush3.bf16.msra.mxu1 %v2993_v56 }
 0x35a   :  { %2837 = vmatprep.subr.bf16.mxu1 %v3389_v0 }
 0x35d   :  { %2838 = vmatpush3.bf16.msra.mxu1 %v2994_v58 }
 0x35e   :  { %2851 = vmatprep.subr.bf16.mxu1 %v3389_v0 }
 0x42b   :  { %v622_v23 = vpop.f32.mrb[4].mxu1 }
 0x42c   :  { %v623_v1 = vadd.f32 %v3585_v33, %v622_v23  ;;  %v2825_v24 = vpop.f32.mrb[5].mxu1 }
 0x42d   :  { %v625_v25 = vpop.f32.mrb[6].mxu1 }
 0x42e   :  { %v2826_v26 = vpop.f32.mrb[7].mxu1  ;;  %v709_v27 = vrot.slane %v623_v1, %v3571_v14  ;;  %v695_v29 = vadd.f32 %v623_v1, %v3638_v28 }
 0x430   :  { %710 = vrot.lane.b32.xlu0 %v709_v27, %s3384_s0  ;;  %v2665_v30 = vmul.f32 -1.442695, %v695_v29 }
 0x432   :  { %3033 = vpow2.f32 %v2665_v30 }
 0x43c   :  { %v3034_v31 = vpop.eup %3033 }
 0x43d   :  { %v699_v32 = vadd.f32 1.0, %v3034_v31 }
 0x43f   :  { %3035 = vrcp.f32 %v699_v32 }
 0x449   :  { %v3036_v36 = vpop.eup %3035 }
 0x44a   :  { %v720_v62 = vsub.f32 1.0, %v3036_v36  ;;  %v726_v2 = vmul.f32 %v3036_v36, %v3622_v16 }
 0x4a2   :  { %v711_v37 = vpop.permute.xlu0 %710 }
 0x4a3   :  { %v713_v38 = vmul.f32 %v3036_v36, %v711_v37 }
 0x4a5   :  { %715 = vrot.lane.b32.xlu1 %v713_v38, %s3384_s0 }
 0x4a9   :  { %494 = vrot.lane.b32.xlu1 %v493_v39, %s3393_s2 }
 0x4ad   :  { %513 = vrot.lane.b32.xlu1 %v493_v39, %s3381_s6 }
 0x517   :  { %v716_v41 = vpop.permute.xlu1 %715 }
 0x518   :  { %v718_v42 = vadd.f32 %v716_v41, %v3638_v28 }
 0x51a   :  { %3037 = vtanh.f32 %v718_v42 }
 0x51b   :  { %v495_v44 = vpop.permute.xlu1 %494 }
 0x51c   :  { %v497_v45 = vadd.f32 %v495_v44, %v3657_v43  ;;  %v506_v10 = vadd.f32 %v504_v9, %v495_v44  ;;  %v3695_v44 = vrot.slane %v281_v53, %v3571_v14  ;;  %v2999_v9 = vld [vmem:[#allocation8] sm:$0xff]  }
 0x51e   :  { %v2655_v47 = vmul.f32 -1.442695, %v497_v45  ;;  %v2656_v11 = vmul.f32 -1.442695, %v506_v10  ;;  %v3000_v10 = vld [vmem:[#allocation8 + $0x8] sm:$0xff]  }
 0x51f   :  { %v514_v59 = vpop.permute.xlu1 %513 }
 0x520   :  { %3039 = vpow2.f32 %v2655_v47 }
 0x524   :  { %v3038_v49 = vpop.eup %3037 }
 0x525   :  { %722 = vrot.lane.b32.xlu0 %v3038_v49, %s3393_s2 }
 0x52a   :  { %v3040_v51 = vpop.eup %3039 }
 0x52b   :  { %v501_v52 = vadd.f32 1.0, %v3040_v51 }
 0x52d   :  { %3041 = vrcp.f32 %v501_v52 }
 0x52e   :  { %3043 = vpow2.f32 %v2656_v11  ;;  %v746_v11 = vrot.slane %v3652_v40, 2 }
 0x537   :  { %v3042_v60 = vpop.eup %3041 }
 0x538   :  { %v516_v61 = vmul.f32 %v3042_v60, %v514_v59  ;;  %v3044_v12 = vpop.eup %3043 }
 0x539   :  { %v510_v15 = vadd.f32 1.0, %v3044_v12 }
 0x53a   :  { %522 = vrot.lane.b32.xlu1 %v516_v61, %s3381_s6 }
 0x53b   :  { %3045 = vrcp.f32 %v510_v15 }
 0x545   :  { %v3046_v21 = vpop.eup %3045 }
 0x546   :  { %v527_v22 = vsub.f32 1.0, %v3046_v21  ;;  %v529_v1 = vmul.f32 0.0, %v3046_v21 }
 0x597   :  { %v723_v63 = vpop.permute.xlu0 %722 }
 0x598   :  { %v725_v3 = vmul.f32 %v723_v63, %v720_v62 }
 0x59a   :  { %v3665_v4 = vadd.f32 %v726_v2, %v725_v3 }
 0x59c   :  { %v799_v5 = vpack.c.bf16 %v3665_v4, %v3665_v4 }
 0x59e   :  { %812 = vrot.lane.b32.xlu0 %v799_v5, %s3393_s2 }
 0x5a2   :  { %517 = vrot.lane.b32.xlu0 %v3657_v43, %s3393_s2 }
 0x5ac   :  { %v523_v19 = vpop.permute.xlu1 %522 }
 0x610   :  { %v813_v13 = vpop.permute.xlu0 %812 }
 0x611   :  { %2840 = vmatmul.mubr.msk.bf16.vlgmr.msra.gmra.mrb[8].mxu1 %vm229_vm1, %v813_v13 }
 0x612   :  { %2855 = vmatprep.mubr.msk.bf16.mxu1 %vm3390_vm0, %v3389_v0  ;;  %2852 = vmatpush3.bf16.msra.mxu1 %v2999_v9 }
 0x613   :  { %2853 = vmatprep.subr.bf16.mxu1 %v3389_v0 }
 0x614   :  { %v518_v17 = vpop.permute.xlu0 %517 }
 0x615   :  { %v519_v18 = vrot.slane %v518_v17, 2 }
 0x616   :  { %2854 = vmatpush3.bf16.msra.mxu1 %v3000_v10 }
 0x617   :  { %v525_v20 = vadd.f32 %v523_v19, %v519_v18  ;;  %2867 = vmatprep.subr.bf16.mxu1 %v3389_v0 }
 0x619   :  { %3047 = vtanh.f32 %v525_v20 }
 0x623   :  { %v3048_v23 = vpop.eup %3047 }
 0x624   :  { %v528_v24 = vmul.f32 %v3048_v23, %v527_v22 }
 0x626   :  { %v3678_v25 = vadd.f32 %v529_v1, %v528_v24 }
 0x628   :  { %v628_v26 = vpack.c.bf16 %v3678_v25, %v3678_v25 }
 0x62a   :  { %2832 = vmatmul.mubr.msk.bf16.vlgmr.msra.gmra.mrb[8].mxu0 %vm229_vm1, %v628_v26 }
 0x62b   :  { %2847 = vmatprep.mubr.msk.bf16.mxu0 %vm3390_vm0, %v3389_v0  ;;  %2844 = vmatpush3.bf16.msra.mxu0 %v2997_v6 }
 0x62c   :  { %2845 = vmatprep.subr.bf16.mxu0 %v3389_v0 }
 0x62f   :  { %2846 = vmatpush3.bf16.msra.mxu0 %v2998_v8 }
 0x630   :  { %2859 = vmatprep.subr.bf16.mxu0 %v3389_v0 }
 0x6e4   :  { %v863_v27 = vpop.f32.mrb[8].mxu1 }
 0x6e5   :  { %v864_v29 = vadd.f32 %v3585_v33, %v863_v27  ;;  %v2841_v30 = vpop.f32.mrb[9].mxu1 }
 0x6e6   :  { %v866_v31 = vpop.f32.mrb[10].mxu1 }
 0x6e7   :  { %v2842_v32 = vpop.f32.mrb[11].mxu1  ;;  %v950_v35 = vrot.slane %v864_v29, %v3571_v14  ;;  %v936_v45 = vadd.f32 %v864_v29, %v3695_v44 }
 0x6e9   :  { %951 = vrot.lane.b32.xlu0 %v950_v35, %s3384_s0  ;;  %v2676_v47 = vmul.f32 -1.442695, %v936_v45 }
 0x6eb   :  { %3049 = vpow2.f32 %v2676_v47 }
 0x6f5   :  { %v3050_v49 = vpop.eup %3049 }
 0x6f6   :  { %v940_v51 = vadd.f32 1.0, %v3050_v49 }
 0x6f8   :  { %3051 = vrcp.f32 %v940_v51 }
 0x6fd   :  { %v689_v36 = vpop.f32.mrb[8].mxu0 }
 0x6fe   :  { %v690_v37 = vadd.f32 %v3641_v34, %v689_v36  ;;  %v2833_v38 = vpop.f32.mrb[9].mxu0 }
 0x6ff   :  { %v692_v39 = vpop.f32.mrb[10].mxu0 }
 0x700   :  { %v735_v41 = vrot.slane %v690_v37, %v3571_v14  ;;  %v2834_v42 = vpop.f32.mrb[11].mxu0 }
 0x702   :  { %736 = vrot.lane.b32.xlu0 %v735_v41, %s3393_s2  ;;  %v3052_v52 = vpop.eup %3051 }
 0x703   :  { %v961_v18 = vsub.f32 1.0, %v3052_v52  ;;  %v967_v21 = vmul.f32 %v3052_v52, %v3665_v4 }
 0x75b   :  { %v952_v56 = vpop.permute.xlu0 %951 }
 0x75c   :  { %v954_v58 = vmul.f32 %v3052_v52, %v952_v56 }
 0x75e   :  { %956 = vrot.lane.b32.xlu1 %v954_v58, %s3384_s0 }
 0x762   :  { %755 = vrot.lane.b32.xlu1 %v735_v41, %s3381_s6 }
 0x766   :  { %759 = vrot.lane.b32.xlu1 %v3652_v40, %s3393_s2 }
 0x774   :  { %v737_v46 = vpop.permute.xlu0 %736 }
 0x775   :  { %v739_v48 = vadd.f32 %v737_v46, %v3652_v40  ;;  %v748_v12 = vadd.f32 %v746_v11, %v737_v46 }
 0x777   :  { %v2666_v53 = vmul.f32 -1.442695, %v739_v48  ;;  %v2667_v13 = vmul.f32 -1.442695, %v748_v12 }
 0x779   :  { %3053 = vpow2.f32 %v2666_v53  ;;  %v3738_v53 = vrot.slane %v298_v55, %v3571_v14 }
 0x783   :  { %v3054_v59 = vpop.eup %3053 }
 0x784   :  { %v743_v61 = vadd.f32 1.0, %v3054_v59  ;;  %v3743_v59 = vcombine.high %v3738_v53, %v3738_v53 }
 0x7d0   :  { %v957_v60 = vpop.permute.xlu1 %956 }
 0x7d1   :  { %v959_v62 = vadd.f32 %v957_v60, %v3695_v44  ;;  %v3749_v60 = vcombine.high %v3695_v44, %v3695_v44 }
 0x7d3   :  { %3055 = vtanh.f32 %v959_v62 }
 0x7d4   :  { %3057 = vrcp.f32 %v743_v61  ;;  %v756_v2 = vpop.permute.xlu1 %755 }
 0x7d5   :  { %3059 = vpow2.f32 %v2667_v13  ;;  %v3001_v13 = vld [vmem:[#allocation11] sm:$0xff]  }
 0x7d8   :  { %v760_v19 = vpop.permute.xlu1 %759 }
 0x7d9   :  { %v761_v23 = vrot.slane %v760_v19, 2 }
 0x7dd   :  { %v3056_v63 = vpop.eup %3055 }
 0x7de   :  { %963 = vrot.lane.b32.xlu0 %v3056_v63, %s3393_s2  ;;  %v3058_v3 = vpop.eup %3057 }
 0x7df   :  { %v758_v5 = vmul.f32 %v3058_v3, %v756_v2  ;;  %v3060_v15 = vpop.eup %3059 }
 0x7e0   :  { %v752_v17 = vadd.f32 1.0, %v3060_v15  ;;  %v3002_v15 = vld [vmem:[#allocation11 + $0x8] sm:$0xff]  }
 0x7e2   :  { %764 = vrot.lane.b32.xlu0 %v758_v5, %s3381_s6  ;;  %3061 = vrcp.f32 %v752_v17  ;;  %v987_v17 = vrot.slane %v3743_v59, 2 }
 0x7ec   :  { %v3062_v29 = vpop.eup %3061 }
 0x7ed   :  { %v769_v30 = vsub.f32 1.0, %v3062_v29  ;;  %v771_v32 = vmul.f32 %v3062_v29, %v3678_v25 }
 0x850   :  { %v964_v20 = vpop.permute.xlu0 %963 }
 0x851   :  { %v966_v22 = vmul.f32 %v964_v20, %v961_v18 }
 0x853   :  { %v3712_v1 = vadd.f32 %v967_v21, %v966_v22 }
 0x854   :  { %v765_v24 = vpop.permute.xlu0 %764 }
 0x855   :  { %v767_v26 = vadd.f32 %v765_v24, %v761_v23  ;;  %v1040_v27 = vpack.c.bf16 %v3712_v1, %v3712_v1 }
 0x857   :  { %3063 = vtanh.f32 %v767_v26  ;;  %1053 = vrot.lane.b32.xlu1 %v1040_v27, %s3393_s2 }
 0x861   :  { %v3064_v31 = vpop.eup %3063 }
 0x862   :  { %v770_v35 = vmul.f32 %v3064_v31, %v769_v30 }
 0x864   :  { %v3718_v36 = vadd.f32 %v771_v32, %v770_v35 }
 0x866   :  { %v869_v37 = vpack.c.bf16 %v3718_v36, %v3718_v36 }
 0x868   :  { %2848 = vmatmul.mubr.msk.bf16.vlgmr.msra.gmra.mrb[12].mxu0 %vm229_vm1, %v869_v37 }
 0x869   :  { %2863 = vmatprep.mubr.msk.bf16.mxu0 %vm3390_vm0, %v3389_v0  ;;  %2860 = vmatpush3.bf16.msra.mxu0 %v3001_v13 }
 0x86a   :  { %2861 = vmatprep.subr.bf16.mxu0 %v3389_v0 }
 0x86d   :  { %2862 = vmatpush3.bf16.msra.mxu0 %v3002_v15 }
 0x86e   :  { %2875 = vmatprep.subr.bf16.mxu0 %v3389_v0 }
 0x8c9   :  { %v1054_v38 = vpop.permute.xlu1 %1053 }
 0x8ca   :  { %2856 = vmatmul.mubr.msk.bf16.vlgmr.msra.gmra.mrb[12].mxu1 %vm229_vm1, %v1054_v38 }
 0x8cb   :  { %2871 = vmatprep.mubr.msk.bf16.mxu1 %vm3390_vm0, %v3389_v0 }
 0x93b   :  { %v930_v39 = vpop.f32.mrb[12].mxu0 }
 0x93c   :  { %v931_v41 = vadd.f32 %v3641_v34, %v930_v39  ;;  %v2849_v42 = vpop.f32.mrb[13].mxu0 }
 0x93d   :  { %v933_v45 = vpop.f32.mrb[14].mxu0  ;;  %v3003_v42 = vld [vmem:[#allocation8] sm:$0xff]  }
 0x93e   :  { %v976_v47 = vrot.slane %v931_v41, %v3571_v14  ;;  %v2850_v49 = vpop.f32.mrb[15].mxu0  ;;  %2868 = vmatpush3.bf16.msra.mxu1 %v3003_v42  ;;  %v3004_v45 = vld [vmem:[#allocation8 + $0x8] sm:$0xff]  }
 0x93f   :  { %2869 = vmatprep.subr.bf16.mxu1 %v3389_v0 }
 0x940   :  { %977 = vrot.lane.b32.xlu1 %v976_v47, %s3393_s2 }
 0x942   :  { %2870 = vmatpush3.bf16.msra.mxu1 %v3004_v45 }
 0x943   :  { %2883 = vmatprep.subr.bf16.mxu1 %v3389_v0 }
 0x99d   :  { %v1104_v51 = vpop.f32.mrb[12].mxu1 }
 0x99e   :  { %v1105_v52 = vadd.f32 %v3585_v33, %v1104_v51  ;;  %v2857_v56 = vpop.f32.mrb[13].mxu1 }
 0x99f   :  { %v1107_v58 = vpop.f32.mrb[14].mxu1 }
 0x9a0   :  { %v2858_v46 = vpop.f32.mrb[15].mxu1  ;;  %v1191_v48 = vrot.slane %v1105_v52, %v3571_v14  ;;  %v1177_v61 = vadd.f32 %v1105_v52, %v3749_v60 }
 0x9a2   :  { %1192 = vrot.lane.b32.xlu0 %v1191_v48, %s3384_s0  ;;  %v2687_v63 = vmul.f32 -1.442695, %v1177_v61 }
 0x9a4   :  { %3065 = vpow2.f32 %v2687_v63 }
 0x9a6   :  { %996 = vrot.lane.b32.xlu0 %v976_v47, %s3381_s6 }
 0x9aa   :  { %1000 = vrot.lane.b32.xlu0 %v3743_v59, %s3393_s2 }
 0x9ae   :  { %v3066_v55 = vpop.eup %3065 }
 0x9af   :  { %v1181_v2 = vadd.f32 1.0, %v3066_v55 }
 0x9b2   :  { %v978_v62 = vpop.permute.xlu1 %977 }
 0x9b3   :  { %v980_v50 = vadd.f32 %v978_v62, %v3743_v59  ;;  %v989_v18 = vadd.f32 %v987_v17, %v978_v62 }
 0x9b5   :  { %v2677_v54 = vmul.f32 -1.442695, %v980_v50  ;;  %v2678_v19 = vmul.f32 -1.442695, %v989_v18 }
 0x9b7   :  { %3067 = vpow2.f32 %v2677_v54 }
 0x9b8   :  { %3069 = vrcp.f32 %v1181_v2 }
 0x9c1   :  { %v3068_v3 = vpop.eup %3067 }
 0x9c2   :  { %v984_v5 = vadd.f32 1.0, %v3068_v3  ;;  %v3070_v6 = vpop.eup %3069 }
 0x9c3   :  { %v1202_v47 = vsub.f32 1.0, %v3070_v6  ;;  %v1208_v51 = vmul.f32 %v3070_v6, %v3712_v1 }
 0x9c4   :  { %3071 = vrcp.f32 %v984_v5 }
 0x9c5   :  { %3073 = vpow2.f32 %v2678_v19 }
 0x9ce   :  { %v3072_v10 = vpop.eup %3071 }
 0x9cf   :  { %v3074_v20 = vpop.eup %3073 }
 0x9d0   :  { %v993_v21 = vadd.f32 1.0, %v3074_v20 }
 0x9d2   :  { %3075 = vrcp.f32 %v993_v21  ;;  %v1228_v21 = vrot.slane %v3738_v53, 2 }
 0x9dc   :  { %v3076_v30 = vpop.eup %3075 }
 0x9dd   :  { %v1010_v32 = vsub.f32 1.0, %v3076_v30  ;;  %v1012_v37 = vmul.f32 %v3076_v30, %v3718_v36 }
 0xa14   :  { %v1193_v8 = vpop.permute.xlu0 %1192 }
 0xa15   :  { %v1195_v9 = vmul.f32 %v3070_v6, %v1193_v8 }
 0xa17   :  { %1197 = vrot.lane.b32.xlu1 %v1195_v9, %s3384_s0 }
 0xa18   :  { %v997_v11 = vpop.permute.xlu0 %996 }
 0xa19   :  { %v999_v12 = vmul.f32 %v3072_v10, %v997_v11  ;;  %v3005_v11 = vld [vmem:[#allocation11] sm:$0xff]  }
 0xa1b   :  { %1005 = vrot.lane.b32.xlu1 %v999_v12, %s3381_s6  ;;  %v3006_v12 = vld [vmem:[#allocation11 + $0x8] sm:$0xff]  }
 0xa1c   :  { %v1001_v22 = vpop.permute.xlu0 %1000 }
 0xa1d   :  { %v1002_v26 = vrot.slane %v1001_v22, 2 }
 0xa89   :  { %v1198_v23 = vpop.permute.xlu1 %1197 }
 0xa8a   :  { %v1200_v24 = vadd.f32 %v1198_v23, %v3749_v60 }
 0xa8c   :  { %3077 = vtanh.f32 %v1200_v24 }
 0xa8d   :  { %v1006_v27 = vpop.permute.xlu1 %1005 }
 0xa8e   :  { %v1008_v29 = vadd.f32 %v1006_v27, %v1002_v26 }
 0xa90   :  { %3079 = vtanh.f32 %v1008_v29 }
 0xa96   :  { %v3078_v31 = vpop.eup %3077 }
 0xa97   :  { %1204 = vrot.lane.b32.xlu0 %v3078_v31, %s3393_s2 }
 0xa9a   :  { %v3080_v35 = vpop.eup %3079 }
 0xa9b   :  { %v1011_v38 = vmul.f32 %v3080_v35, %v1010_v32 }
 0xa9d   :  { %v3761_v39 = vadd.f32 %v1012_v37, %v1011_v38 }
 0xa9f   :  { %v1110_v41 = vpack.c.bf16 %v3761_v39, %v3761_v39 }
 0xaa1   :  { %2864 = vmatmul.mubr.msk.bf16.vlgmr.msra.gmra.mrb[16].mxu0 %vm229_vm1, %v1110_v41 }
 0xaa2   :  { %2879 = vmatprep.mubr.msk.bf16.mxu0 %vm3390_vm0, %v3389_v0  ;;  %2876 = vmatpush3.bf16.msra.mxu0 %v3005_v11 }
 0xaa3   :  { %2877 = vmatprep.subr.bf16.mxu0 %v3389_v0 }
 0xaa6   :  { %2878 = vmatpush3.bf16.msra.mxu0 %v3006_v12 }
 0xaa7   :  { %2891 = vmatprep.subr.bf16.mxu0 %v3389_v0 }
 0xb09   :  { %v1205_v49 = vpop.permute.xlu0 %1204 }
 0xb0a   :  { %v1207_v52 = vmul.f32 %v1205_v49, %v1202_v47 }
 0xb0c   :  { %v3771_v56 = vadd.f32 %v1208_v51, %v1207_v52 }
 0xb0e   :  { %v1281_v58 = vpack.c.bf16 %v3771_v56, %v3771_v56 }
 0xb10   :  { %1294 = vrot.lane.b32.xlu1 %v1281_v58, %s3393_s2 }
 0xb74   :  { %v1171_v46 = vpop.f32.mrb[16].mxu0 }
 0xb75   :  { %v1172_v48 = vadd.f32 %v3641_v34, %v1171_v46  ;;  %v2865_v61 = vpop.f32.mrb[17].mxu0 }
 0xb76   :  { %v1174_v62 = vpop.f32.mrb[18].mxu0 }
 0xb77   :  { %v2866_v63 = vpop.f32.mrb[19].mxu0  ;;  %v1217_v50 = vrot.slane %v1172_v48, %v3571_v14 }
 0xb79   :  { %1237 = vrot.lane.b32.xlu1 %v1217_v50, %s3381_s6  ;;  %1218 = vrot.lane.b32.xlu0 %v1217_v50, %s3393_s2 }
 0xb7d   :  { %1241 = vrot.lane.b32.xlu0 %v3738_v53, %s3393_s2 }
 0xb82   :  { %v1295_v54 = vpop.permute.xlu1 %1294 }
 0xb83   :  { %2872 = vmatmul.mubr.msk.bf16.vlgmr.msra.gmra.mrb[16].mxu1 %vm229_vm1, %v1295_v54 }
 0xb84   :  { %2887 = vmatprep.mubr.msk.bf16.mxu1 %vm3390_vm0, %v3389_v0 }
 0xbeb   :  { %v1219_v55 = vpop.permute.xlu0 %1218  ;;  %v1238_v9 = vpop.permute.xlu1 %1237 }
 0xbec   :  { %v1221_v2 = vadd.f32 %v1219_v55, %v3738_v53  ;;  %v1230_v22 = vadd.f32 %v1228_v21, %v1219_v55 }
 0xbee   :  { %v2688_v3 = vmul.f32 -1.442695, %v1221_v2  ;;  %v2689_v23 = vmul.f32 -1.442695, %v1230_v22 }
 0xbef   :  { %v1242_v27 = vpop.permute.xlu0 %1241 }
 0xbf0   :  { %3081 = vpow2.f32 %v2688_v3  ;;  %v1243_v29 = vrot.slane %v1242_v27, 2  ;;  %v3010_v27 = vld [vmem:[#allocation11 + $0x8] sm:$0xff]  }
 0xbfa   :  { %v3082_v5 = vpop.eup %3081 }
 0xbfb   :  { %v1225_v6 = vadd.f32 1.0, %v3082_v5 }
 0xbfd   :  { %3083 = vrcp.f32 %v1225_v6  ;;  %v3007_v6 = vld [vmem:[#allocation8] sm:$0xff]  }
 0xbfe   :  { %3085 = vpow2.f32 %v2689_v23  ;;  %2884 = vmatpush3.bf16.msra.mxu1 %v3007_v6 }
 0xbff   :  { %2885 = vmatprep.subr.bf16.mxu1 %v3389_v0 }
 0xc07   :  { %v3084_v8 = vpop.eup %3083 }
 0xc08   :  { %v1240_v10 = vmul.f32 %v3084_v8, %v1238_v9  ;;  %v3086_v24 = vpop.eup %3085 }
 0xc09   :  { %v1234_v26 = vadd.f32 1.0, %v3086_v24 }
 0xc0a   :  { %1246 = vrot.lane.b32.xlu0 %v1240_v10, %s3381_s6 }
 0xc0b   :  { %3087 = vrcp.f32 %v1234_v26  ;;  %v3009_v26 = vld [vmem:[#allocation11] sm:$0xff]  }
 0xc15   :  { %v3088_v32 = vpop.eup %3087 }
 0xc16   :  { %v1251_v35 = vsub.f32 1.0, %v3088_v32  ;;  %v1253_v38 = vmul.f32 %v3088_v32, %v3761_v39 }
 0xc56   :  { %v1345_v13 = vpop.f32.mrb[16].mxu1 }
 0xc57   :  { %v1346_v15 = vadd.f32 %v3585_v33, %v1345_v13  ;;  %v2873_v17 = vpop.f32.mrb[17].mxu1 }
 0xc58   :  { %v1348_v18 = vpop.f32.mrb[18].mxu1 }
 0xc59   :  { %v2874_v19 = vpop.f32.mrb[19].mxu1  ;;  %v1432_v20 = vrot.slane %v1346_v15, %v3571_v14  ;;  %v1418_v47 = vadd.f32 %v1346_v15, %v3738_v53 }
 0xc5b   :  { %1433 = vrot.lane.b32.xlu1 %v1432_v20, %s3384_s0  ;;  %v2698_v49 = vmul.f32 -1.442695, %v1418_v47 }
 0xc7c   :  { %v1247_v30 = vpop.permute.xlu0 %1246 }
 0xc7d   :  { %v1249_v31 = vadd.f32 %v1247_v30, %v1243_v29  ;;  %v1469_v29 = vrot.slane %v3749_v60, 2 }
 0xc7f   :  { %3089 = vtanh.f32 %v1249_v31 }
 0xc80   :  { %3091 = vpow2.f32 %v2698_v49 }
 0xc89   :  { %v3090_v37 = vpop.eup %3089 }
 0xc8a   :  { %v1252_v41 = vmul.f32 %v3090_v37, %v1251_v35  ;;  %v3092_v51 = vpop.eup %3091 }
 0xc8b   :  { %v1422_v52 = vadd.f32 1.0, %v3092_v51 }
 0xc8c   :  { %v3794_v42 = vadd.f32 %v1253_v38, %v1252_v41 }
 0xc8d   :  { %3093 = vrcp.f32 %v1422_v52 }
 0xc8e   :  { %v1351_v45 = vpack.c.bf16 %v3794_v42, %v3794_v42 }
 0xc90   :  { %2880 = vmatmul.mubr.msk.bf16.vlgmr.msra.gmra.mrb[20].mxu0 %vm229_vm1, %v1351_v45 }
 0xc91   :  { %2895 = vmatprep.mubr.msk.bf16.mxu0 %vm3390_vm0, %v3389_v0  ;;  %2892 = vmatpush3.bf16.msra.mxu0 %v3009_v26 }
 0xc92   :  { %2893 = vmatprep.subr.bf16.mxu0 %v3389_v0 }
 0xc95   :  { %2894 = vmatpush3.bf16.msra.mxu0 %v3010_v27 }
 0xc96   :  { %2907 = vmatprep.subr.bf16.mxu0 %v3389_v0 }
 0xc97   :  { %v3094_v58 = vpop.eup %3093 }
 0xc98   :  { %v1443_v8 = vsub.f32 1.0, %v3094_v58  ;;  %v1449_v10 = vmul.f32 %v3094_v58, %v3771_v56 }
 0xccd   :  { %v1434_v46 = vpop.permute.xlu1 %1433 }
 0xcce   :  { %v1436_v48 = vmul.f32 %v3094_v58, %v1434_v46 }
 0xcd0   :  { %1438 = vrot.lane.b32.xlu1 %v1436_v48, %s3384_s0 }
 0xd42   :  { %v1439_v61 = vpop.permute.xlu1 %1438 }
 0xd43   :  { %v1441_v62 = vadd.f32 %v1439_v61, %v3738_v53  ;;  %v3008_v53 = vld [vmem:[#allocation8 + $0x8] sm:$0xff]  }
 0xd44   :  { %2886 = vmatpush3.bf16.msra.mxu1 %v3008_v53 }
 0xd45   :  { %3095 = vtanh.f32 %v1441_v62  ;;  %2899 = vmatprep.subr.bf16.mxu1 %v3389_v0 }
 0xd4f   :  { %v3096_v63 = vpop.eup %3095 }
 0xd50   :  { %1445 = vrot.lane.b32.xlu0 %v3096_v63, %s3393_s2 }
 0xd63   :  { %v1412_v50 = vpop.f32.mrb[20].mxu0 }
 0xd64   :  { %v1413_v54 = vadd.f32 %v3641_v34, %v1412_v50  ;;  %v2881_v55 = vpop.f32.mrb[21].mxu0 }
 0xd65   :  { %v1415_v2 = vpop.f32.mrb[22].mxu0 }
 0xd66   :  { %v1458_v3 = vrot.slane %v1413_v54, %v3571_v14  ;;  %v2882_v5 = vpop.f32.mrb[23].mxu0 }
 0xd68   :  { %1459 = vrot.lane.b32.xlu0 %v1458_v3, %s3393_s2 }
 0xd6c   :  { %1482 = vrot.lane.b32.xlu0 %v3749_v60, %s3393_s2 }
 0xdc2   :  { %v1446_v9 = vpop.permute.xlu0 %1445 }
 0xdc3   :  { %v1448_v11 = vmul.f32 %v1446_v9, %v1443_v8 }
 0xdc5   :  { %v3813_v12 = vadd.f32 %v1449_v10, %v1448_v11 }
 0xdc7   :  { %v1520_v13 = vpack.c.bf16 %v3813_v12, %v3813_v12 }
 0xdc9   :  { %1533 = vrot.lane.b32.xlu1 %v1520_v13, %s3393_s2 }
 0xdcd   :  { %1478 = vrot.lane.b32.xlu1 %v1458_v3, %s3381_s6 }
 0xdda   :  { %v1460_v15 = vpop.permute.xlu0 %1459 }
 0xddb   :  { %v1462_v17 = vadd.f32 %v1460_v15, %v3749_v60  ;;  %v1471_v30 = vadd.f32 %v1469_v29, %v1460_v15 }
 0xddd   :  { %v2699_v18 = vmul.f32 -1.442695, %v1462_v17  ;;  %v2700_v31 = vmul.f32 -1.442695, %v1471_v30 }
 0xdde   :  { %v1483_v37 = vpop.permute.xlu0 %1482 }
 0xddf   :  { %3097 = vpow2.f32 %v2699_v18  ;;  %v1484_v38 = vrot.slane %v1483_v37, 2 }
 0xde9   :  { %v3098_v19 = vpop.eup %3097 }
 0xdea   :  { %v1466_v20 = vadd.f32 1.0, %v3098_v19 }
 0xdec   :  { %3099 = vrcp.f32 %v1466_v20  ;;  %v3011_v20 = vld [vmem:[#allocation8] sm:$0xff]  }
 0xded   :  { %3101 = vpow2.f32 %v2700_v31 }
 0xdf6   :  { %v3100_v22 = vpop.eup %3099 }
 0xdf7   :  { %v3102_v32 = vpop.eup %3101 }
 0xdf8   :  { %v1475_v35 = vadd.f32 1.0, %v3102_v32 }
 0xdfa   :  { %3103 = vrcp.f32 %v1475_v35 }
 0xe04   :  { %v3104_v47 = vpop.eup %3103 }
 0xe05   :  { %v1492_v49 = vsub.f32 1.0, %v3104_v47  ;;  %v1494_v58 = vmul.f32 %v3104_v47, %v3794_v42  ;;  %v3013_v47 = vld [vmem:[#allocation11] sm:$0xff]  }
 0xe3b   :  { %v1534_v21 = vpop.permute.xlu1 %1533 }
 0xe3c   :  { %2888 = vmatmul.mubr.msk.bf16.vlgmr.msra.gmra.mrb[20].mxu1 %vm229_vm1, %v1534_v21  ;;  %v3012_v21 = vld [vmem:[#allocation8 + $0x8] sm:$0xff]  }
 0xe3d   :  { %2903 = vmatprep.mubr.msk.bf16.mxu1 %vm3390_vm0, %v3389_v0  ;;  %2900 = vmatpush3.bf16.msra.mxu1 %v3011_v20 }
 0xe3e   :  { %2901 = vmatprep.subr.bf16.mxu1 %v3389_v0 }
 0xe3f   :  { %v1479_v23 = vpop.permute.xlu1 %1478 }
 0xe40   :  { %v1481_v24 = vmul.f32 %v3100_v22, %v1479_v23 }
 0xe41   :  { %2902 = vmatpush3.bf16.msra.mxu1 %v3012_v21 }
 0xe42   :  { %1487 = vrot.lane.b32.xlu1 %v1481_v24, %s3381_s6  ;;  %2915 = vmatprep.subr.bf16.mxu1 %v3389_v0 }
 0xeb4   :  { %v1488_v41 = vpop.permute.xlu1 %1487 }
 0xeb5   :  { %v1490_v45 = vadd.f32 %v1488_v41, %v1484_v38 }
 0xeb7   :  { %3105 = vtanh.f32 %v1490_v45 }
 0xec1   :  { %v3106_v51 = vpop.eup %3105 }
 0xec2   :  { %v1493_v52 = vmul.f32 %v3106_v51, %v1492_v49  ;;  %v3014_v49 = vld [vmem:[#allocation11 + $0x8] sm:$0xff]   ;;  %v1708_v51 = vrot.slane %v3695_v44, 2 }
 0xec4   :  { %v3828_v46 = vadd.f32 %v1494_v58, %v1493_v52 }
 0xec6   :  { %v1590_v60 = vpack.c.bf16 %v3828_v46, %v3828_v46 }
 0xec8   :  { %2896 = vmatmul.mubr.msk.bf16.vlgmr.msra.gmra.mrb[24].mxu0 %vm229_vm1, %v1590_v60 }
 0xec9   :  { %2911 = vmatprep.mubr.msk.bf16.mxu0 %vm3390_vm0, %v3389_v0  ;;  %2908 = vmatpush3.bf16.msra.mxu0 %v3013_v47 }
 0xeca   :  { %2909 = vmatprep.subr.bf16.mxu0 %v3389_v0 }
 0xecd   :  { %2910 = vmatpush3.bf16.msra.mxu0 %v3014_v49 }
 0xece   :  { %2923 = vmatprep.subr.bf16.mxu0 %v3389_v0 }
 0xf0f   :  { %v1584_v48 = vpop.f32.mrb[20].mxu1 }
 0xf10   :  { %v1585_v61 = vadd.f32 %v3585_v33, %v1584_v48  ;;  %v2889_v62 = vpop.f32.mrb[21].mxu1 }
 0xf11   :  { %v1587_v63 = vpop.f32.mrb[22].mxu1 }
 0xf12   :  { %v2890_v50 = vpop.f32.mrb[23].mxu1  ;;  %v1671_v54 = vrot.slane %v1585_v61, %v3571_v14  ;;  %v1657_v55 = vadd.f32 %v1585_v61, %v3743_v59 }
 0xf14   :  { %1672 = vrot.lane.b32.xlu0 %v1671_v54, %s3384_s0  ;;  %v2709_v2 = vmul.f32 -1.442695, %v1657_v55 }
 0xf16   :  { %3107 = vpow2.f32 %v2709_v2 }
 0xf20   :  { %v3108_v3 = vpop.eup %3107 }
 0xf21   :  { %v1661_v5 = vadd.f32 1.0, %v3108_v3 }
 0xf23   :  { %3109 = vrcp.f32 %v1661_v5 }
 0xf2d   :  { %v3110_v6 = vpop.eup %3109 }
 0xf2e   :  { %v1688_v23 = vmul.f32 %v3110_v6, %v3813_v12 }
 0xf86   :  { %v1673_v53 = vpop.permute.xlu0 %1672 }
 0xf87   :  { %v1675_v8 = vmul.f32 %v3110_v6, %v1673_v53  ;;  %v3872_v53 = vld [vmem:[#allocation9] ss:$0 sm:$0xff] }
 0xf89   :  { %1677 = vrot.lane.b32.xlu1 %v1675_v8, %s3384_s0 }
 0xf9b   :  { %v1651_v33 = vpop.f32.mrb[24].mxu0 }
 0xf9c   :  { %v2897_v9 = vpop.f32.mrb[25].mxu0  ;;  %v1652_v17 = vadd.f32 %v3641_v34, %v1651_v33 }
 0xf9d   :  { %v1654_v10 = vpop.f32.mrb[26].mxu0 }
 0xf9e   :  { %v2898_v11 = vpop.f32.mrb[27].mxu0  ;;  %v1697_v19 = vrot.slane %v1652_v17, %v3571_v14 }
 0xffb   :  { %v1678_v13 = vpop.permute.xlu1 %1677 }
 0xffc   :  { %v1680_v15 = vadd.f32 %v1678_v13, %v3743_v59  ;;  %v1682_v59 = vsub.f32 1.0, %v3110_v6 }
 0xffe   :  { %3111 = vtanh.f32 %v1680_v15 }
0x1008   :  { %v3112_v18 = vpop.eup %3111 }
0x1009   :  { %1684 = vrot.lane.b32.xlu0 %v3112_v18, %s3393_s2 }
0x100d   :  { %1698 = vrot.lane.b32.xlu0 %v1697_v19, %s3393_s2 }
0x1011   :  { %1721 = vrot.lane.b32.xlu0 %v3695_v44, %s3393_s2 }
0x107b   :  { %v1685_v22 = vpop.permute.xlu0 %1684 }
0x107c   :  { %v1687_v24 = vmul.f32 %v1685_v22, %v1682_v59 }
0x107e   :  { %v3850_v26 = vadd.f32 %v1688_v23, %v1687_v24 }
0x107f   :  { %v1699_v29 = vpop.permute.xlu0 %1698 }
0x1080   :  { %v1759_v27 = vpack.c.bf16 %v3850_v26, %v3850_v26  ;;  %v1701_v30 = vadd.f32 %v1699_v29, %v3695_v44  ;;  %v1710_v52 = vadd.f32 %v1708_v51, %v1699_v29 }
0x1082   :  { %1772 = vrot.lane.b32.xlu1 %v1759_v27, %s3393_s2  ;;  %v2710_v31 = vmul.f32 -1.442695, %v1701_v30  ;;  %v2711_v58 = vmul.f32 -1.442695, %v1710_v52 }
0x1083   :  { %v1722_v61 = vpop.permute.xlu0 %1721 }
0x1084   :  { %3113 = vpow2.f32 %v2710_v31  ;;  %v1723_v62 = vrot.slane %v1722_v61, 2 }
0x1086   :  { %1717 = vrot.lane.b32.xlu1 %v1697_v19, %s3381_s6 }
0x108e   :  { %v3114_v32 = vpop.eup %3113 }
0x108f   :  { %v1705_v35 = vadd.f32 1.0, %v3114_v32 }
0x1091   :  { %3115 = vrcp.f32 %v1705_v35  ;;  %v3015_v35 = vld [vmem:[#allocation8] sm:$0xff]  }
0x1092   :  { %3117 = vpow2.f32 %v2711_v58 }
0x109b   :  { %v3116_v38 = vpop.eup %3115 }
0x109c   :  { %v3118_v60 = vpop.eup %3117 }
0x109d   :  { %v1714_v48 = vadd.f32 1.0, %v3118_v60 }
0x109f   :  { %3119 = vrcp.f32 %v1714_v48 }
0x10a9   :  { %v3120_v54 = vpop.eup %3119 }
0x10aa   :  { %v1731_v55 = vsub.f32 1.0, %v3120_v54  ;;  %v1733_v5 = vmul.f32 %v3120_v54, %v3828_v46  ;;  %v3018_v54 = vld [vmem:[#allocation11 + $0x8] sm:$0xff]  }
0x10f4   :  { %v1773_v37 = vpop.permute.xlu1 %1772 }
0x10f5   :  { %2904 = vmatmul.mubr.msk.bf16.vlgmr.msra.gmra.mrb[24].mxu1 %vm229_vm1, %v1773_v37 }
0x10f6   :  { %2919 = vmatprep.mubr.msk.bf16.mxu1 %vm3390_vm0, %v3389_v0  ;;  %2916 = vmatpush3.bf16.msra.mxu1 %v3015_v35 }
0x10f7   :  { %2917 = vmatprep.subr.bf16.mxu1 %v3389_v0 }
0x10f8   :  { %v1718_v41 = vpop.permute.xlu1 %1717 }
0x10f9   :  { %v1720_v45 = vmul.f32 %v3116_v38, %v1718_v41 }
0x10fb   :  { %1726 = vrot.lane.b32.xlu1 %v1720_v45, %s3381_s6 }
0x116d   :  { %v1727_v63 = vpop.permute.xlu1 %1726 }
0x116e   :  { %v1729_v50 = vadd.f32 %v1727_v63, %v1723_v62 }
0x1170   :  { %3121 = vtanh.f32 %v1729_v50  ;;  %v3017_v50 = vld [vmem:[#allocation11] sm:$0xff]  }
0x117a   :  { %v3122_v2 = vpop.eup %3121 }
0x117b   :  { %v1732_v3 = vmul.f32 %v3122_v2, %v1731_v55  ;;  %v1947_v55 = vrot.slane %v3638_v28, 2 }
0x117d   :  { %v3865_v6 = vadd.f32 %v1733_v5, %v1732_v3 }
0x117f   :  { %v1829_v44 = vpack.c.bf16 %v3865_v6, %v3865_v6 }
0x1181   :  { %2912 = vmatmul.mubr.msk.bf16.vlgmr.msra.gmra.mrb[28].mxu0 %vm229_vm1, %v1829_v44 }
0x1182   :  { %2927 = vmatprep.mubr.msk.bf16.mxu0 %vm3390_vm0, %v3389_v0  ;;  %2924 = vmatpush3.bf16.msra.mxu0 %v3017_v50 }
0x1183   :  { %2925 = vmatprep.subr.bf16.mxu0 %v3389_v0 }
0x1186   :  { %2926 = vmatpush3.bf16.msra.mxu0 %v3018_v54  ;;  %v538_v54 = vrot.slane %v3622_v16, %v3571_v14  ;;  %v1503_v16 = vrot.slane %v3813_v12, %v3571_v14  ;;  %v551_v12 = vrot.slane %v3678_v25, %v3571_v14  ;;  %v1515_v25 = vrot.slane %v3828_v46, %v3571_v14 }
0x1187   :  { %2943 = vmatprep.subr.bf16.mxu0 %v3389_v0 }
0x11c8   :  { %v1823_v8 = vpop.f32.mrb[24].mxu1 }
0x11c9   :  { %v1824_v33 = vadd.f32 %v3872_v53, %v1823_v8  ;;  %v2905_v9 = vpop.f32.mrb[25].mxu1 }
0x11ca   :  { %v1826_v10 = vpop.f32.mrb[26].mxu1 }
0x11cb   :  { %v2906_v11 = vpop.f32.mrb[27].mxu1  ;;  %v1910_v13 = vrot.slane %v1824_v33, %v3571_v14  ;;  %v1896_v15 = vadd.f32 %v1824_v33, %v3652_v40 }
0x11cd   :  { %1911 = vrot.lane.b32.xlu0 %v1910_v13, %s3384_s0  ;;  %v2720_v17 = vmul.f32 -1.442695, %v1896_v15 }
0x11cf   :  { %3123 = vpow2.f32 %v2720_v17 }
0x11d9   :  { %v3124_v18 = vpop.eup %3123 }
0x11da   :  { %v1900_v19 = vadd.f32 1.0, %v3124_v18 }
0x11dc   :  { %3125 = vrcp.f32 %v1900_v19 }
0x11e6   :  { %v3126_v20 = vpop.eup %3125 }
0x11e7   :  { %v1927_v52 = vmul.f32 %v3126_v20, %v3850_v26 }
0x123f   :  { %v1912_v21 = vpop.permute.xlu0 %1911 }
0x1240   :  { %v1914_v59 = vmul.f32 %v3126_v20, %v1912_v21 }
0x1242   :  { %1916 = vrot.lane.b32.xlu1 %v1914_v59, %s3384_s0 }
0x1254   :  { %v1890_v22 = vpop.f32.mrb[28].mxu0 }
0x1255   :  { %v1891_v23 = vadd.f32 %v3641_v34, %v1890_v22  ;;  %v2913_v24 = vpop.f32.mrb[29].mxu0  ;;  %v3016_v34 = vld [vmem:[#allocation8 + $0x8] sm:$0xff]  }
0x1256   :  { %v1893_v27 = vpop.f32.mrb[30].mxu0  ;;  %2918 = vmatpush3.bf16.msra.mxu1 %v3016_v34 }
0x1257   :  { %v1936_v29 = vrot.slane %v1891_v23, %v3571_v14  ;;  %v2914_v30 = vpop.f32.mrb[31].mxu0  ;;  %2931 = vmatprep.subr.bf16.mxu1 %v3389_v0 }
0x1259   :  { %1937 = vrot.lane.b32.xlu0 %v1936_v29, %s3393_s2 }
0x125d   :  { %1956 = vrot.lane.b32.xlu0 %v1936_v29, %s3381_s6  ;;  %v2727_v29 = vld [vmem:[#allocation12] ss:$0 sm:$0xff] }
0x1261   :  { %1960 = vrot.lane.b32.xlu0 %v3638_v28, %s3393_s2 }
0x12b4   :  { %v1917_v31 = vpop.permute.xlu1 %1916 }
0x12b5   :  { %v1919_v32 = vadd.f32 %v1917_v31, %v3652_v40  ;;  %v1921_v40 = vsub.f32 1.0, %v3126_v20 }
0x12b7   :  { %3127 = vtanh.f32 %v1919_v32 }
0x12c1   :  { %v3128_v37 = vpop.eup %3127 }
0x12c2   :  { %1923 = vrot.lane.b32.xlu1 %v3128_v37, %s3393_s2 }
0x12cb   :  { %v1938_v38 = vpop.permute.xlu0 %1937 }
0x12cc   :  { %v1940_v41 = vadd.f32 %v1938_v38, %v3638_v28  ;;  %v1949_v2 = vadd.f32 %v1947_v55, %v1938_v38  ;;  %v780_v55 = vrot.slane %v3665_v4, %v3571_v14  ;;  %v1742_v4 = vrot.slane %v3850_v26, %v3571_v14 }
0x12cd   :  { %v793_v26 = vrot.slane %v3718_v36, %v3571_v14 }
0x12ce   :  { %v2721_v45 = vmul.f32 -1.442695, %v1940_v41  ;;  %v2722_v3 = vmul.f32 -1.442695, %v1949_v2  ;;  %v1021_v2 = vrot.slane %v3712_v1, %v3571_v14 }
0x12cf   :  { %v1957_v62 = vpop.permute.xlu0 %1956 }
0x12d0   :  { %3129 = vpow2.f32 %v2721_v45 }
0x12d3   :  { %v1961_v8 = vpop.permute.xlu0 %1960 }
0x12d4   :  { %v1962_v9 = vrot.slane %v1961_v8, 2  ;;  %v2186_v8 = vrot.slane %v3612_v57, 2 }
0x12da   :  { %v3130_v47 = vpop.eup %3129 }
0x12db   :  { %v1944_v49 = vadd.f32 1.0, %v3130_v47 }
0x12dd   :  { %3131 = vrcp.f32 %v1944_v49 }
0x12de   :  { %3133 = vpow2.f32 %v2722_v3  ;;  %v1262_v3 = vrot.slane %v3771_v56, %v3571_v14 }
0x12e7   :  { %v3132_v61 = vpop.eup %3131 }
0x12e8   :  { %v1959_v63 = vmul.f32 %v3132_v61, %v1957_v62  ;;  %v3134_v5 = vpop.eup %3133 }
0x12e9   :  { %v1953_v44 = vadd.f32 1.0, %v3134_v5 }
0x12eb   :  { %3135 = vrcp.f32 %v1953_v44 }
0x12f5   :  { %v3136_v13 = vpop.eup %3135 }
0x12f6   :  { %v1970_v15 = vsub.f32 1.0, %v3136_v13  ;;  %v1972_v17 = vmul.f32 %v3136_v13, %v3865_v6 }
0x1334   :  { %v1924_v51 = vpop.permute.xlu1 %1923 }
0x1335   :  { %v1926_v58 = vmul.f32 %v1924_v51, %v1921_v40 }
0x1337   :  { %v3891_v60 = vadd.f32 %v1927_v52, %v1926_v58 }
0x1339   :  { %v1998_v48 = vpack.c.bf16 %v3891_v60, %v3891_v60  ;;  %v1981_v1 = vrot.slane %v3891_v60, %v3571_v14 }
0x133b   :  { %2011 = vrot.lane.b32.xlu1 %v1998_v48, %s3393_s2 }
0x133f   :  { %1965 = vrot.lane.b32.xlu1 %v1959_v63, %s3381_s6 }
0x13ad   :  { %v2012_v33 = vpop.permute.xlu1 %2011 }
0x13ae   :  { %2920 = vmatmul.mubr.msk.bf16.vlgmr.msra.gmra.mrb[28].mxu1 %vm229_vm1, %v2012_v33  ;;  %v1034_v33 = vrot.slane %v3761_v39, %v3571_v14 }
0x13af   :  { %2939 = vmatprep.mubr.msk.bf16.mxu1 %vm3390_vm0, %v3389_v0 }
0x13b1   :  { %v1966_v10 = vpop.permute.xlu1 %1965 }
0x13b2   :  { %v1968_v11 = vadd.f32 %v1966_v10, %v1962_v9  ;;  %v1275_v9 = vrot.slane %v3794_v42, %v3571_v14 }
0x13b4   :  { %3137 = vtanh.f32 %v1968_v11 }
0x13be   :  { %v3138_v28 = vpop.eup %3137 }
0x13bf   :  { %v1971_v18 = vmul.f32 %v3138_v28, %v1970_v15 }
0x13c1   :  { %v3904_v19 = vadd.f32 %v1972_v17, %v1971_v18 }
0x13c3   :  { %v2068_v20 = vpack.c.bf16 %v3904_v19, %v3904_v19  ;;  %v1993_v36 = vrot.slane %v3904_v19, %v3571_v14 }
0x13c5   :  { %2928 = vmatmul.mubr.msk.bf16.vlgmr.msra.gmra.mrb[32].mxu0 %vm229_vm1, %v2068_v20 }
0x13c6   :  { %2951 = vmatprep.mubr.msk.bf16.mxu0 %vm3390_vm0, %v3389_v0 }
0x1481   :  { %v2062_v21 = vpop.f32.mrb[28].mxu1 }
0x1482   :  { %v2063_v59 = vadd.f32 %v3872_v53, %v2062_v21  ;;  %v2921_v22 = vpop.f32.mrb[29].mxu1 }
0x1483   :  { %v2065_v23 = vpop.f32.mrb[30].mxu1 }
0x1484   :  { %v2922_v24 = vpop.f32.mrb[31].mxu1  ;;  %v2149_v27 = vrot.slane %v2063_v59, %v3571_v14  ;;  %v2135_v53 = vadd.f32 %v2063_v59, %v3657_v43 }
0x1486   :  { %2150 = vrot.lane.b32.xlu0 %v2149_v27, %s3384_s0  ;;  %v2731_v38 = vmul.f32 -1.442695, %v2135_v53 }
0x1488   :  { %3139 = vpow2.f32 %v2731_v38 }
0x1492   :  { %v3140_v41 = vpop.eup %3139 }
0x1493   :  { %v2139_v45 = vadd.f32 1.0, %v3140_v41 }
0x1495   :  { %3141 = vrcp.f32 %v2139_v45  ;;  %v3022_v45 = vld [vmem:[#allocation14 + $0x18] sm:$0xff]  }
0x1498   :  { %v2129_v30 = vpop.f32.mrb[32].mxu0 }
0x1499   :  { %v2130_v31 = vadd.f32 %v2727_v29, %v2129_v30  ;;  %v2929_v32 = vpop.f32.mrb[33].mxu0  ;;  %v3019_v29 = vld [vmem:[#allocation14] sm:$0xff]   ;;  %v3020_v30 = vld [vmem:[#allocation14 + $0x8] sm:$0xff]  }
0x149a   :  { %v2132_v35 = vpop.f32.mrb[34].mxu0  ;;  %2932 = vmatpush3.bf16.msra.mxu1 %v3019_v29 }
0x149b   :  { %v2930_v37 = vpop.f32.mrb[35].mxu0  ;;  %v2175_v34 = vrot.slane %v2130_v31, %v3571_v14  ;;  %2933 = vmatprep.subr.bf16.mxu1 %v3389_v0 }
0x149c   :  { %v3021_v37 = vld [vmem:[#allocation14 + $0x10] sm:$0xff]  }
0x149d   :  { %2195 = vrot.lane.b32.xlu0 %v2175_v34, %s3381_s6  ;;  %2176 = vrot.lane.b32.xlu1 %v2175_v34, %s3393_s2 }
0x149e   :  { %2934 = vmatpush3.bf16.msra.mxu1 %v3020_v30 }
0x149f   :  { %v3920_v47 = vpop.eup %3141  ;;  %2935 = vmatprep.subr.bf16.mxu1 %v3389_v0 }
0x14a0   :  { %v2160_v32 = vsub.f32 1.0, %v3920_v47 }
0x14a1   :  { %2199 = vrot.lane.b32.xlu0 %v3612_v57, %s3393_s2 }
0x14a2   :  { %2936 = vmatpush3.bf16.msra.mxu1 %v3021_v37 }
0x14a3   :  { %2937 = vmatprep.subr.bf16.mxu1 %v3389_v0 }
0x14a6   :  { %2938 = vmatpush3.bf16.msra.mxu1 %v3022_v45 }
0x14f8   :  { %v2151_v49 = vpop.permute.xlu0 %2150 }
0x14f9   :  { %v2153_v40 = vmul.f32 %v3920_v47, %v2151_v49 }
0x14fb   :  { %2155 = vrot.lane.b32.xlu1 %v2153_v40, %s3384_s0 }
0x150f   :  { %v2177_v51 = vpop.permute.xlu1 %2176  ;;  %v2196_v63 = vpop.permute.xlu0 %2195 }
0x1510   :  { %v2179_v52 = vadd.f32 %v2177_v51, %v3612_v57  ;;  %v1754_v57 = vrot.slane %v3865_v6, %v3571_v14 }
0x1512   :  { %v2732_v58 = vmul.f32 -1.442695, %v2179_v52 }
0x1513   :  { %v2200_v11 = vpop.permute.xlu0 %2199 }
0x1514   :  { %3143 = vpow2.f32 %v2732_v58  ;;  %v2201_v13 = vrot.slane %v2200_v11, 2 }
0x151e   :  { %v3144_v48 = vpop.eup %3143 }
0x151f   :  { %v2183_v61 = vadd.f32 1.0, %v3144_v48 }
0x1521   :  { %3145 = vrcp.f32 %v2183_v61 }
0x152b   :  { %v3146_v62 = vpop.eup %3145 }
0x152c   :  { %v2198_v50 = vmul.f32 %v3146_v62, %v2196_v63 }
0x152e   :  { %2204 = vrot.lane.b32.xlu1 %v2198_v50, %s3381_s6 }
0x1532   :  { %539 = vrot.lane.b32.xlu1 %v538_v54, %s3393_s2 }
0x1536   :  { %781 = vrot.lane.b32.xlu1 %v780_v55, %s3393_s2 }
0x153a   :  { %1022 = vrot.lane.b32.xlu1 %v1021_v2, %s3393_s2 }
0x153e   :  { %1263 = vrot.lane.b32.xlu1 %v1262_v3, %s3393_s2 }
0x1542   :  { %1504 = vrot.lane.b32.xlu1 %v1503_v16, %s3393_s2 }
0x1546   :  { %1743 = vrot.lane.b32.xlu1 %v1742_v4, %s3393_s2 }
0x154a   :  { %1982 = vrot.lane.b32.xlu1 %v1981_v1, %s3393_s2 }
0x156d   :  { %v2156_v5 = vpop.permute.xlu1 %2155 }
0x156e   :  { %v2158_v56 = vadd.f32 %v2156_v5, %v3657_v43  ;;  %v2188_v43 = vadd.f32 %v2186_v8, %v2177_v51 }
0x1570   :  { %3147 = vtanh.f32 %v2158_v56  ;;  %v2733_v10 = vmul.f32 -1.442695, %v2188_v43 }
0x1572   :  { %3149 = vpow2.f32 %v2733_v10 }
0x157a   :  { %v3148_v44 = vpop.eup %3147 }
0x157b   :  { %2162 = vrot.lane.b32.xlu0 %v3148_v44, %s3393_s2 }
0x157c   :  { %v3150_v39 = vpop.eup %3149 }
0x157d   :  { %v2192_v42 = vadd.f32 1.0, %v3150_v39  ;;  %v3026_v39 = vld [vmem:[%s4073_s9 + $0x18] sm:$0xff]  }
0x157f   :  { %552 = vrot.lane.b32.xlu0 %v551_v12, %s3381_s6  ;;  %3151 = vrcp.f32 %v2192_v42  ;;  %v2734_v42 = vld [vmem:[#allocation15] ss:$0 sm:$0xff] }
0x1583   :  { %794 = vrot.lane.b32.xlu0 %v793_v26, %s3381_s6 }
0x1587   :  { %1035 = vrot.lane.b32.xlu0 %v1034_v33, %s3381_s6 }
0x1589   :  { %v3152_v17 = vpop.eup %3151 }
0x158a   :  { %v2209_v20 = vsub.f32 1.0, %v3152_v17  ;;  %v2211_v22 = vmul.f32 %v3152_v17, %v3904_v19  ;;  %v2166_v19 = vmul.f32 %v3920_v47, %v3891_v60 }
0x158b   :  { %1276 = vrot.lane.b32.xlu0 %v1275_v9, %s3381_s6 }
0x158f   :  { %1516 = vrot.lane.b32.xlu0 %v1515_v25, %s3381_s6  ;;  %v3023_v25 = vld [vmem:[%s4073_s9] sm:$0xff]  }
0x1590   :  { %2944 = vmatpush3.bf16.msra.mxu0 %v3023_v25 }
0x1591   :  { %2945 = vmatprep.subr.bf16.mxu0 %v3389_v0 }
0x1593   :  { %1755 = vrot.lane.b32.xlu0 %v1754_v57, %s3381_s6  ;;  %v3024_v57 = vld [vmem:[%s4073_s9 + $0x8] sm:$0xff]  }
0x1594   :  { %2946 = vmatpush3.bf16.msra.mxu0 %v3024_v57 }
0x1595   :  { %2947 = vmatprep.subr.bf16.mxu0 %v3389_v0 }
0x1597   :  { %1994 = vrot.lane.b32.xlu0 %v1993_v36, %s3381_s6  ;;  %v3025_v36 = vld [vmem:[%s4073_s9 + $0x10] sm:$0xff]   ;;  %s3398_s9 = smov [#allocation17]  }
0x1598   :  { %2948 = vmatpush3.bf16.msra.mxu0 %v3025_v36  ;;  %s2630_s12 = sshll.u32 %s3398_s9, 4  ;;  %s2631_s12 = int_to_ptr.vmem [resolvable:$true] %s2630_s12 }
0x1599   :  { %2949 = vmatprep.subr.bf16.mxu0 %v3389_v0  ;;  %s3341_s15 = scalar_lea.vmem %s2631_s12, 32  ;;  %p3346_p9 = scmp.lt.s32.totalorder %s2631_s12, %s2631_s12 }
0x159a   :  { %p3342_p8 = scmp.ne.s32.totalorder %s2631_s12, %s3341_s15  ;;  %p3347_p10 = scmp.lt.s32.totalorder %s3341_s15, %s3341_s15 }
0x159c   :  { %2950 = vmatpush3.bf16.msra.mxu0 %v3026_v39  ;;  %p3348_p11 = por %p3347_p10, %p3346_p9 }
0x159e   :  { %p3349_p12 = pnand %p3348_p11, %p3342_p8 }
0x15a0   :  { %v2205_v15 = vpop.permute.xlu1 %2204 }
0x15a1   :  { %v2207_v46 = vadd.f32 %v2205_v15, %v2201_v13 }
0x15a3   :  { %3153 = vtanh.f32 %v2207_v46 }
0x15a4   :  { %v540_v28 = vpop.permute.xlu1 %539 }
0x15a5   :  { %543 = vst.msk [vmem:[#allocation2] sm:$0x3] %vm542_vm2, %v540_v28 }
0x15a8   :  { %v782_v6 = vpop.permute.xlu1 %781 }
0x15a9   :  { %785 = vst.msk [vmem:[#allocation2 + $0x2] sm:$0x3] %vm542_vm2, %v782_v6 }
0x15ac   :  { %v1023_v18 = vpop.permute.xlu1 %1022 }
0x15ad   :  { %v3154_v21 = vpop.eup %3153  ;;  %1026 = vst.msk [vmem:[#allocation2 + $0x4] sm:$0x3] %vm542_vm2, %v1023_v18 }
0x15ae   :  { %v2210_v59 = vmul.f32 %v3154_v21, %v2209_v20 }
0x15b0   :  { %v1264_v23 = vpop.permute.xlu1 %1263  ;;  %v2212_v24 = vadd.f32 %v2211_v22, %v2210_v59 }
0x15b1   :  { %1267 = vst.msk [vmem:[#allocation2 + $0x6] sm:$0x3] %vm542_vm2, %v1264_v23 }
0x15b2   :  { %v2232_v27 = vrot.slane %v2212_v24, %v3571_v14 }
0x15b4   :  { %2233 = vrot.lane.b32.xlu0 %v2232_v27, %s3381_s6  ;;  %v1505_v31 = vpop.permute.xlu1 %1504 }
0x15b8   :  { %v1744_v53 = vpop.permute.xlu1 %1743 }
0x15bc   :  { %v1983_v60 = vpop.permute.xlu1 %1982 }
0x15ed   :  { %v2163_v35 = vpop.permute.xlu0 %2162 }
0x15ee   :  { %v2165_v34 = vmul.f32 %v2163_v35, %v2160_v32 }
0x15f0   :  { %v2167_v38 = vadd.f32 %v2166_v19, %v2165_v34 }
0x15f1   :  { %v553_v41 = vpop.permute.xlu0 %552 }
0x15f2   :  { %557 = vst.msk [vmem:[#allocation2 + $0xe] sm:$0x3] %vm556_vm3, %v553_v41  ;;  %v2220_v49 = vrot.slane %v2167_v38, %v3571_v14 }
0x15f4   :  { %2221 = vrot.lane.b32.xlu1 %v2220_v49, %s3393_s2  ;;  %v3394_v49 = vmov 269488144  }
0x15f5   :  { %v795_v40 = vpop.permute.xlu0 %794 }
0x15f6   :  { %798 = vst.msk [vmem:[#allocation2 + $0xc] sm:$0x3] %vm556_vm3, %v795_v40  ;;  %v2542_v40 = vunpack.c.l.s4 %v3394_v49 }
0x15f7   :  { %1985 = vst.msk [vmem:[#allocation2 + $0xc] sm:$0x3] %vm542_vm2, %v1983_v60  ;;  %v3395_v60 = vmov 842150450  }
0x15f9   :  { %v1036_v47 = vpop.permute.xlu0 %1035 }
0x15fa   :  { %1039 = vst.msk [vmem:[#allocation2 + $0xa] sm:$0x3] %vm556_vm3, %v1036_v47  ;;  %v2549_v47 = vunpack.c.l.s4 %v3395_v60 }
0x15fb   :  { %1746 = vst.msk [vmem:[#allocation2 + $0xa] sm:$0x3] %vm542_vm2, %v1744_v53 }
0x15fd   :  { %v1277_v51 = vpop.permute.xlu0 %1276 }
0x15fe   :  { %1280 = vst.msk [vmem:[#allocation2 + $0x8] sm:$0x3] %vm556_vm3, %v1277_v51  ;;  %v2243_v5 = vld [vmem:[#allocation2 + $0xc] sm:$0x3]  ;;  %v3396_v51 = vmov 1414812756  }
0x15ff   :  { %1507 = vst.msk [vmem:[#allocation2 + $0x8] sm:$0x3] %vm542_vm2, %v1505_v31 }
0x1601   :  { %v1517_v52 = vpop.permute.xlu0 %1516 }
0x1602   :  { %1519 = vst.msk [vmem:[#allocation2 + $0x6] sm:$0x3] %vm556_vm3, %v1517_v52  ;;  %v2242_v16 = vld [vmem:[#allocation2 + $0xa] sm:$0x3]  ;;  %v2556_v52 = vunpack.c.l.s4 %v3396_v51 }
0x1605   :  { %v1756_v58 = vpop.permute.xlu0 %1755 }
0x1606   :  { %1758 = vst.msk [vmem:[#allocation2 + $0x4] sm:$0x3] %vm556_vm3, %v1756_v58  ;;  %v2241_v55 = vld [vmem:[#allocation2 + $0x8] sm:$0x3]  ;;  %v2543_v58 = vunpack.c.0.s8 %v2542_v40 }
0x1607   :  { %v2270_v1 = vcombine.low %v2241_v55, %v2242_v16 }
0x1609   :  { %v1995_v48 = vpop.permute.xlu0 %1994  ;;  %v2240_v3 = vld [vmem:[#allocation2 + $0x6] sm:$0x3]  ;;  %v2278_v8 = vrot.slane %v2270_v1, %v3571_v14 }
0x160a   :  { %1997 = vst.msk [vmem:[#allocation2 + $0x2] sm:$0x3] %vm556_vm3, %v1995_v48  ;;  %v2550_v48 = vunpack.c.0.s8 %v2549_v47 }
0x160d   :  { %v2239_v54 = vld [vmem:[#allocation2 + $0x4] sm:$0x3] }
0x160e   :  { %v2254_v4 = vcombine.low %v2239_v54, %v2240_v3  ;;  %v2553_v54 = vsub.s32 %v2550_v48, %v3567_v7 }
0x1610   :  { %v2268_v26 = vrot.slane %v2254_v4, %v3571_v14 }
0x1611   :  { %v2238_v50 = vld [vmem:[#allocation2 + $0x2] sm:$0x3] }
0x1626   :  { %v2234_v61 = vpop.permute.xlu0 %2233 }
0x1627   :  { %2236 = vst.msk [vmem:[#allocation2] sm:$0x3] %vm556_vm3, %v2234_v61  ;;  %v3397_v61 = vmov 1987475062  }
0x162e   :  { %v2237_v63 = vld [vmem:[#allocation2] sm:$0x3] }
0x162f   :  { %v2253_v2 = vcombine.low %v2237_v63, %v2238_v50  ;;  %v2557_v63 = vunpack.c.0.s8 %v2556_v52  ;;  %v2546_v50 = vsub.s32 %v2543_v58, %v3567_v7 }
0x1631   :  { %v2261_v44 = vrot.slane %v2253_v2, %v3571_v14  ;;  %v2560_v16 = vsub.s32 %v2557_v63, %v3567_v7 }
0x1633   :  { %v4002_v43 = vcombine.low %v2261_v44, %v2268_v26 }
0x1666   :  { %v2222_v62 = vpop.permute.xlu1 %2221 }
0x1667   :  { %2224 = vst.msk [vmem:[#allocation2 + $0xe] sm:$0x3] %vm542_vm2, %v2222_v62  ;;  %v2563_v62 = vunpack.c.l.s4 %v3397_v61 }
0x1669   :  { %v2564_v55 = vunpack.c.0.s8 %v2563_v62 }
0x166e   :  { %v2244_v56 = vld [vmem:[#allocation2 + $0xe] sm:$0x3] }
0x166f   :  { %v2271_v12 = vcombine.low %v2243_v5, %v2244_v56  ;;  %v2567_v56 = vsub.s32 %v2564_v55, %v3567_v7 }
0x1671   :  { %v2285_v33 = vrot.slane %v2271_v12, %v3571_v14 }
0x1673   :  { %v4004_v9 = vcombine.low %v2278_v8, %v2285_v33 }
0x1675   :  { %v2289_v10 = vpack.c.bf16 %v4004_v9, %v4002_v43 }
0x1677   :  { %2940 = vmatmul.mubr.msk.bf16.vlgmr.msra.gmra.mrb[32].mxu1 %vm2329_vm4, %v2289_v10 }
0x174a   :  { %v2367_v11 = vpop.f32.mrb[32].mxu1 }
0x174b   :  { %v2368_v13 = vadd.f32 %v2734_v42, %v2367_v11  ;;  %v2941_v15 = vpop.f32.mrb[33].mxu1 }
0x174c   :  { %v2370_v46 = vpop.f32.mrb[34].mxu1 }
0x174d   :  { %v2371_v28 = vadd.f32 %v2734_v42, %v2370_v46  ;;  %v2942_v6 = vpop.f32.mrb[35].mxu1  ;;  %3155 = vtanh.f32 %v2368_v13 }
0x174f   :  { %3157 = vtanh.f32 %v2371_v28 }
0x1757   :  { %v3156_v17 = vpop.eup %3155 }
0x1759   :  { %v3158_v18 = vpop.eup %3157 }
0x175a   :  { %v2376_v20 = vpack.c.bf16 %v3158_v18, %v3156_v17 }
0x175c   :  { %2952 = vmatmul.mubr.msk.bf16.vlgmr.msra.gmra.mrb[36].mxu0 %vm2329_vm4, %v2376_v20 }
0x182f   :  { %v2446_v21 = vpop.f32.mrb[36].mxu0 }
0x1830   :  { %v2953_v59 = vpop.f32.mrb[37].mxu0  ;;  %v2454_v0 = vsel %vm2453_vm5, %v2446_v21, -inf }
0x1831   :  { %v2449_v22 = vpop.f32.mrb[38].mxu0 }
0x1832   :  { %v2455_v23 = vsel %vm2453_vm5, %v2449_v22, -inf  ;;  %v2954_v24 = vpop.f32.mrb[39].mxu0 }
0x1833   :  { %v2456_v27 = vmax.f32 %v2454_v0, %v2455_v23 }
0x1835   :  { %v2457_v29 = vrot.slane %v2456_v27, 4 }
0x1837   :  { %v2458_v30 = vmax.f32 %v2456_v27, %v2457_v29 }
0x1839   :  { %v2459_v31 = vrot.slane %v2458_v30, 2 }
0x183b   :  { %v2460_v32 = vmax.f32 %v2458_v30, %v2459_v31 }
0x183d   :  { %v2461_v35 = vrot.slane %v2460_v32, 1 }
0x183f   :  { %v2462_v37 = vmax.f32 %v2460_v32, %v2461_v35 }
0x1841   :  { %v2463_v19 = vsub.f32 %v2446_v21, %v2462_v37  ;;  %v2464_v34 = vsub.f32 %v2449_v22, %v2462_v37 }
0x1843   :  { %v2465_v53 = vmul.f32 1.442695, %v2463_v19  ;;  %v2467_v38 = vmul.f32 1.442695, %v2464_v34 }
0x1845   :  { %3159 = vpow2.f32 %v2465_v53 }
0x1846   :  { %3161 = vpow2.f32 %v2467_v38 }
0x184f   :  { %v3160_v41 = vpop.eup %3159 }
0x1850   :  { %v3162_v45 = vpop.eup %3161  ;;  %2471 = vperm.xlu1 %2979, %v3160_v41  }
0x1851   :  { %2476 = vperm.xlu0 %2980, %v3162_v45  }
0x18cf   :  { %v2472_v2 = vpop.permute.xlu1 %2471 }
0x18d0   :  { %v2479_v3 = vmul.f32 %v2472_v2, %v4002_v43  ;;  %v2547_v5 = vrot.slane %v2472_v2, %v2546_v50  ;;  %v2554_v44 = vrot.slane %v2472_v2, %v2553_v54  ;;  %v2561_v26 = vrot.slane %v2472_v2, %v2560_v16  ;;  %v2477_v8 = vpop.permute.xlu0 %2476 }
0x18d1   :  { %v2568_v36 = vrot.slane %v2472_v2, %v2567_v56  ;;  %v2575_v11 = vrot.slane %v2477_v8, %v2546_v50  ;;  %v2480_v13 = vmul.f32 %v2477_v8, %v4004_v9  ;;  %v2582_v6 = vrot.slane %v2477_v8, %v2553_v54 }
0x18d2   :  { %v2483_v4 = vcombine.high %v2479_v3, %v2479_v3  ;;  %v2490_v1 = vrot.slane %v2479_v3, %v3571_v14  ;;  %v2606_v25 = vsel %vm2605_vm7, %v2547_v5, 0.0  ;;  %v2607_v39 = vsel %vm2605_vm7, %v2554_v44, 0.0 }
0x18d3   :  { %v2608_v42 = vadd.f32 %v2607_v39, %v2606_v25  ;;  %v2609_v7 = vsel %vm2605_vm7, %v2561_v26, 0.0  ;;  %v2611_v18 = vsel %vm2605_vm7, %v2568_v36, 0.0  ;;  %v2589_v21 = vrot.slane %v2477_v8, %v2560_v16 }
0x18d4   :  { %v2498_v12 = vcombine.high %v2490_v1, %v2490_v1  ;;  %v2497_v33 = vrot.slane %v2483_v4, %v3571_v14  ;;  %v2526_v10 = vsel %vm2525_vm6, %v2490_v1, 0.0  ;;  %v2613_v59 = vsel %vm2605_vm7, %v2575_v11, 0.0 }
0x18d5   :  { %v2610_v28 = vadd.f32 %v2609_v7, %v2608_v42  ;;  %v2507_v22 = vrot.slane %v2480_v13, %v3571_v14  ;;  %v2596_v24 = vrot.slane %v2477_v8, %v2567_v56  ;;  %v2615_v9 = vsel %vm2605_vm7, %v2582_v6, 0.0 }
0x18d6   :  { %v2527_v43 = vsel %vm2525_vm6, %v2498_v12, 0.0  ;;  %v2499_v15 = vcombine.high %v2497_v33, %v2497_v33  ;;  %v2529_v46 = vsel %vm2525_vm6, %v2497_v33, 0.0  ;;  %v2617_v30 = vsel %vm2605_vm7, %v2589_v21, 0.0 }
0x18d7   :  { %v2528_v57 = vadd.f32 %v2527_v43, %v2526_v10  ;;  %v2612_v20 = vadd.f32 %v2611_v18, %v2610_v28  ;;  %v2500_v31 = vcombine.high %v2480_v13, %v2480_v13  ;;  %v2515_v32 = vcombine.high %v2507_v22, %v2507_v22 }
0x18d8   :  { %v2531_v0 = vsel %vm2525_vm6, %v2499_v15, 0.0  ;;  %v2533_v35 = vsel %vm2525_vm6, %v2507_v22, 0.0  ;;  %v2619_v19 = vsel %vm2605_vm7, %v2596_v24, 0.0 }
0x18d9   :  { %v2530_v17 = vadd.f32 %v2529_v46, %v2528_v57  ;;  %v2614_v23 = vadd.f32 %v2613_v59, %v2612_v20  ;;  %v2514_v38 = vrot.slane %v2500_v31, %v3571_v14  ;;  %v2535_v41 = vsel %vm2525_vm6, %v2515_v32, 0.0 }
0x18db   :  { %v2532_v27 = vadd.f32 %v2531_v0, %v2530_v17  ;;  %v2616_v29 = vadd.f32 %v2615_v9, %v2614_v23  ;;  %v2516_v49 = vcombine.high %v2514_v38, %v2514_v38  ;;  %v2537_v40 = vsel %vm2525_vm6, %v2514_v38, 0.0 }
0x18dd   :  { %v2618_v37 = vadd.f32 %v2617_v30, %v2616_v29  ;;  %v2534_v34 = vadd.f32 %v2533_v35, %v2532_v27  ;;  %v2539_v47 = vsel %vm2525_vm6, %v2516_v49, 0.0 }
0x18df   :  { %v2620_v53 = vadd.f32 %v2619_v19, %v2618_v37  ;;  %v2536_v45 = vadd.f32 %v2535_v41, %v2534_v34 }
0x18e1   :  { %3163 = vrcp.f32 %v2620_v53  ;;  %v2538_v60 = vadd.f32 %v2537_v40, %v2536_v45 }
0x18e3   :  { %v2540_v51 = vadd.f32 %v2539_v47, %v2538_v60 }
0x18eb   :  { %v3164_v52 = vpop.eup %3163 }
0x18ec   :  { %v2622_v58 = vmul.f32 %v3164_v52, %v2540_v51 }
0x18ee   :  { %2623 = vst.msk [vmem:[#allocation17] sm:$0x3] %vm2525_vm6, %v2622_v58 }
0x18ef   :  { %3352 = shalt.err (!%p3349_p12)
}
0x18f0   :  { %s3353_s17 = scalar_lea.hbm %s4074_s10, 32 }
0x18f1   :  { %p3354_p13 = scmp.ne.s32.totalorder %s4074_s10, %s3353_s17  ;;  %p3357_p0 = scmp.lt.u32.totalorder %s3353_s17, %s4074_s10 }
0x18f3   :  { %p3359_p1 = pnand %p3357_p0, %p3354_p13 }
0x18f5   :  { %3362 = shalt.err (!%p3359_p1)
}
0x18f6   :  { %2633 = dma.vmem_to_hbm [thread:$0]  %s2631_s12, 32, %s4074_s10, [#allocation5]  }
0x18f7   :  { %3373 = dma.done.wait [#allocation5], 32  }
0x18f8   :  { %3374 = vsyncadd [#allocation5], 4294967264 }
0x18f9   :  { %2637 = vsyncpa [#allocation4], 1 }
0x18fa   :  { %2638 = vsyncpa [#allocation7], 1 }
0x18fb   :  { %2639 = vsyncpa [#allocation10], 1 }
0x18fc   :  { %2640 = vsyncpa [#allocation13], 1 }
0x18fd   :  { %2641 = vsyncpa [#allocation16], 1 }
0x18fe   :  { %2642 = vsyncpa [#allocation5], 1 }

</bundles_post_ra>
